<compile_context>
chip_gen: v7x
topology: tpu7x:2x2x1
jax: 0.10.0
libtpu: 0.0.40
codegen_flags: <defaults>
</compile_context>

<pallas_src>
import functools
import math

import jax
import jax.numpy as jnp
from jax.experimental import pallas as pl
from jax.experimental.pallas import tpu as pltpu


# -----------------------------------------------------------------------------
# Fused forward kernel (canonical DQN geometry: 36x36 -> 8x8 -> 3x3 -> 1x1).
# One gridless pallas_call; intermediates live in VMEM scratch.
# -----------------------------------------------------------------------------
def _fused_forward_kernel(x_ref, w1_ref, b1_ref, w2_ref, b2_ref, w3_ref, b3_ref,
                          fc1w_ref, fc1b_ref, fc2w_ref, fc2b_ref,
                          o_ref, h1_ref, p2_ref, h2_ref):
    f32 = jnp.float32
    B = x_ref.shape[0]
    f1 = x_ref.shape[3]            # 16 * in_channels (one 4x4 input superpixel)

    # ---- conv1 (8x8, stride 4) --------------------------------------------
    # kernel 8 = 2 * stride 4, so over the 9x9 grid of 4x4 superpixels conv1
    # is a 2x2 stride-1 conv: each quadrant is one (B*64, f1) @ (f1, 32) matmul
    # over a contiguous window of the input superpixel grid.
    acc1 = None
    for quad, (bi, bj) in enumerate(((0, 0), (0, 1), (1, 0), (1, 1))):
        xs = x_ref[:, bi:bi + 8, bj:bj + 8, :].reshape(B * 64, f1)
        part = jnp.dot(xs, w1_ref[quad * f1:(quad + 1) * f1, :],
                       preferred_element_type=f32)
        acc1 = part if acc1 is None else acc1 + part
    # rows ordered (b, oh, ow); cols = conv1 output channels
    h1_ref[...] = jnp.maximum(acc1 + b1_ref[...], 0.0)        # (B*64, 32)

    # ---- conv2 (4x4, stride 2): in-VMEM im2col + one matmul ----------------
    # p2[b*9 + i*3 + j, (di*4 + dj)*32 + c] = h1[b, c, 2i+di, 2j+dj]
    for di in range(4):
        for dj in range(4):
            col = (di * 4 + dj) * 32
            for b in range(B):
                for i in range(3):
                    r0 = b * 64 + (2 * i + di) * 8 + dj
                    dst = b * 9 + i * 3
                    p2_ref[dst:dst + 3, col:col + 32] = (
                        h1_ref[pl.ds(r0, 3, stride=2), :])     # rows 2j+dj, j=0..2
    h2 = jnp.dot(p2_ref[...], w2_ref[...], preferred_element_type=f32)
    # rows ordered (b, i, j); cols = conv2 output channels
    h2_ref[...] = jnp.maximum(h2 + b2_ref[...], 0.0)           # (B*9, 64)

    # ---- conv3 (3x3 over the full 3x3 map) = sum of 9 per-position matmuls --
    acc3 = None
    for p in range(9):
        lhs = h2_ref[pl.ds(p, B, stride=9), :]                 # (B, 64): batch rows
        part = jnp.dot(lhs, w3_ref[p * 64:(p + 1) * 64, :],
                       preferred_element_type=f32)
        acc3 = part if acc3 is None else acc3 + part
    h3 = jnp.maximum(acc3 + b3_ref[...], 0.0)                  # (B, 64) == flatten

    # ---- fc1 -> ReLU -> fc2 -------------------------------------------------
    h4 = jnp.maximum(
        jnp.dot(h3, fc1w_ref[...], preferred_element_type=f32) + fc1b_ref[...], 0.0)
    qv = jnp.dot(h4, fc2w_ref[...], preferred_element_type=f32) + fc2b_ref[...]
    o_ref[...] = qv.astype(o_ref.dtype)


def fused_forward(x_sp, p):
    """x_sp: (B, 9, 9, 16*C) superpixel-packed input. Returns (B, num_actions)."""
    B = x_sp.shape[0]
    num_actions = p["fc2_wm"].shape[1]
    return pl.pallas_call(
        _fused_forward_kernel,
        out_shape=jax.ShapeDtypeStruct((B, num_actions), x_sp.dtype),
        scratch_shapes=[
            pltpu.VMEM((B * 64, 32), jnp.float32),    # conv1 output
            pltpu.VMEM((B * 9, 512), jnp.float32),    # conv2 im2col patches
            pltpu.VMEM((B * 9, 64), jnp.float32),     # conv2 output
        ],
    )(x_sp, p["w1q"], p["b1"], p["w2_hwio"], p["b2"], p["w3_pos"], p["b3"],
      p["fc1_wm"], p["fc1_b"], p["fc2_wm"], p["fc2_b"])


# -----------------------------------------------------------------------------
# Generic-geometry fallback (only used when the observation is not 36x36).
# Gridless full-VMEM matmul kernel; im2col via one XLA patches op per conv.
# -----------------------------------------------------------------------------
def _mm_bias_act_kernel(x_ref, w_ref, b_ref, o_ref, *, relu):
    y = jnp.dot(x_ref[...], w_ref[...], preferred_element_type=jnp.float32)
    y = y + b_ref[...]
    if relu:
        y = jnp.maximum(y, 0.0)
    o_ref[...] = y.astype(o_ref.dtype)


def matmul_bias_act(x, w, b, *, relu):
    M, K = x.shape
    N = w.shape[1]
    return pl.pallas_call(
        functools.partial(_mm_bias_act_kernel, relu=relu),
        out_shape=jax.ShapeDtypeStruct((M, N), x.dtype),
    )(x, w, b.reshape(1, N))


def conv2d_relu(x_nhwc, w_cm, b, ksize, stride, relu=True):
    # conv_general_dilated_patches yields channel-major features
    # (f = ic*kh*kw + di*kw + dj); w_cm is pre-permuted to match.
    N = x_nhwc.shape[0]
    patches = jax.lax.conv_general_dilated_patches(
        x_nhwc, filter_shape=(ksize, ksize), window_strides=(stride, stride),
        padding="VALID", dimension_numbers=("NHWC", "HWIO", "NHWC"))
    oh, ow = patches.shape[1], patches.shape[2]
    y = matmul_bias_act(patches.reshape(N * oh * ow, -1), w_cm, b, relu=relu)
    return y.reshape(N, oh, ow, w_cm.shape[1])


# -----------------------------------------------------------------------------
# QLearner forward
# -----------------------------------------------------------------------------
def qlearner_forward(p, x_nchw):
    B, C, H, W = x_nchw.shape
    if H == 36 and W == 36:
        # Pack each non-overlapping 4x4 block into one 16*C-wide superpixel
        # (feature order (c, u, v)); this replaces both the NCHW->NHWC transpose
        # and any XLA im2col op on the hot path.
        xs = jnp.transpose(x_nchw.reshape(B, C, 9, 4, 9, 4),
                           (0, 2, 4, 1, 3, 5)).reshape(B, 9, 9, 16 * C)
        return fused_forward(xs, p)
    # TODO(synk): generic fallback below is only exercised for non-36x36 inputs.
    x = jnp.transpose(x_nchw, (0, 2, 3, 1))
    x = conv2d_relu(x, p["w1_cm"], p["b1"], 8, 4)
    x = conv2d_relu(x, p["w2_cm"], p["b2"], 4, 2)
    x = conv2d_relu(x, p["w3_cm"], p["b3"], 3, 1)
    x = jnp.transpose(x, (0, 3, 1, 2)).reshape(B, -1)          # PyTorch (C,H,W) flatten
    x = matmul_bias_act(x, p["fc1_wm"], p["fc1_b"], relu=True)
    return matmul_bias_act(x, p["fc2_wm"], p["fc2_b"], relu=False)


# -----------------------------------------------------------------------------
# One-time parameter preparation: fold every weight permutation into the params.
# -----------------------------------------------------------------------------
def prepare_params(params):
    w1, w2, w3 = params["w1"], params["w2"], params["w3"]
    oc1, c_in = w1.shape[0], w1.shape[1]
    oc2, ic2 = w2.shape[0], w2.shape[1]
    oc3, ic3 = w3.shape[0], w3.shape[1]

    # conv1 quadrant weights: rows = quad*(16*C) + c*16 + u*4 + v  (quad = bi*2+bj)
    w1q = jnp.transpose(w1.reshape(oc1, c_in, 2, 4, 2, 4),     # (oc,c,bi,u,bj,v)
                        (2, 4, 1, 3, 5, 0)                     # (bi,bj,c,u,v,oc)
                        ).reshape(4 * 16 * c_in, oc1)
    # conv2 im2col weights: rows = (di*4 + dj)*ic + c   (HWIO flatten)
    w2_hwio = jnp.transpose(w2, (2, 3, 1, 0)).reshape(16 * ic2, oc2)
    # conv3 per-position weights: rows = p*ic + c
    w3_pos = jnp.transpose(w3.reshape(oc3, ic3, 9), (2, 1, 0)).reshape(9 * ic3, oc3)

    def conv_w_channel_major(w):              # (OC,IC,KH,KW) -> (IC*KH*KW, OC)
        oc, ic, kh, kw = w.shape
        return jnp.transpose(w, (1, 2, 3, 0)).reshape(ic * kh * kw, oc)

    return {
        "w1q": w1q, "w2_hwio": w2_hwio, "w3_pos": w3_pos,
        "w1_cm": conv_w_channel_major(w1),
        "w2_cm": conv_w_channel_major(w2),
        "w3_cm": conv_w_channel_major(w3),
        "b1": params["b1"].reshape(1, -1),
        "b2": params["b2"].reshape(1, -1),
        "b3": params["b3"].reshape(1, -1),
        "fc1_wm": params["fc1_w"].T,           # (K, 512)
        "fc1_b": params["fc1_b"].reshape(1, -1),
        "fc2_wm": params["fc2_w"].T,           # (512, num_actions)
        "fc2_b": params["fc2_b"].reshape(1, -1),
    }


# -----------------------------------------------------------------------------
# Deterministic parameter init (PyTorch-style uniform) + pure-JAX reference.
# -----------------------------------------------------------------------------
def init_params(key, in_channels, num_actions, feature_size):
    ks = jax.random.split(key, 10)

    def uni(k, shape, fan_in):
        bound = 1.0 / math.sqrt(fan_in)
        return jax.random.uniform(k, shape, jnp.float32, -bound, bound)

    return {
        "w1": uni(ks[0], (32, in_channels, 8, 8), in_channels * 8 * 8),
        "b1": uni(ks[1], (32,), in_channels * 8 * 8),
        "w2": uni(ks[2], (64, 32, 4, 4), 32 * 4 * 4),
        "b2": uni(ks[3], (64,), 32 * 4 * 4),
        "w3": uni(ks[4], (64, 64, 3, 3), 64 * 3 * 3),
        "b3": uni(ks[5], (64,), 64 * 3 * 3),
        "fc1_w": uni(ks[6], (512, feature_size), feature_size),  # PyTorch (out, in)
        "fc1_b": uni(ks[7], (512,), feature_size),
        "fc2_w": uni(ks[8], (num_actions, 512), 512),
        "fc2_b": uni(ks[9], (num_actions,), 512),
    }


def reference_forward(params, x_nchw):
    dn = ("NCHW", "OIHW", "NCHW")
    hp = jax.lax.Precision.HIGHEST
    y = jax.lax.conv_general_dilated(x_nchw, params["w1"], (4, 4), "VALID",
                                     dimension_numbers=dn, precision=hp)
    y = jnp.maximum(y + params["b1"][None, :, None, None], 0.0)
    y = jax.lax.conv_general_dilated(y, params["w2"], (2, 2), "VALID",
                                     dimension_numbers=dn, precision=hp)
    y = jnp.maximum(y + params["b2"][None, :, None, None], 0.0)
    y = jax.lax.conv_general_dilated(y, params["w3"], (1, 1), "VALID",
                                     dimension_numbers=dn, precision=hp)
    y = jnp.maximum(y + params["b3"][None, :, None, None], 0.0)
    y = y.reshape(y.shape[0], -1)
    y = jnp.maximum(jnp.dot(y, params["fc1_w"].T, precision=hp) + params["fc1_b"], 0.0)
    return jnp.dot(y, params["fc2_w"].T, precision=hp) + params["fc2_b"]


if __name__ == "__main__":
    # Small DQN-like config: obs (4, 36, 36), 6 actions, batch 2.
    # conv1: (36-8)//4+1 = 8 ; conv2: (8-4)//2+1 = 3 ; conv3: (3-3)//1+1 = 1
    batch, in_ch, H, W, num_actions = 2, 4, 36, 36, 6
    feature_size = 64 * 1 * 1

    key = jax.random.PRNGKey(0)
    k_params, k_x = jax.random.split(key)
    params = init_params(k_params, in_ch, num_actions, feature_size)
    prepared = prepare_params(params)
    x = jax.random.normal(k_x, (batch, in_ch, H, W), jnp.float32)  # NCHW input

    q_values = jax.jit(qlearner_forward)(prepared, x)
    jax.block_until_ready(q_values)
    assert q_values.shape == (batch, num_actions)

    # Tolerance note: the in-kernel dots use the default MXU f32 path while the
    # reference uses Precision.HIGHEST; 5e-2 comfortably covers that gap at
    # these O(1) activation scales across the 5 contractions.
    q_ref = reference_forward(params, x)
    assert jnp.allclose(q_values, q_ref, rtol=5e-2, atol=5e-2), "mismatch vs reference"
    print("KERNEL_OK")
</pallas_src>

<mosaic_0001>
module attributes {stable_mosaic.version = 11 : i64} {
  func.func @_fused_forward_kernel(%arg0: memref<2x9x9x64xf32, #tpu.memory_space<vmem>>, %arg1: memref<256x32xf32, #tpu.memory_space<vmem>>, %arg2: memref<1x32xf32, #tpu.memory_space<vmem>>, %arg3: memref<512x64xf32, #tpu.memory_space<vmem>>, %arg4: memref<1x64xf32, #tpu.memory_space<vmem>>, %arg5: memref<576x64xf32, #tpu.memory_space<vmem>>, %arg6: memref<1x64xf32, #tpu.memory_space<vmem>>, %arg7: memref<64x512xf32, #tpu.memory_space<vmem>>, %arg8: memref<1x512xf32, #tpu.memory_space<vmem>>, %arg9: memref<512x6xf32, #tpu.memory_space<vmem>>, %arg10: memref<1x6xf32, #tpu.memory_space<vmem>>, %arg11: memref<2x6xf32, #tpu.memory_space<vmem>>, %arg12: memref<128x32xf32, #tpu.memory_space<vmem>>, %arg13: memref<18x512xf32, #tpu.memory_space<vmem>>, %arg14: memref<18x64xf32, #tpu.memory_space<vmem>>) attributes {dimension_semantics = [], scalar_prefetch = 0 : i64, scratch_operands = 3 : i64, tpu.core_type = #tpu.core_type<tc>} {
    %c0 = arith.constant 0 : index
    %c0_0 = arith.constant 0 : index
    %c0_1 = arith.constant 0 : index
    %c0_2 = arith.constant 0 : index
    %0 = vector.load %arg0[%c0, %c0_0, %c0_1, %c0_2] : memref<2x9x9x64xf32, #tpu.memory_space<vmem>>, vector<2x8x8x64xf32>
    %1 = vector.shape_cast %0 : vector<2x8x8x64xf32> to vector<128x64xf32>
    %c0_3 = arith.constant 0 : index
    %c0_4 = arith.constant 0 : index
    %2 = vector.load %arg1[%c0_3, %c0_4] : memref<256x32xf32, #tpu.memory_space<vmem>>, vector<64x32xf32>
    %cst = arith.constant dense<0.000000e+00> : vector<128x32xf32>
    %3 = tpu.matmul %1, %2, %cst {dimension_numbers = #tpu.dot_dimension_numbers<[1], [0], [0], [1], [0, 0, 1, 1], [], []>} : vector<128x64xf32>, vector<64x32xf32>, vector<128x32xf32> -> vector<128x32xf32>
    %c0_5 = arith.constant 0 : index
    %c0_6 = arith.constant 0 : index
    %c1 = arith.constant 1 : index
    %c0_7 = arith.constant 0 : index
    %4 = vector.load %arg0[%c0_5, %c0_6, %c1, %c0_7] : memref<2x9x9x64xf32, #tpu.memory_space<vmem>>, vector<2x8x8x64xf32>
    %5 = vector.shape_cast %4 : vector<2x8x8x64xf32> to vector<128x64xf32>
    %c64 = arith.constant 64 : index
    %c0_8 = arith.constant 0 : index
    %6 = vector.load %arg1[%c64, %c0_8] : memref<256x32xf32, #tpu.memory_space<vmem>>, vector<64x32xf32>
    %cst_9 = arith.constant dense<0.000000e+00> : vector<128x32xf32>
    %7 = tpu.matmul %5, %6, %cst_9 {dimension_numbers = #tpu.dot_dimension_numbers<[1], [0], [0], [1], [0, 0, 1, 1], [], []>} : vector<128x64xf32>, vector<64x32xf32>, vector<128x32xf32> -> vector<128x32xf32>
    %8 = arith.addf %3, %7 : vector<128x32xf32>
    %c0_10 = arith.constant 0 : index
    %c1_11 = arith.constant 1 : index
    %c0_12 = arith.constant 0 : index
    %c0_13 = arith.constant 0 : index
    %9 = vector.load %arg0[%c0_10, %c1_11, %c0_12, %c0_13] : memref<2x9x9x64xf32, #tpu.memory_space<vmem>>, vector<2x8x8x64xf32>
    %10 = vector.shape_cast %9 : vector<2x8x8x64xf32> to vector<128x64xf32>
    %c128 = arith.constant 128 : index
    %c0_14 = arith.constant 0 : index
    %11 = vector.load %arg1[%c128, %c0_14] : memref<256x32xf32, #tpu.memory_space<vmem>>, vector<64x32xf32>
    %cst_15 = arith.constant dense<0.000000e+00> : vector<128x32xf32>
    %12 = tpu.matmul %10, %11, %cst_15 {dimension_numbers = #tpu.dot_dimension_numbers<[1], [0], [0], [1], [0, 0, 1, 1], [], []>} : vector<128x64xf32>, vector<64x32xf32>, vector<128x32xf32> -> vector<128x32xf32>
    %13 = arith.addf %8, %12 : vector<128x32xf32>
    %c0_16 = arith.constant 0 : index
    %c1_17 = arith.constant 1 : index
    %c1_18 = arith.constant 1 : index
    %c0_19 = arith.constant 0 : index
    %14 = vector.load %arg0[%c0_16, %c1_17, %c1_18, %c0_19] : memref<2x9x9x64xf32, #tpu.memory_space<vmem>>, vector<2x8x8x64xf32>
    %15 = vector.shape_cast %14 : vector<2x8x8x64xf32> to vector<128x64xf32>
    %c192 = arith.constant 192 : index
    %c0_20 = arith.constant 0 : index
    %16 = vector.load %arg1[%c192, %c0_20] : memref<256x32xf32, #tpu.memory_space<vmem>>, vector<64x32xf32>
    %cst_21 = arith.constant dense<0.000000e+00> : vector<128x32xf32>
    %17 = tpu.matmul %15, %16, %cst_21 {dimension_numbers = #tpu.dot_dimension_numbers<[1], [0], [0], [1], [0, 0, 1, 1], [], []>} : vector<128x64xf32>, vector<64x32xf32>, vector<128x32xf32> -> vector<128x32xf32>
    %18 = arith.addf %13, %17 : vector<128x32xf32>
    %c0_22 = arith.constant 0 : index
    %c0_23 = arith.constant 0 : index
    %19 = vector.load %arg2[%c0_22, %c0_23] : memref<1x32xf32, #tpu.memory_space<vmem>>, vector<1x32xf32>
    %20 = vector.broadcast %19 : vector<1x32xf32> to vector<128x32xf32>
    %21 = arith.addf %18, %20 : vector<128x32xf32>
    %cst_24 = arith.constant 0.000000e+00 : f32
    %22 = vector.broadcast %cst_24 : f32 to vector<128x32xf32>
    %23 = arith.maximumf %21, %22 : vector<128x32xf32>
    %c0_25 = arith.constant 0 : index
    %c0_26 = arith.constant 0 : index
    %24 = vector.load %arg12[%c0_25, %c0_26] : memref<128x32xf32, #tpu.memory_space<vmem>>, vector<128x32xf32>
    tpu.vector_store %arg12[%c0_25, %c0_26], %23 {strides = array<i32>} : memref<128x32xf32, #tpu.memory_space<vmem>>, vector<128x32xf32>,
    %c0_27 = arith.constant 0 : index
    %c0_28 = arith.constant 0 : index
    %25 = tpu.strided_load %arg12[%c0_27, %c0_28] {strides = array<i32: 2, 1>} : memref<128x32xf32, #tpu.memory_space<vmem>>, vector<3x32xf32>
    %c0_29 = arith.constant 0 : index
    %c0_30 = arith.constant 0 : index
    %26 = vector.load %arg13[%c0_29, %c0_30] : memref<18x512xf32, #tpu.memory_space<vmem>>, vector<3x32xf32>
    tpu.vector_store %arg13[%c0_29, %c0_30], %25 {strides = array<i32>} : memref<18x512xf32, #tpu.memory_space<vmem>>, vector<3x32xf32>,
    %c16 = arith.constant 16 : index
    %c0_31 = arith.constant 0 : index
    %27 = tpu.strided_load %arg12[%c16, %c0_31] {strides = array<i32: 2, 1>} : memref<128x32xf32, #tpu.memory_space<vmem>>, vector<3x32xf32>
    %c3 = arith.constant 3 : index
    %c0_32 = arith.constant 0 : index
    %28 = vector.load %arg13[%c3, %c0_32] : memref<18x512xf32, #tpu.memory_space<vmem>>, vector<3x32xf32>
    tpu.vector_store %arg13[%c3, %c0_32], %27 {strides = array<i32>} : memref<18x512xf32, #tpu.memory_space<vmem>>, vector<3x32xf32>,
    %c32 = arith.constant 32 : index
    %c0_33 = arith.constant 0 : index
    %29 = tpu.strided_load %arg12[%c32, %c0_33] {strides = array<i32: 2, 1>} : memref<128x32xf32, #tpu.memory_space<vmem>>, vector<3x32xf32>
    %c6 = arith.constant 6 : index
    %c0_34 = arith.constant 0 : index
    %30 = vector.load %arg13[%c6, %c0_34] : memref<18x512xf32, #tpu.memory_space<vmem>>, vector<3x32xf32>
    tpu.vector_store %arg13[%c6, %c0_34], %29 {strides = array<i32>} : memref<18x512xf32, #tpu.memory_space<vmem>>, vector<3x32xf32>,
    %c64_35 = arith.constant 64 : index
    %c0_36 = arith.constant 0 : index
    %31 = tpu.strided_load %arg12[%c64_35, %c0_36] {strides = array<i32: 2, 1>} : memref<128x32xf32, #tpu.memory_space<vmem>>, vector<3x32xf32>
    %c9 = arith.constant 9 : index
    %c0_37 = arith.constant 0 : index
    %32 = vector.load %arg13[%c9, %c0_37] : memref<18x512xf32, #tpu.memory_space<vmem>>, vector<3x32xf32>
    tpu.vector_store %arg13[%c9, %c0_37], %31 {strides = array<i32>} : memref<18x512xf32, #tpu.memory_space<vmem>>, vector<3x32xf32>,
    %c80 = arith.constant 80 : index
    %c0_38 = arith.constant 0 : index
    %33 = tpu.strided_load %arg12[%c80, %c0_38] {strides = array<i32: 2, 1>} : memref<128x32xf32, #tpu.memory_space<vmem>>, vector<3x32xf32>
    %c12 = arith.constant 12 : index
    %c0_39 = arith.constant 0 : index
    %34 = vector.load %arg13[%c12, %c0_39] : memref<18x512xf32, #tpu.memory_space<vmem>>, vector<3x32xf32>
    tpu.vector_store %arg13[%c12, %c0_39], %33 {strides = array<i32>} : memref<18x512xf32, #tpu.memory_space<vmem>>, vector<3x32xf32>,
    %c96 = arith.constant 96 : index
    %c0_40 = arith.constant 0 : index
    %35 = tpu.strided_load %arg12[%c96, %c0_40] {strides = array<i32: 2, 1>} : memref<128x32xf32, #tpu.memory_space<vmem>>, vector<3x32xf32>
    %c15 = arith.constant 15 : index
    %c0_41 = arith.constant 0 : index
    %36 = vector.load %arg13[%c15, %c0_41] : memref<18x512xf32, #tpu.memory_space<vmem>>, vector<3x32xf32>
    tpu.vector_store %arg13[%c15, %c0_41], %35 {strides = array<i32>} : memref<18x512xf32, #tpu.memory_space<vmem>>, vector<3x32xf32>,
    %c1_42 = arith.constant 1 : index
    %c0_43 = arith.constant 0 : index
    %37 = tpu.strided_load %arg12[%c1_42, %c0_43] {strides = array<i32: 2, 1>} : memref<128x32xf32, #tpu.memory_space<vmem>>, vector<3x32xf32>
    %c0_44 = arith.constant 0 : index
    %c32_45 = arith.constant 32 : index
    %38 = vector.load %arg13[%c0_44, %c32_45] : memref<18x512xf32, #tpu.memory_space<vmem>>, vector<3x32xf32>
    tpu.vector_store %arg13[%c0_44, %c32_45], %37 {strides = array<i32>} : memref<18x512xf32, #tpu.memory_space<vmem>>, vector<3x32xf32>,
    %c17 = arith.constant 17 : index
    %c0_46 = arith.constant 0 : index
    %39 = tpu.strided_load %arg12[%c17, %c0_46] {strides = array<i32: 2, 1>} : memref<128x32xf32, #tpu.memory_space<vmem>>, vector<3x32xf32>
    %c3_47 = arith.constant 3 : index
    %c32_48 = arith.constant 32 : index
    %40 = vector.load %arg13[%c3_47, %c32_48] : memref<18x512xf32, #tpu.memory_space<vmem>>, vector<3x32xf32>
    tpu.vector_store %arg13[%c3_47, %c32_48], %39 {strides = array<i32>} : memref<18x512xf32, #tpu.memory_space<vmem>>, vector<3x32xf32>,
    %c33 = arith.constant 33 : index
    %c0_49 = arith.constant 0 : index
    %41 = tpu.strided_load %arg12[%c33, %c0_49] {strides = array<i32: 2, 1>} : memref<128x32xf32, #tpu.memory_space<vmem>>, vector<3x32xf32>
    %c6_50 = arith.constant 6 : index
    %c32_51 = arith.constant 32 : index
    %42 = vector.load %arg13[%c6_50, %c32_51] : memref<18x512xf32, #tpu.memory_space<vmem>>, vector<3x32xf32>
    tpu.vector_store %arg13[%c6_50, %c32_51], %41 {strides = array<i32>} : memref<18x512xf32, #tpu.memory_space<vmem>>, vector<3x32xf32>,
    %c65 = arith.constant 65 : index
    %c0_52 = arith.constant 0 : index
    %43 = tpu.strided_load %arg12[%c65, %c0_52] {strides = array<i32: 2, 1>} : memref<128x32xf32, #tpu.memory_space<vmem>>, vector<3x32xf32>
    %c9_53 = arith.constant 9 : index
    %c32_54 = arith.constant 32 : index
    %44 = vector.load %arg13[%c9_53, %c32_54] : memref<18x512xf32, #tpu.memory_space<vmem>>, vector<3x32xf32>
    tpu.vector_store %arg13[%c9_53, %c32_54], %43 {strides = array<i32>} : memref<18x512xf32, #tpu.memory_space<vmem>>, vector<3x32xf32>,
    %c81 = arith.constant 81 : index
    %c0_55 = arith.constant 0 : index
    %45 = tpu.strided_load %arg12[%c81, %c0_55] {strides = array<i32: 2, 1>} : memref<128x32xf32, #tpu.memory_space<vmem>>, vector<3x32xf32>
    %c12_56 = arith.constant 12 : index
    %c32_57 = arith.constant 32 : index
    %46 = vector.load %arg13[%c12_56, %c32_57] : memref<18x512xf32, #tpu.memory_space<vmem>>, vector<3x32xf32>
    tpu.vector_store %arg13[%c12_56, %c32_57], %45 {strides = array<i32>} : memref<18x512xf32, #tpu.memory_space<vmem>>, vector<3x32xf32>,
    %c97 = arith.constant 97 : index
    %c0_58 = arith.constant 0 : index
    %47 = tpu.strided_load %arg12[%c97, %c0_58] {strides = array<i32: 2, 1>} : memref<128x32xf32, #tpu.memory_space<vmem>>, vector<3x32xf32>
    %c15_59 = arith.constant 15 : index
    %c32_60 = arith.constant 32 : index
    %48 = vector.load %arg13[%c15_59, %c32_60] : memref<18x512xf32, #tpu.memory_space<vmem>>, vector<3x32xf32>
    tpu.vector_store %arg13[%c15_59, %c32_60], %47 {strides = array<i32>} : memref<18x512xf32, #tpu.memory_space<vmem>>, vector<3x32xf32>,
    %c2 = arith.constant 2 : index
    %c0_61 = arith.constant 0 : index
    %49 = tpu.strided_load %arg12[%c2, %c0_61] {strides = array<i32: 2, 1>} : memref<128x32xf32, #tpu.memory_space<vmem>>, vector<3x32xf32>
    %c0_62 = arith.constant 0 : index
    %c64_63 = arith.constant 64 : index
    %50 = vector.load %arg13[%c0_62, %c64_63] : memref<18x512xf32, #tpu.memory_space<vmem>>, vector<3x32xf32>
    tpu.vector_store %arg13[%c0_62, %c64_63], %49 {strides = array<i32>} : memref<18x512xf32, #tpu.memory_space<vmem>>, vector<3x32xf32>,
    %c18 = arith.constant 18 : index
    %c0_64 = arith.constant 0 : index
    %51 = tpu.strided_load %arg12[%c18, %c0_64] {strides = array<i32: 2, 1>} : memref<128x32xf32, #tpu.memory_space<vmem>>, vector<3x32xf32>
    %c3_65 = arith.constant 3 : index
    %c64_66 = arith.constant 64 : index
    %52 = vector.load %arg13[%c3_65, %c64_66] : memref<18x512xf32, #tpu.memory_space<vmem>>, vector<3x32xf32>
    tpu.vector_store %arg13[%c3_65, %c64_66], %51 {strides = array<i32>} : memref<18x512xf32, #tpu.memory_space<vmem>>, vector<3x32xf32>,
    %c34 = arith.constant 34 : index
    %c0_67 = arith.constant 0 : index
    %53 = tpu.strided_load %arg12[%c34, %c0_67] {strides = array<i32: 2, 1>} : memref<128x32xf32, #tpu.memory_space<vmem>>, vector<3x32xf32>
    %c6_68 = arith.constant 6 : index
    %c64_69 = arith.constant 64 : index
    %54 = vector.load %arg13[%c6_68, %c64_69] : memref<18x512xf32, #tpu.memory_space<vmem>>, vector<3x32xf32>
    tpu.vector_store %arg13[%c6_68, %c64_69], %53 {strides = array<i32>} : memref<18x512xf32, #tpu.memory_space<vmem>>, vector<3x32xf32>,
    %c66 = arith.constant 66 : index
    %c0_70 = arith.constant 0 : index
    %55 = tpu.strided_load %arg12[%c66, %c0_70] {strides = array<i32: 2, 1>} : memref<128x32xf32, #tpu.memory_space<vmem>>, vector<3x32xf32>
    %c9_71 = arith.constant 9 : index
    %c64_72 = arith.constant 64 : index
    %56 = vector.load %arg13[%c9_71, %c64_72] : memref<18x512xf32, #tpu.memory_space<vmem>>, vector<3x32xf32>
    tpu.vector_store %arg13[%c9_71, %c64_72], %55 {strides = array<i32>} : memref<18x512xf32, #tpu.memory_space<vmem>>, vector<3x32xf32>,
    %c82 = arith.constant 82 : index
    %c0_73 = arith.constant 0 : index
    %57 = tpu.strided_load %arg12[%c82, %c0_73] {strides = array<i32: 2, 1>} : memref<128x32xf32, #tpu.memory_space<vmem>>, vector<3x32xf32>
    %c12_74 = arith.constant 12 : index
    %c64_75 = arith.constant 64 : index
    %58 = vector.load %arg13[%c12_74, %c64_75] : memref<18x512xf32, #tpu.memory_space<vmem>>, vector<3x32xf32>
    tpu.vector_store %arg13[%c12_74, %c64_75], %57 {strides = array<i32>} : memref<18x512xf32, #tpu.memory_space<vmem>>, vector<3x32xf32>,
    %c98 = arith.constant 98 : index
    %c0_76 = arith.constant 0 : index
    %59 = tpu.strided_load %arg12[%c98, %c0_76] {strides = array<i32: 2, 1>} : memref<128x32xf32, #tpu.memory_space<vmem>>, vector<3x32xf32>
    %c15_77 = arith.constant 15 : index
    %c64_78 = arith.constant 64 : index
    %60 = vector.load %arg13[%c15_77, %c64_78] : memref<18x512xf32, #tpu.memory_space<vmem>>, vector<3x32xf32>
    tpu.vector_store %arg13[%c15_77, %c64_78], %59 {strides = array<i32>} : memref<18x512xf32, #tpu.memory_space<vmem>>, vector<3x32xf32>,
    %c3_79 = arith.constant 3 : index
    %c0_80 = arith.constant 0 : index
    %61 = tpu.strided_load %arg12[%c3_79, %c0_80] {strides = array<i32: 2, 1>} : memref<128x32xf32, #tpu.memory_space<vmem>>, vector<3x32xf32>
    %c0_81 = arith.constant 0 : index
    %c96_82 = arith.constant 96 : index
    %62 = vector.load %arg13[%c0_81, %c96_82] : memref<18x512xf32, #tpu.memory_space<vmem>>, vector<3x32xf32>
    tpu.vector_store %arg13[%c0_81, %c96_82], %61 {strides = array<i32>} : memref<18x512xf32, #tpu.memory_space<vmem>>, vector<3x32xf32>,
    %c19 = arith.constant 19 : index
    %c0_83 = arith.constant 0 : index
    %63 = tpu.strided_load %arg12[%c19, %c0_83] {strides = array<i32: 2, 1>} : memref<128x32xf32, #tpu.memory_space<vmem>>, vector<3x32xf32>
    %c3_84 = arith.constant 3 : index
    %c96_85 = arith.constant 96 : index
    %64 = vector.load %arg13[%c3_84, %c96_85] : memref<18x512xf32, #tpu.memory_space<vmem>>, vector<3x32xf32>
    tpu.vector_store %arg13[%c3_84, %c96_85], %63 {strides = array<i32>} : memref<18x512xf32, #tpu.memory_space<vmem>>, vector<3x32xf32>,
    %c35 = arith.constant 35 : index
    %c0_86 = arith.constant 0 : index
    %65 = tpu.strided_load %arg12[%c35, %c0_86] {strides = array<i32: 2, 1>} : memref<128x32xf32, #tpu.memory_space<vmem>>, vector<3x32xf32>
    %c6_87 = arith.constant 6 : index
    %c96_88 = arith.constant 96 : index
    %66 = vector.load %arg13[%c6_87, %c96_88] : memref<18x512xf32, #tpu.memory_space<vmem>>, vector<3x32xf32>
    tpu.vector_store %arg13[%c6_87, %c96_88], %65 {strides = array<i32>} : memref<18x512xf32, #tpu.memory_space<vmem>>, vector<3x32xf32>,
    %c67 = arith.constant 67 : index
    %c0_89 = arith.constant 0 : index
    %67 = tpu.strided_load %arg12[%c67, %c0_89] {strides = array<i32: 2, 1>} : memref<128x32xf32, #tpu.memory_space<vmem>>, vector<3x32xf32>
    %c9_90 = arith.constant 9 : index
    %c96_91 = arith.constant 96 : index
    %68 = vector.load %arg13[%c9_90, %c96_91] : memref<18x512xf32, #tpu.memory_space<vmem>>, vector<3x32xf32>
    tpu.vector_store %arg13[%c9_90, %c96_91], %67 {strides = array<i32>} : memref<18x512xf32, #tpu.memory_space<vmem>>, vector<3x32xf32>,
    %c83 = arith.constant 83 : index
    %c0_92 = arith.constant 0 : index
    %69 = tpu.strided_load %arg12[%c83, %c0_92] {strides = array<i32: 2, 1>} : memref<128x32xf32, #tpu.memory_space<vmem>>, vector<3x32xf32>
    %c12_93 = arith.constant 12 : index
    %c96_94 = arith.constant 96 : index
    %70 = vector.load %arg13[%c12_93, %c96_94] : memref<18x512xf32, #tpu.memory_space<vmem>>, vector<3x32xf32>
    tpu.vector_store %arg13[%c12_93, %c96_94], %69 {strides = array<i32>} : memref<18x512xf32, #tpu.memory_space<vmem>>, vector<3x32xf32>,
    %c99 = arith.constant 99 : index
    %c0_95 = arith.constant 0 : index
    %71 = tpu.strided_load %arg12[%c99, %c0_95] {strides = array<i32: 2, 1>} : memref<128x32xf32, #tpu.memory_space<vmem>>, vector<3x32xf32>
    %c15_96 = arith.constant 15 : index
    %c96_97 = arith.constant 96 : index
    %72 = vector.load %arg13[%c15_96, %c96_97] : memref<18x512xf32, #tpu.memory_space<vmem>>, vector<3x32xf32>
    tpu.vector_store %arg13[%c15_96, %c96_97], %71 {strides = array<i32>} : memref<18x512xf32, #tpu.memory_space<vmem>>, vector<3x32xf32>,
    %c8 = arith.constant 8 : index
    %c0_98 = arith.constant 0 : index
    %73 = tpu.strided_load %arg12[%c8, %c0_98] {strides = array<i32: 2, 1>} : memref<128x32xf32, #tpu.memory_space<vmem>>, vector<3x32xf32>
    %c0_99 = arith.constant 0 : index
    %c128_100 = arith.constant 128 : index
    %74 = vector.load %arg13[%c0_99, %c128_100] : memref<18x512xf32, #tpu.memory_space<vmem>>, vector<3x32xf32>
    tpu.vector_store %arg13[%c0_99, %c128_100], %73 {strides = array<i32>} : memref<18x512xf32, #tpu.memory_space<vmem>>, vector<3x32xf32>,
    %c24 = arith.constant 24 : index
    %c0_101 = arith.constant 0 : index
    %75 = tpu.strided_load %arg12[%c24, %c0_101] {strides = array<i32: 2, 1>} : memref<128x32xf32, #tpu.memory_space<vmem>>, vector<3x32xf32>
    %c3_102 = arith.constant 3 : index
    %c128_103 = arith.constant 128 : index
    %76 = vector.load %arg13[%c3_102, %c128_103] : memref<18x512xf32, #tpu.memory_space<vmem>>, vector<3x32xf32>
    tpu.vector_store %arg13[%c3_102, %c128_103], %75 {strides = array<i32>} : memref<18x512xf32, #tpu.memory_space<vmem>>, vector<3x32xf32>,
    %c40 = arith.constant 40 : index
    %c0_104 = arith.constant 0 : index
    %77 = tpu.strided_load %arg12[%c40, %c0_104] {strides = array<i32: 2, 1>} : memref<128x32xf32, #tpu.memory_space<vmem>>, vector<3x32xf32>
    %c6_105 = arith.constant 6 : index
    %c128_106 = arith.constant 128 : index
    %78 = vector.load %arg13[%c6_105, %c128_106] : memref<18x512xf32, #tpu.memory_space<vmem>>, vector<3x32xf32>
    tpu.vector_store %arg13[%c6_105, %c128_106], %77 {strides = array<i32>} : memref<18x512xf32, #tpu.memory_space<vmem>>, vector<3x32xf32>,
    %c72 = arith.constant 72 : index
    %c0_107 = arith.constant 0 : index
    %79 = tpu.strided_load %arg12[%c72, %c0_107] {strides = array<i32: 2, 1>} : memref<128x32xf32, #tpu.memory_space<vmem>>, vector<3x32xf32>
    %c9_108 = arith.constant 9 : index
    %c128_109 = arith.constant 128 : index
    %80 = vector.load %arg13[%c9_108, %c128_109] : memref<18x512xf32, #tpu.memory_space<vmem>>, vector<3x32xf32>
    tpu.vector_store %arg13[%c9_108, %c128_109], %79 {strides = array<i32>} : memref<18x512xf32, #tpu.memory_space<vmem>>, vector<3x32xf32>,
    %c88 = arith.constant 88 : index
    %c0_110 = arith.constant 0 : index
    %81 = tpu.strided_load %arg12[%c88, %c0_110] {strides = array<i32: 2, 1>} : memref<128x32xf32, #tpu.memory_space<vmem>>, vector<3x32xf32>
    %c12_111 = arith.constant 12 : index
    %c128_112 = arith.constant 128 : index
    %82 = vector.load %arg13[%c12_111, %c128_112] : memref<18x512xf32, #tpu.memory_space<vmem>>, vector<3x32xf32>
    tpu.vector_store %arg13[%c12_111, %c128_112], %81 {strides = array<i32>} : memref<18x512xf32, #tpu.memory_space<vmem>>, vector<3x32xf32>,
    %c104 = arith.constant 104 : index
    %c0_113 = arith.constant 0 : index
    %83 = tpu.strided_load %arg12[%c104, %c0_113] {strides = array<i32: 2, 1>} : memref<128x32xf32, #tpu.memory_space<vmem>>, vector<3x32xf32>
    %c15_114 = arith.constant 15 : index
    %c128_115 = arith.constant 128 : index
    %84 = vector.load %arg13[%c15_114, %c128_115] : memref<18x512xf32, #tpu.memory_space<vmem>>, vector<3x32xf32>
    tpu.vector_store %arg13[%c15_114, %c128_115], %83 {strides = array<i32>} : memref<18x512xf32, #tpu.memory_space<vmem>>, vector<3x32xf32>,
    %c9_116 = arith.constant 9 : index
    %c0_117 = arith.constant 0 : index
    %85 = tpu.strided_load %arg12[%c9_116, %c0_117] {strides = array<i32: 2, 1>} : memref<128x32xf32, #tpu.memory_space<vmem>>, vector<3x32xf32>
    %c0_118 = arith.constant 0 : index
    %c160 = arith.constant 160 : index
    %86 = vector.load %arg13[%c0_118, %c160] : memref<18x512xf32, #tpu.memory_space<vmem>>, vector<3x32xf32>
    tpu.vector_store %arg13[%c0_118, %c160], %85 {strides = array<i32>} : memref<18x512xf32, #tpu.memory_space<vmem>>, vector<3x32xf32>,
    %c25 = arith.constant 25 : index
    %c0_119 = arith.constant 0 : index
    %87 = tpu.strided_load %arg12[%c25, %c0_119] {strides = array<i32: 2, 1>} : memref<128x32xf32, #tpu.memory_space<vmem>>, vector<3x32xf32>
    %c3_120 = arith.constant 3 : index
    %c160_121 = arith.constant 160 : index
    %88 = vector.load %arg13[%c3_120, %c160_121] : memref<18x512xf32, #tpu.memory_space<vmem>>, vector<3x32xf32>
    tpu.vector_store %arg13[%c3_120, %c160_121], %87 {strides = array<i32>} : memref<18x512xf32, #tpu.memory_space<vmem>>, vector<3x32xf32>,
    %c41 = arith.constant 41 : index
    %c0_122 = arith.constant 0 : index
    %89 = tpu.strided_load %arg12[%c41, %c0_122] {strides = array<i32: 2, 1>} : memref<128x32xf32, #tpu.memory_space<vmem>>, vector<3x32xf32>
    %c6_123 = arith.constant 6 : index
    %c160_124 = arith.constant 160 : index
    %90 = vector.load %arg13[%c6_123, %c160_124] : memref<18x512xf32, #tpu.memory_space<vmem>>, vector<3x32xf32>
    tpu.vector_store %arg13[%c6_123, %c160_124], %89 {strides = array<i32>} : memref<18x512xf32, #tpu.memory_space<vmem>>, vector<3x32xf32>,
    %c73 = arith.constant 73 : index
    %c0_125 = arith.constant 0 : index
    %91 = tpu.strided_load %arg12[%c73, %c0_125] {strides = array<i32: 2, 1>} : memref<128x32xf32, #tpu.memory_space<vmem>>, vector<3x32xf32>
    %c9_126 = arith.constant 9 : index
    %c160_127 = arith.constant 160 : index
    %92 = vector.load %arg13[%c9_126, %c160_127] : memref<18x512xf32, #tpu.memory_space<vmem>>, vector<3x32xf32>
    tpu.vector_store %arg13[%c9_126, %c160_127], %91 {strides = array<i32>} : memref<18x512xf32, #tpu.memory_space<vmem>>, vector<3x32xf32>,
    %c89 = arith.constant 89 : index
    %c0_128 = arith.constant 0 : index
    %93 = tpu.strided_load %arg12[%c89, %c0_128] {strides = array<i32: 2, 1>} : memref<128x32xf32, #tpu.memory_space<vmem>>, vector<3x32xf32>
    %c12_129 = arith.constant 12 : index
    %c160_130 = arith.constant 160 : index
    %94 = vector.load %arg13[%c12_129, %c160_130] : memref<18x512xf32, #tpu.memory_space<vmem>>, vector<3x32xf32>
    tpu.vector_store %arg13[%c12_129, %c160_130], %93 {strides = array<i32>} : memref<18x512xf32, #tpu.memory_space<vmem>>, vector<3x32xf32>,
    %c105 = arith.constant 105 : index
    %c0_131 = arith.constant 0 : index
    %95 = tpu.strided_load %arg12[%c105, %c0_131] {strides = array<i32: 2, 1>} : memref<128x32xf32, #tpu.memory_space<vmem>>, vector<3x32xf32>
    %c15_132 = arith.constant 15 : index
    %c160_133 = arith.constant 160 : index
    %96 = vector.load %arg13[%c15_132, %c160_133] : memref<18x512xf32, #tpu.memory_space<vmem>>, vector<3x32xf32>
    tpu.vector_store %arg13[%c15_132, %c160_133], %95 {strides = array<i32>} : memref<18x512xf32, #tpu.memory_space<vmem>>, vector<3x32xf32>,
    %c10 = arith.constant 10 : index
    %c0_134 = arith.constant 0 : index
    %97 = tpu.strided_load %arg12[%c10, %c0_134] {strides = array<i32: 2, 1>} : memref<128x32xf32, #tpu.memory_space<vmem>>, vector<3x32xf32>
    %c0_135 = arith.constant 0 : index
    %c192_136 = arith.constant 192 : index
    %98 = vector.load %arg13[%c0_135, %c192_136] : memref<18x512xf32, #tpu.memory_space<vmem>>, vector<3x32xf32>
    tpu.vector_store %arg13[%c0_135, %c192_136], %97 {strides = array<i32>} : memref<18x512xf32, #tpu.memory_space<vmem>>, vector<3x32xf32>,
    %c26 = arith.constant 26 : index
    %c0_137 = arith.constant 0 : index
    %99 = tpu.strided_load %arg12[%c26, %c0_137] {strides = array<i32: 2, 1>} : memref<128x32xf32, #tpu.memory_space<vmem>>, vector<3x32xf32>
    %c3_138 = arith.constant 3 : index
    %c192_139 = arith.constant 192 : index
    %100 = vector.load %arg13[%c3_138, %c192_139] : memref<18x512xf32, #tpu.memory_space<vmem>>, vector<3x32xf32>
    tpu.vector_store %arg13[%c3_138, %c192_139], %99 {strides = array<i32>} : memref<18x512xf32, #tpu.memory_space<vmem>>, vector<3x32xf32>,
    %c42 = arith.constant 42 : index
    %c0_140 = arith.constant 0 : index
    %101 = tpu.strided_load %arg12[%c42, %c0_140] {strides = array<i32: 2, 1>} : memref<128x32xf32, #tpu.memory_space<vmem>>, vector<3x32xf32>
    %c6_141 = arith.constant 6 : index
    %c192_142 = arith.constant 192 : index
    %102 = vector.load %arg13[%c6_141, %c192_142] : memref<18x512xf32, #tpu.memory_space<vmem>>, vector<3x32xf32>
    tpu.vector_store %arg13[%c6_141, %c192_142], %101 {strides = array<i32>} : memref<18x512xf32, #tpu.memory_space<vmem>>, vector<3x32xf32>,
    %c74 = arith.constant 74 : index
    %c0_143 = arith.constant 0 : index
    %103 = tpu.strided_load %arg12[%c74, %c0_143] {strides = array<i32: 2, 1>} : memref<128x32xf32, #tpu.memory_space<vmem>>, vector<3x32xf32>
    %c9_144 = arith.constant 9 : index
    %c192_145 = arith.constant 192 : index
    %104 = vector.load %arg13[%c9_144, %c192_145] : memref<18x512xf32, #tpu.memory_space<vmem>>, vector<3x32xf32>
    tpu.vector_store %arg13[%c9_144, %c192_145], %103 {strides = array<i32>} : memref<18x512xf32, #tpu.memory_space<vmem>>, vector<3x32xf32>,
    %c90 = arith.constant 90 : index
    %c0_146 = arith.constant 0 : index
    %105 = tpu.strided_load %arg12[%c90, %c0_146] {strides = array<i32: 2, 1>} : memref<128x32xf32, #tpu.memory_space<vmem>>, vector<3x32xf32>
    %c12_147 = arith.constant 12 : index
    %c192_148 = arith.constant 192 : index
    %106 = vector.load %arg13[%c12_147, %c192_148] : memref<18x512xf32, #tpu.memory_space<vmem>>, vector<3x32xf32>
    tpu.vector_store %arg13[%c12_147, %c192_148], %105 {strides = array<i32>} : memref<18x512xf32, #tpu.memory_space<vmem>>, vector<3x32xf32>,
    %c106 = arith.constant 106 : index
    %c0_149 = arith.constant 0 : index
    %107 = tpu.strided_load %arg12[%c106, %c0_149] {strides = array<i32: 2, 1>} : memref<128x32xf32, #tpu.memory_space<vmem>>, vector<3x32xf32>
    %c15_150 = arith.constant 15 : index
    %c192_151 = arith.constant 192 : index
    %108 = vector.load %arg13[%c15_150, %c192_151] : memref<18x512xf32, #tpu.memory_space<vmem>>, vector<3x32xf32>
    tpu.vector_store %arg13[%c15_150, %c192_151], %107 {strides = array<i32>} : memref<18x512xf32, #tpu.memory_space<vmem>>, vector<3x32xf32>,
    %c11 = arith.constant 11 : index
    %c0_152 = arith.constant 0 : index
    %109 = tpu.strided_load %arg12[%c11, %c0_152] {strides = array<i32: 2, 1>} : memref<128x32xf32, #tpu.memory_space<vmem>>, vector<3x32xf32>
    %c0_153 = arith.constant 0 : index
    %c224 = arith.constant 224 : index
    %110 = vector.load %arg13[%c0_153, %c224] : memref<18x512xf32, #tpu.memory_space<vmem>>, vector<3x32xf32>
    tpu.vector_store %arg13[%c0_153, %c224], %109 {strides = array<i32>} : memref<18x512xf32, #tpu.memory_space<vmem>>, vector<3x32xf32>,
    %c27 = arith.constant 27 : index
    %c0_154 = arith.constant 0 : index
    %111 = tpu.strided_load %arg12[%c27, %c0_154] {strides = array<i32: 2, 1>} : memref<128x32xf32, #tpu.memory_space<vmem>>, vector<3x32xf32>
    %c3_155 = arith.constant 3 : index
    %c224_156 = arith.constant 224 : index
    %112 = vector.load %arg13[%c3_155, %c224_156] : memref<18x512xf32, #tpu.memory_space<vmem>>, vector<3x32xf32>
    tpu.vector_store %arg13[%c3_155, %c224_156], %111 {strides = array<i32>} : memref<18x512xf32, #tpu.memory_space<vmem>>, vector<3x32xf32>,
    %c43 = arith.constant 43 : index
    %c0_157 = arith.constant 0 : index
    %113 = tpu.strided_load %arg12[%c43, %c0_157] {strides = array<i32: 2, 1>} : memref<128x32xf32, #tpu.memory_space<vmem>>, vector<3x32xf32>
    %c6_158 = arith.constant 6 : index
    %c224_159 = arith.constant 224 : index
    %114 = vector.load %arg13[%c6_158, %c224_159] : memref<18x512xf32, #tpu.memory_space<vmem>>, vector<3x32xf32>
    tpu.vector_store %arg13[%c6_158, %c224_159], %113 {strides = array<i32>} : memref<18x512xf32, #tpu.memory_space<vmem>>, vector<3x32xf32>,
    %c75 = arith.constant 75 : index
    %c0_160 = arith.constant 0 : index
    %115 = tpu.strided_load %arg12[%c75, %c0_160] {strides = array<i32: 2, 1>} : memref<128x32xf32, #tpu.memory_space<vmem>>, vector<3x32xf32>
    %c9_161 = arith.constant 9 : index
    %c224_162 = arith.constant 224 : index
    %116 = vector.load %arg13[%c9_161, %c224_162] : memref<18x512xf32, #tpu.memory_space<vmem>>, vector<3x32xf32>
    tpu.vector_store %arg13[%c9_161, %c224_162], %115 {strides = array<i32>} : memref<18x512xf32, #tpu.memory_space<vmem>>, vector<3x32xf32>,
    %c91 = arith.constant 91 : index
    %c0_163 = arith.constant 0 : index
    %117 = tpu.strided_load %arg12[%c91, %c0_163] {strides = array<i32: 2, 1>} : memref<128x32xf32, #tpu.memory_space<vmem>>, vector<3x32xf32>
    %c12_164 = arith.constant 12 : index
    %c224_165 = arith.constant 224 : index
    %118 = vector.load %arg13[%c12_164, %c224_165] : memref<18x512xf32, #tpu.memory_space<vmem>>, vector<3x32xf32>
    tpu.vector_store %arg13[%c12_164, %c224_165], %117 {strides = array<i32>} : memref<18x512xf32, #tpu.memory_space<vmem>>, vector<3x32xf32>,
    %c107 = arith.constant 107 : index
    %c0_166 = arith.constant 0 : index
    %119 = tpu.strided_load %arg12[%c107, %c0_166] {strides = array<i32: 2, 1>} : memref<128x32xf32, #tpu.memory_space<vmem>>, vector<3x32xf32>
    %c15_167 = arith.constant 15 : index
    %c224_168 = arith.constant 224 : index
    %120 = vector.load %arg13[%c15_167, %c224_168] : memref<18x512xf32, #tpu.memory_space<vmem>>, vector<3x32xf32>
    tpu.vector_store %arg13[%c15_167, %c224_168], %119 {strides = array<i32>} : memref<18x512xf32, #tpu.memory_space<vmem>>, vector<3x32xf32>,
    %c16_169 = arith.constant 16 : index
    %c0_170 = arith.constant 0 : index
    %121 = tpu.strided_load %arg12[%c16_169, %c0_170] {strides = array<i32: 2, 1>} : memref<128x32xf32, #tpu.memory_space<vmem>>, vector<3x32xf32>
    %c0_171 = arith.constant 0 : index
    %c256 = arith.constant 256 : index
    %122 = vector.load %arg13[%c0_171, %c256] : memref<18x512xf32, #tpu.memory_space<vmem>>, vector<3x32xf32>
    tpu.vector_store %arg13[%c0_171, %c256], %121 {strides = array<i32>} : memref<18x512xf32, #tpu.memory_space<vmem>>, vector<3x32xf32>,
    %c32_172 = arith.constant 32 : index
    %c0_173 = arith.constant 0 : index
    %123 = tpu.strided_load %arg12[%c32_172, %c0_173] {strides = array<i32: 2, 1>} : memref<128x32xf32, #tpu.memory_space<vmem>>, vector<3x32xf32>
    %c3_174 = arith.constant 3 : index
    %c256_175 = arith.constant 256 : index
    %124 = vector.load %arg13[%c3_174, %c256_175] : memref<18x512xf32, #tpu.memory_space<vmem>>, vector<3x32xf32>
    tpu.vector_store %arg13[%c3_174, %c256_175], %123 {strides = array<i32>} : memref<18x512xf32, #tpu.memory_space<vmem>>, vector<3x32xf32>,
    %c48 = arith.constant 48 : index
    %c0_176 = arith.constant 0 : index
    %125 = tpu.strided_load %arg12[%c48, %c0_176] {strides = array<i32: 2, 1>} : memref<128x32xf32, #tpu.memory_space<vmem>>, vector<3x32xf32>
    %c6_177 = arith.constant 6 : index
    %c256_178 = arith.constant 256 : index
    %126 = vector.load %arg13[%c6_177, %c256_178] : memref<18x512xf32, #tpu.memory_space<vmem>>, vector<3x32xf32>
    tpu.vector_store %arg13[%c6_177, %c256_178], %125 {strides = array<i32>} : memref<18x512xf32, #tpu.memory_space<vmem>>, vector<3x32xf32>,
    %c80_179 = arith.constant 80 : index
    %c0_180 = arith.constant 0 : index
    %127 = tpu.strided_load %arg12[%c80_179, %c0_180] {strides = array<i32: 2, 1>} : memref<128x32xf32, #tpu.memory_space<vmem>>, vector<3x32xf32>
    %c9_181 = arith.constant 9 : index
    %c256_182 = arith.constant 256 : index
    %128 = vector.load %arg13[%c9_181, %c256_182] : memref<18x512xf32, #tpu.memory_space<vmem>>, vector<3x32xf32>
    tpu.vector_store %arg13[%c9_181, %c256_182], %127 {strides = array<i32>} : memref<18x512xf32, #tpu.memory_space<vmem>>, vector<3x32xf32>,
    %c96_183 = arith.constant 96 : index
    %c0_184 = arith.constant 0 : index
    %129 = tpu.strided_load %arg12[%c96_183, %c0_184] {strides = array<i32: 2, 1>} : memref<128x32xf32, #tpu.memory_space<vmem>>, vector<3x32xf32>
    %c12_185 = arith.constant 12 : index
    %c256_186 = arith.constant 256 : index
    %130 = vector.load %arg13[%c12_185, %c256_186] : memref<18x512xf32, #tpu.memory_space<vmem>>, vector<3x32xf32>
    tpu.vector_store %arg13[%c12_185, %c256_186], %129 {strides = array<i32>} : memref<18x512xf32, #tpu.memory_space<vmem>>, vector<3x32xf32>,
    %c112 = arith.constant 112 : index
    %c0_187 = arith.constant 0 : index
    %131 = tpu.strided_load %arg12[%c112, %c0_187] {strides = array<i32: 2, 1>} : memref<128x32xf32, #tpu.memory_space<vmem>>, vector<3x32xf32>
    %c15_188 = arith.constant 15 : index
    %c256_189 = arith.constant 256 : index
    %132 = vector.load %arg13[%c15_188, %c256_189] : memref<18x512xf32, #tpu.memory_space<vmem>>, vector<3x32xf32>
    tpu.vector_store %arg13[%c15_188, %c256_189], %131 {strides = array<i32>} : memref<18x512xf32, #tpu.memory_space<vmem>>, vector<3x32xf32>,
    %c17_190 = arith.constant 17 : index
    %c0_191 = arith.constant 0 : index
    %133 = tpu.strided_load %arg12[%c17_190, %c0_191] {strides = array<i32: 2, 1>} : memref<128x32xf32, #tpu.memory_space<vmem>>, vector<3x32xf32>
    %c0_192 = arith.constant 0 : index
    %c288 = arith.constant 288 : index
    %134 = vector.load %arg13[%c0_192, %c288] : memref<18x512xf32, #tpu.memory_space<vmem>>, vector<3x32xf32>
    tpu.vector_store %arg13[%c0_192, %c288], %133 {strides = array<i32>} : memref<18x512xf32, #tpu.memory_space<vmem>>, vector<3x32xf32>,
    %c33_193 = arith.constant 33 : index
    %c0_194 = arith.constant 0 : index
    %135 = tpu.strided_load %arg12[%c33_193, %c0_194] {strides = array<i32: 2, 1>} : memref<128x32xf32, #tpu.memory_space<vmem>>, vector<3x32xf32>
    %c3_195 = arith.constant 3 : index
    %c288_196 = arith.constant 288 : index
    %136 = vector.load %arg13[%c3_195, %c288_196] : memref<18x512xf32, #tpu.memory_space<vmem>>, vector<3x32xf32>
    tpu.vector_store %arg13[%c3_195, %c288_196], %135 {strides = array<i32>} : memref<18x512xf32, #tpu.memory_space<vmem>>, vector<3x32xf32>,
    %c49 = arith.constant 49 : index
    %c0_197 = arith.constant 0 : index
    %137 = tpu.strided_load %arg12[%c49, %c0_197] {strides = array<i32: 2, 1>} : memref<128x32xf32, #tpu.memory_space<vmem>>, vector<3x32xf32>
    %c6_198 = arith.constant 6 : index
    %c288_199 = arith.constant 288 : index
    %138 = vector.load %arg13[%c6_198, %c288_199] : memref<18x512xf32, #tpu.memory_space<vmem>>, vector<3x32xf32>
    tpu.vector_store %arg13[%c6_198, %c288_199], %137 {strides = array<i32>} : memref<18x512xf32, #tpu.memory_space<vmem>>, vector<3x32xf32>,
    %c81_200 = arith.constant 81 : index
    %c0_201 = arith.constant 0 : index
    %139 = tpu.strided_load %arg12[%c81_200, %c0_201] {strides = array<i32: 2, 1>} : memref<128x32xf32, #tpu.memory_space<vmem>>, vector<3x32xf32>
    %c9_202 = arith.constant 9 : index
    %c288_203 = arith.constant 288 : index
    %140 = vector.load %arg13[%c9_202, %c288_203] : memref<18x512xf32, #tpu.memory_space<vmem>>, vector<3x32xf32>
    tpu.vector_store %arg13[%c9_202, %c288_203], %139 {strides = array<i32>} : memref<18x512xf32, #tpu.memory_space<vmem>>, vector<3x32xf32>,
    %c97_204 = arith.constant 97 : index
    %c0_205 = arith.constant 0 : index
    %141 = tpu.strided_load %arg12[%c97_204, %c0_205] {strides = array<i32: 2, 1>} : memref<128x32xf32, #tpu.memory_space<vmem>>, vector<3x32xf32>
    %c12_206 = arith.constant 12 : index
    %c288_207 = arith.constant 288 : index
    %142 = vector.load %arg13[%c12_206, %c288_207] : memref<18x512xf32, #tpu.memory_space<vmem>>, vector<3x32xf32>
    tpu.vector_store %arg13[%c12_206, %c288_207], %141 {strides = array<i32>} : memref<18x512xf32, #tpu.memory_space<vmem>>, vector<3x32xf32>,
    %c113 = arith.constant 113 : index
    %c0_208 = arith.constant 0 : index
    %143 = tpu.strided_load %arg12[%c113, %c0_208] {strides = array<i32: 2, 1>} : memref<128x32xf32, #tpu.memory_space<vmem>>, vector<3x32xf32>
    %c15_209 = arith.constant 15 : index
    %c288_210 = arith.constant 288 : index
    %144 = vector.load %arg13[%c15_209, %c288_210] : memref<18x512xf32, #tpu.memory_space<vmem>>, vector<3x32xf32>
    tpu.vector_store %arg13[%c15_209, %c288_210], %143 {strides = array<i32>} : memref<18x512xf32, #tpu.memory_space<vmem>>, vector<3x32xf32>,
    %c18_211 = arith.constant 18 : index
    %c0_212 = arith.constant 0 : index
    %145 = tpu.strided_load %arg12[%c18_211, %c0_212] {strides = array<i32: 2, 1>} : memref<128x32xf32, #tpu.memory_space<vmem>>, vector<3x32xf32>
    %c0_213 = arith.constant 0 : index
    %c320 = arith.constant 320 : index
    %146 = vector.load %arg13[%c0_213, %c320] : memref<18x512xf32, #tpu.memory_space<vmem>>, vector<3x32xf32>
    tpu.vector_store %arg13[%c0_213, %c320], %145 {strides = array<i32>} : memref<18x512xf32, #tpu.memory_space<vmem>>, vector<3x32xf32>,
    %c34_214 = arith.constant 34 : index
    %c0_215 = arith.constant 0 : index
    %147 = tpu.strided_load %arg12[%c34_214, %c0_215] {strides = array<i32: 2, 1>} : memref<128x32xf32, #tpu.memory_space<vmem>>, vector<3x32xf32>
    %c3_216 = arith.constant 3 : index
    %c320_217 = arith.constant 320 : index
    %148 = vector.load %arg13[%c3_216, %c320_217] : memref<18x512xf32, #tpu.memory_space<vmem>>, vector<3x32xf32>
    tpu.vector_store %arg13[%c3_216, %c320_217], %147 {strides = array<i32>} : memref<18x512xf32, #tpu.memory_space<vmem>>, vector<3x32xf32>,
    %c50 = arith.constant 50 : index
    %c0_218 = arith.constant 0 : index
    %149 = tpu.strided_load %arg12[%c50, %c0_218] {strides = array<i32: 2, 1>} : memref<128x32xf32, #tpu.memory_space<vmem>>, vector<3x32xf32>
    %c6_219 = arith.constant 6 : index
    %c320_220 = arith.constant 320 : index
    %150 = vector.load %arg13[%c6_219, %c320_220] : memref<18x512xf32, #tpu.memory_space<vmem>>, vector<3x32xf32>
    tpu.vector_store %arg13[%c6_219, %c320_220], %149 {strides = array<i32>} : memref<18x512xf32, #tpu.memory_space<vmem>>, vector<3x32xf32>,
    %c82_221 = arith.constant 82 : index
    %c0_222 = arith.constant 0 : index
    %151 = tpu.strided_load %arg12[%c82_221, %c0_222] {strides = array<i32: 2, 1>} : memref<128x32xf32, #tpu.memory_space<vmem>>, vector<3x32xf32>
    %c9_223 = arith.constant 9 : index
    %c320_224 = arith.constant 320 : index
    %152 = vector.load %arg13[%c9_223, %c320_224] : memref<18x512xf32, #tpu.memory_space<vmem>>, vector<3x32xf32>
    tpu.vector_store %arg13[%c9_223, %c320_224], %151 {strides = array<i32>} : memref<18x512xf32, #tpu.memory_space<vmem>>, vector<3x32xf32>,
    %c98_225 = arith.constant 98 : index
    %c0_226 = arith.constant 0 : index
    %153 = tpu.strided_load %arg12[%c98_225, %c0_226] {strides = array<i32: 2, 1>} : memref<128x32xf32, #tpu.memory_space<vmem>>, vector<3x32xf32>
    %c12_227 = arith.constant 12 : index
    %c320_228 = arith.constant 320 : index
    %154 = vector.load %arg13[%c12_227, %c320_228] : memref<18x512xf32, #tpu.memory_space<vmem>>, vector<3x32xf32>
    tpu.vector_store %arg13[%c12_227, %c320_228], %153 {strides = array<i32>} : memref<18x512xf32, #tpu.memory_space<vmem>>, vector<3x32xf32>,
    %c114 = arith.constant 114 : index
    %c0_229 = arith.constant 0 : index
    %155 = tpu.strided_load %arg12[%c114, %c0_229] {strides = array<i32: 2, 1>} : memref<128x32xf32, #tpu.memory_space<vmem>>, vector<3x32xf32>
    %c15_230 = arith.constant 15 : index
    %c320_231 = arith.constant 320 : index
    %156 = vector.load %arg13[%c15_230, %c320_231] : memref<18x512xf32, #tpu.memory_space<vmem>>, vector<3x32xf32>
    tpu.vector_store %arg13[%c15_230, %c320_231], %155 {strides = array<i32>} : memref<18x512xf32, #tpu.memory_space<vmem>>, vector<3x32xf32>,
    %c19_232 = arith.constant 19 : index
    %c0_233 = arith.constant 0 : index
    %157 = tpu.strided_load %arg12[%c19_232, %c0_233] {strides = array<i32: 2, 1>} : memref<128x32xf32, #tpu.memory_space<vmem>>, vector<3x32xf32>
    %c0_234 = arith.constant 0 : index
    %c352 = arith.constant 352 : index
    %158 = vector.load %arg13[%c0_234, %c352] : memref<18x512xf32, #tpu.memory_space<vmem>>, vector<3x32xf32>
    tpu.vector_store %arg13[%c0_234, %c352], %157 {strides = array<i32>} : memref<18x512xf32, #tpu.memory_space<vmem>>, vector<3x32xf32>,
    %c35_235 = arith.constant 35 : index
    %c0_236 = arith.constant 0 : index
    %159 = tpu.strided_load %arg12[%c35_235, %c0_236] {strides = array<i32: 2, 1>} : memref<128x32xf32, #tpu.memory_space<vmem>>, vector<3x32xf32>
    %c3_237 = arith.constant 3 : index
    %c352_238 = arith.constant 352 : index
    %160 = vector.load %arg13[%c3_237, %c352_238] : memref<18x512xf32, #tpu.memory_space<vmem>>, vector<3x32xf32>
    tpu.vector_store %arg13[%c3_237, %c352_238], %159 {strides = array<i32>} : memref<18x512xf32, #tpu.memory_space<vmem>>, vector<3x32xf32>,
    %c51 = arith.constant 51 : index
    %c0_239 = arith.constant 0 : index
    %161 = tpu.strided_load %arg12[%c51, %c0_239] {strides = array<i32: 2, 1>} : memref<128x32xf32, #tpu.memory_space<vmem>>, vector<3x32xf32>
    %c6_240 = arith.constant 6 : index
    %c352_241 = arith.constant 352 : index
    %162 = vector.load %arg13[%c6_240, %c352_241] : memref<18x512xf32, #tpu.memory_space<vmem>>, vector<3x32xf32>
    tpu.vector_store %arg13[%c6_240, %c352_241], %161 {strides = array<i32>} : memref<18x512xf32, #tpu.memory_space<vmem>>, vector<3x32xf32>,
    %c83_242 = arith.constant 83 : index
    %c0_243 = arith.constant 0 : index
    %163 = tpu.strided_load %arg12[%c83_242, %c0_243] {strides = array<i32: 2, 1>} : memref<128x32xf32, #tpu.memory_space<vmem>>, vector<3x32xf32>
    %c9_244 = arith.constant 9 : index
    %c352_245 = arith.constant 352 : index
    %164 = vector.load %arg13[%c9_244, %c352_245] : memref<18x512xf32, #tpu.memory_space<vmem>>, vector<3x32xf32>
    tpu.vector_store %arg13[%c9_244, %c352_245], %163 {strides = array<i32>} : memref<18x512xf32, #tpu.memory_space<vmem>>, vector<3x32xf32>,
    %c99_246 = arith.constant 99 : index
    %c0_247 = arith.constant 0 : index
    %165 = tpu.strided_load %arg12[%c99_246, %c0_247] {strides = array<i32: 2, 1>} : memref<128x32xf32, #tpu.memory_space<vmem>>, vector<3x32xf32>
    %c12_248 = arith.constant 12 : index
    %c352_249 = arith.constant 352 : index
    %166 = vector.load %arg13[%c12_248, %c352_249] : memref<18x512xf32, #tpu.memory_space<vmem>>, vector<3x32xf32>
    tpu.vector_store %arg13[%c12_248, %c352_249], %165 {strides = array<i32>} : memref<18x512xf32, #tpu.memory_space<vmem>>, vector<3x32xf32>,
    %c115 = arith.constant 115 : index
    %c0_250 = arith.constant 0 : index
    %167 = tpu.strided_load %arg12[%c115, %c0_250] {strides = array<i32: 2, 1>} : memref<128x32xf32, #tpu.memory_space<vmem>>, vector<3x32xf32>
    %c15_251 = arith.constant 15 : index
    %c352_252 = arith.constant 352 : index
    %168 = vector.load %arg13[%c15_251, %c352_252] : memref<18x512xf32, #tpu.memory_space<vmem>>, vector<3x32xf32>
    tpu.vector_store %arg13[%c15_251, %c352_252], %167 {strides = array<i32>} : memref<18x512xf32, #tpu.memory_space<vmem>>, vector<3x32xf32>,
    %c24_253 = arith.constant 24 : index
    %c0_254 = arith.constant 0 : index
    %169 = tpu.strided_load %arg12[%c24_253, %c0_254] {strides = array<i32: 2, 1>} : memref<128x32xf32, #tpu.memory_space<vmem>>, vector<3x32xf32>
    %c0_255 = arith.constant 0 : index
    %c384 = arith.constant 384 : index
    %170 = vector.load %arg13[%c0_255, %c384] : memref<18x512xf32, #tpu.memory_space<vmem>>, vector<3x32xf32>
    tpu.vector_store %arg13[%c0_255, %c384], %169 {strides = array<i32>} : memref<18x512xf32, #tpu.memory_space<vmem>>, vector<3x32xf32>,
    %c40_256 = arith.constant 40 : index
    %c0_257 = arith.constant 0 : index
    %171 = tpu.strided_load %arg12[%c40_256, %c0_257] {strides = array<i32: 2, 1>} : memref<128x32xf32, #tpu.memory_space<vmem>>, vector<3x32xf32>
    %c3_258 = arith.constant 3 : index
    %c384_259 = arith.constant 384 : index
    %172 = vector.load %arg13[%c3_258, %c384_259] : memref<18x512xf32, #tpu.memory_space<vmem>>, vector<3x32xf32>
    tpu.vector_store %arg13[%c3_258, %c384_259], %171 {strides = array<i32>} : memref<18x512xf32, #tpu.memory_space<vmem>>, vector<3x32xf32>,
    %c56 = arith.constant 56 : index
    %c0_260 = arith.constant 0 : index
    %173 = tpu.strided_load %arg12[%c56, %c0_260] {strides = array<i32: 2, 1>} : memref<128x32xf32, #tpu.memory_space<vmem>>, vector<3x32xf32>
    %c6_261 = arith.constant 6 : index
    %c384_262 = arith.constant 384 : index
    %174 = vector.load %arg13[%c6_261, %c384_262] : memref<18x512xf32, #tpu.memory_space<vmem>>, vector<3x32xf32>
    tpu.vector_store %arg13[%c6_261, %c384_262], %173 {strides = array<i32>} : memref<18x512xf32, #tpu.memory_space<vmem>>, vector<3x32xf32>,
    %c88_263 = arith.constant 88 : index
    %c0_264 = arith.constant 0 : index
    %175 = tpu.strided_load %arg12[%c88_263, %c0_264] {strides = array<i32: 2, 1>} : memref<128x32xf32, #tpu.memory_space<vmem>>, vector<3x32xf32>
    %c9_265 = arith.constant 9 : index
    %c384_266 = arith.constant 384 : index
    %176 = vector.load %arg13[%c9_265, %c384_266] : memref<18x512xf32, #tpu.memory_space<vmem>>, vector<3x32xf32>
    tpu.vector_store %arg13[%c9_265, %c384_266], %175 {strides = array<i32>} : memref<18x512xf32, #tpu.memory_space<vmem>>, vector<3x32xf32>,
    %c104_267 = arith.constant 104 : index
    %c0_268 = arith.constant 0 : index
    %177 = tpu.strided_load %arg12[%c104_267, %c0_268] {strides = array<i32: 2, 1>} : memref<128x32xf32, #tpu.memory_space<vmem>>, vector<3x32xf32>
    %c12_269 = arith.constant 12 : index
    %c384_270 = arith.constant 384 : index
    %178 = vector.load %arg13[%c12_269, %c384_270] : memref<18x512xf32, #tpu.memory_space<vmem>>, vector<3x32xf32>
    tpu.vector_store %arg13[%c12_269, %c384_270], %177 {strides = array<i32>} : memref<18x512xf32, #tpu.memory_space<vmem>>, vector<3x32xf32>,
    %c120 = arith.constant 120 : index
    %c0_271 = arith.constant 0 : index
    %179 = tpu.strided_load %arg12[%c120, %c0_271] {strides = array<i32: 2, 1>} : memref<128x32xf32, #tpu.memory_space<vmem>>, vector<3x32xf32>
    %c15_272 = arith.constant 15 : index
    %c384_273 = arith.constant 384 : index
    %180 = vector.load %arg13[%c15_272, %c384_273] : memref<18x512xf32, #tpu.memory_space<vmem>>, vector<3x32xf32>
    tpu.vector_store %arg13[%c15_272, %c384_273], %179 {strides = array<i32>} : memref<18x512xf32, #tpu.memory_space<vmem>>, vector<3x32xf32>,
    %c25_274 = arith.constant 25 : index
    %c0_275 = arith.constant 0 : index
    %181 = tpu.strided_load %arg12[%c25_274, %c0_275] {strides = array<i32: 2, 1>} : memref<128x32xf32, #tpu.memory_space<vmem>>, vector<3x32xf32>
    %c0_276 = arith.constant 0 : index
    %c416 = arith.constant 416 : index
    %182 = vector.load %arg13[%c0_276, %c416] : memref<18x512xf32, #tpu.memory_space<vmem>>, vector<3x32xf32>
    tpu.vector_store %arg13[%c0_276, %c416], %181 {strides = array<i32>} : memref<18x512xf32, #tpu.memory_space<vmem>>, vector<3x32xf32>,
    %c41_277 = arith.constant 41 : index
    %c0_278 = arith.constant 0 : index
    %183 = tpu.strided_load %arg12[%c41_277, %c0_278] {strides = array<i32: 2, 1>} : memref<128x32xf32, #tpu.memory_space<vmem>>, vector<3x32xf32>
    %c3_279 = arith.constant 3 : index
    %c416_280 = arith.constant 416 : index
    %184 = vector.load %arg13[%c3_279, %c416_280] : memref<18x512xf32, #tpu.memory_space<vmem>>, vector<3x32xf32>
    tpu.vector_store %arg13[%c3_279, %c416_280], %183 {strides = array<i32>} : memref<18x512xf32, #tpu.memory_space<vmem>>, vector<3x32xf32>,
    %c57 = arith.constant 57 : index
    %c0_281 = arith.constant 0 : index
    %185 = tpu.strided_load %arg12[%c57, %c0_281] {strides = array<i32: 2, 1>} : memref<128x32xf32, #tpu.memory_space<vmem>>, vector<3x32xf32>
    %c6_282 = arith.constant 6 : index
    %c416_283 = arith.constant 416 : index
    %186 = vector.load %arg13[%c6_282, %c416_283] : memref<18x512xf32, #tpu.memory_space<vmem>>, vector<3x32xf32>
    tpu.vector_store %arg13[%c6_282, %c416_283], %185 {strides = array<i32>} : memref<18x512xf32, #tpu.memory_space<vmem>>, vector<3x32xf32>,
    %c89_284 = arith.constant 89 : index
    %c0_285 = arith.constant 0 : index
    %187 = tpu.strided_load %arg12[%c89_284, %c0_285] {strides = array<i32: 2, 1>} : memref<128x32xf32, #tpu.memory_space<vmem>>, vector<3x32xf32>
    %c9_286 = arith.constant 9 : index
    %c416_287 = arith.constant 416 : index
    %188 = vector.load %arg13[%c9_286, %c416_287] : memref<18x512xf32, #tpu.memory_space<vmem>>, vector<3x32xf32>
    tpu.vector_store %arg13[%c9_286, %c416_287], %187 {strides = array<i32>} : memref<18x512xf32, #tpu.memory_space<vmem>>, vector<3x32xf32>,
    %c105_288 = arith.constant 105 : index
    %c0_289 = arith.constant 0 : index
    %189 = tpu.strided_load %arg12[%c105_288, %c0_289] {strides = array<i32: 2, 1>} : memref<128x32xf32, #tpu.memory_space<vmem>>, vector<3x32xf32>
    %c12_290 = arith.constant 12 : index
    %c416_291 = arith.constant 416 : index
    %190 = vector.load %arg13[%c12_290, %c416_291] : memref<18x512xf32, #tpu.memory_space<vmem>>, vector<3x32xf32>
    tpu.vector_store %arg13[%c12_290, %c416_291], %189 {strides = array<i32>} : memref<18x512xf32, #tpu.memory_space<vmem>>, vector<3x32xf32>,
    %c121 = arith.constant 121 : index
    %c0_292 = arith.constant 0 : index
    %191 = tpu.strided_load %arg12[%c121, %c0_292] {strides = array<i32: 2, 1>} : memref<128x32xf32, #tpu.memory_space<vmem>>, vector<3x32xf32>
    %c15_293 = arith.constant 15 : index
    %c416_294 = arith.constant 416 : index
    %192 = vector.load %arg13[%c15_293, %c416_294] : memref<18x512xf32, #tpu.memory_space<vmem>>, vector<3x32xf32>
    tpu.vector_store %arg13[%c15_293, %c416_294], %191 {strides = array<i32>} : memref<18x512xf32, #tpu.memory_space<vmem>>, vector<3x32xf32>,
    %c26_295 = arith.constant 26 : index
    %c0_296 = arith.constant 0 : index
    %193 = tpu.strided_load %arg12[%c26_295, %c0_296] {strides = array<i32: 2, 1>} : memref<128x32xf32, #tpu.memory_space<vmem>>, vector<3x32xf32>
    %c0_297 = arith.constant 0 : index
    %c448 = arith.constant 448 : index
    %194 = vector.load %arg13[%c0_297, %c448] : memref<18x512xf32, #tpu.memory_space<vmem>>, vector<3x32xf32>
    tpu.vector_store %arg13[%c0_297, %c448], %193 {strides = array<i32>} : memref<18x512xf32, #tpu.memory_space<vmem>>, vector<3x32xf32>,
    %c42_298 = arith.constant 42 : index
    %c0_299 = arith.constant 0 : index
    %195 = tpu.strided_load %arg12[%c42_298, %c0_299] {strides = array<i32: 2, 1>} : memref<128x32xf32, #tpu.memory_space<vmem>>, vector<3x32xf32>
    %c3_300 = arith.constant 3 : index
    %c448_301 = arith.constant 448 : index
    %196 = vector.load %arg13[%c3_300, %c448_301] : memref<18x512xf32, #tpu.memory_space<vmem>>, vector<3x32xf32>
    tpu.vector_store %arg13[%c3_300, %c448_301], %195 {strides = array<i32>} : memref<18x512xf32, #tpu.memory_space<vmem>>, vector<3x32xf32>,
    %c58 = arith.constant 58 : index
    %c0_302 = arith.constant 0 : index
    %197 = tpu.strided_load %arg12[%c58, %c0_302] {strides = array<i32: 2, 1>} : memref<128x32xf32, #tpu.memory_space<vmem>>, vector<3x32xf32>
    %c6_303 = arith.constant 6 : index
    %c448_304 = arith.constant 448 : index
    %198 = vector.load %arg13[%c6_303, %c448_304] : memref<18x512xf32, #tpu.memory_space<vmem>>, vector<3x32xf32>
    tpu.vector_store %arg13[%c6_303, %c448_304], %197 {strides = array<i32>} : memref<18x512xf32, #tpu.memory_space<vmem>>, vector<3x32xf32>,
    %c90_305 = arith.constant 90 : index
    %c0_306 = arith.constant 0 : index
    %199 = tpu.strided_load %arg12[%c90_305, %c0_306] {strides = array<i32: 2, 1>} : memref<128x32xf32, #tpu.memory_space<vmem>>, vector<3x32xf32>
    %c9_307 = arith.constant 9 : index
    %c448_308 = arith.constant 448 : index
    %200 = vector.load %arg13[%c9_307, %c448_308] : memref<18x512xf32, #tpu.memory_space<vmem>>, vector<3x32xf32>
    tpu.vector_store %arg13[%c9_307, %c448_308], %199 {strides = array<i32>} : memref<18x512xf32, #tpu.memory_space<vmem>>, vector<3x32xf32>,
    %c106_309 = arith.constant 106 : index
    %c0_310 = arith.constant 0 : index
    %201 = tpu.strided_load %arg12[%c106_309, %c0_310] {strides = array<i32: 2, 1>} : memref<128x32xf32, #tpu.memory_space<vmem>>, vector<3x32xf32>
    %c12_311 = arith.constant 12 : index
    %c448_312 = arith.constant 448 : index
    %202 = vector.load %arg13[%c12_311, %c448_312] : memref<18x512xf32, #tpu.memory_space<vmem>>, vector<3x32xf32>
    tpu.vector_store %arg13[%c12_311, %c448_312], %201 {strides = array<i32>} : memref<18x512xf32, #tpu.memory_space<vmem>>, vector<3x32xf32>,
    %c122 = arith.constant 122 : index
    %c0_313 = arith.constant 0 : index
    %203 = tpu.strided_load %arg12[%c122, %c0_313] {strides = array<i32: 2, 1>} : memref<128x32xf32, #tpu.memory_space<vmem>>, vector<3x32xf32>
    %c15_314 = arith.constant 15 : index
    %c448_315 = arith.constant 448 : index
    %204 = vector.load %arg13[%c15_314, %c448_315] : memref<18x512xf32, #tpu.memory_space<vmem>>, vector<3x32xf32>
    tpu.vector_store %arg13[%c15_314, %c448_315], %203 {strides = array<i32>} : memref<18x512xf32, #tpu.memory_space<vmem>>, vector<3x32xf32>,
    %c27_316 = arith.constant 27 : index
    %c0_317 = arith.constant 0 : index
    %205 = tpu.strided_load %arg12[%c27_316, %c0_317] {strides = array<i32: 2, 1>} : memref<128x32xf32, #tpu.memory_space<vmem>>, vector<3x32xf32>
    %c0_318 = arith.constant 0 : index
    %c480 = arith.constant 480 : index
    %206 = vector.load %arg13[%c0_318, %c480] : memref<18x512xf32, #tpu.memory_space<vmem>>, vector<3x32xf32>
    tpu.vector_store %arg13[%c0_318, %c480], %205 {strides = array<i32>} : memref<18x512xf32, #tpu.memory_space<vmem>>, vector<3x32xf32>,
    %c43_319 = arith.constant 43 : index
    %c0_320 = arith.constant 0 : index
    %207 = tpu.strided_load %arg12[%c43_319, %c0_320] {strides = array<i32: 2, 1>} : memref<128x32xf32, #tpu.memory_space<vmem>>, vector<3x32xf32>
    %c3_321 = arith.constant 3 : index
    %c480_322 = arith.constant 480 : index
    %208 = vector.load %arg13[%c3_321, %c480_322] : memref<18x512xf32, #tpu.memory_space<vmem>>, vector<3x32xf32>
    tpu.vector_store %arg13[%c3_321, %c480_322], %207 {strides = array<i32>} : memref<18x512xf32, #tpu.memory_space<vmem>>, vector<3x32xf32>,
    %c59 = arith.constant 59 : index
    %c0_323 = arith.constant 0 : index
    %209 = tpu.strided_load %arg12[%c59, %c0_323] {strides = array<i32: 2, 1>} : memref<128x32xf32, #tpu.memory_space<vmem>>, vector<3x32xf32>
    %c6_324 = arith.constant 6 : index
    %c480_325 = arith.constant 480 : index
    %210 = vector.load %arg13[%c6_324, %c480_325] : memref<18x512xf32, #tpu.memory_space<vmem>>, vector<3x32xf32>
    tpu.vector_store %arg13[%c6_324, %c480_325], %209 {strides = array<i32>} : memref<18x512xf32, #tpu.memory_space<vmem>>, vector<3x32xf32>,
    %c91_326 = arith.constant 91 : index
    %c0_327 = arith.constant 0 : index
    %211 = tpu.strided_load %arg12[%c91_326, %c0_327] {strides = array<i32: 2, 1>} : memref<128x32xf32, #tpu.memory_space<vmem>>, vector<3x32xf32>
    %c9_328 = arith.constant 9 : index
    %c480_329 = arith.constant 480 : index
    %212 = vector.load %arg13[%c9_328, %c480_329] : memref<18x512xf32, #tpu.memory_space<vmem>>, vector<3x32xf32>
    tpu.vector_store %arg13[%c9_328, %c480_329], %211 {strides = array<i32>} : memref<18x512xf32, #tpu.memory_space<vmem>>, vector<3x32xf32>,
    %c107_330 = arith.constant 107 : index
    %c0_331 = arith.constant 0 : index
    %213 = tpu.strided_load %arg12[%c107_330, %c0_331] {strides = array<i32: 2, 1>} : memref<128x32xf32, #tpu.memory_space<vmem>>, vector<3x32xf32>
    %c12_332 = arith.constant 12 : index
    %c480_333 = arith.constant 480 : index
    %214 = vector.load %arg13[%c12_332, %c480_333] : memref<18x512xf32, #tpu.memory_space<vmem>>, vector<3x32xf32>
    tpu.vector_store %arg13[%c12_332, %c480_333], %213 {strides = array<i32>} : memref<18x512xf32, #tpu.memory_space<vmem>>, vector<3x32xf32>,
    %c123 = arith.constant 123 : index
    %c0_334 = arith.constant 0 : index
    %215 = tpu.strided_load %arg12[%c123, %c0_334] {strides = array<i32: 2, 1>} : memref<128x32xf32, #tpu.memory_space<vmem>>, vector<3x32xf32>
    %c15_335 = arith.constant 15 : index
    %c480_336 = arith.constant 480 : index
    %216 = vector.load %arg13[%c15_335, %c480_336] : memref<18x512xf32, #tpu.memory_space<vmem>>, vector<3x32xf32>
    tpu.vector_store %arg13[%c15_335, %c480_336], %215 {strides = array<i32>} : memref<18x512xf32, #tpu.memory_space<vmem>>, vector<3x32xf32>,
    %c0_337 = arith.constant 0 : index
    %c0_338 = arith.constant 0 : index
    %217 = vector.load %arg13[%c0_337, %c0_338] : memref<18x512xf32, #tpu.memory_space<vmem>>, vector<18x512xf32>
    %c0_339 = arith.constant 0 : index
    %c0_340 = arith.constant 0 : index
    %218 = vector.load %arg3[%c0_339, %c0_340] : memref<512x64xf32, #tpu.memory_space<vmem>>, vector<512x64xf32>
    %cst_341 = arith.constant dense<0.000000e+00> : vector<18x64xf32>
    %219 = tpu.matmul %217, %218, %cst_341 {dimension_numbers = #tpu.dot_dimension_numbers<[1], [0], [0], [1], [0, 0, 1, 1], [], []>} : vector<18x512xf32>, vector<512x64xf32>, vector<18x64xf32> -> vector<18x64xf32>
    %c0_342 = arith.constant 0 : index
    %c0_343 = arith.constant 0 : index
    %220 = vector.load %arg4[%c0_342, %c0_343] : memref<1x64xf32, #tpu.memory_space<vmem>>, vector<1x64xf32>
    %221 = vector.broadcast %220 : vector<1x64xf32> to vector<18x64xf32>
    %222 = arith.addf %219, %221 : vector<18x64xf32>
    %cst_344 = arith.constant 0.000000e+00 : f32
    %223 = vector.broadcast %cst_344 : f32 to vector<18x64xf32>
    %224 = arith.maximumf %222, %223 : vector<18x64xf32>
    %c0_345 = arith.constant 0 : index
    %c0_346 = arith.constant 0 : index
    %225 = vector.load %arg14[%c0_345, %c0_346] : memref<18x64xf32, #tpu.memory_space<vmem>>, vector<18x64xf32>
    tpu.vector_store %arg14[%c0_345, %c0_346], %224 {strides = array<i32>} : memref<18x64xf32, #tpu.memory_space<vmem>>, vector<18x64xf32>,
    %c0_347 = arith.constant 0 : index
    %c0_348 = arith.constant 0 : index
    %226 = tpu.strided_load %arg14[%c0_347, %c0_348] {strides = array<i32: 9, 1>} : memref<18x64xf32, #tpu.memory_space<vmem>>, vector<2x64xf32>
    %c0_349 = arith.constant 0 : index
    %c0_350 = arith.constant 0 : index
    %227 = vector.load %arg5[%c0_349, %c0_350] : memref<576x64xf32, #tpu.memory_space<vmem>>, vector<64x64xf32>
    %cst_351 = arith.constant dense<0.000000e+00> : vector<2x64xf32>
    %228 = tpu.matmul %226, %227, %cst_351 {dimension_numbers = #tpu.dot_dimension_numbers<[1], [0], [0], [1], [0, 0, 1, 1], [], []>} : vector<2x64xf32>, vector<64x64xf32>, vector<2x64xf32> -> vector<2x64xf32>
    %c1_352 = arith.constant 1 : index
    %c0_353 = arith.constant 0 : index
    %229 = tpu.strided_load %arg14[%c1_352, %c0_353] {strides = array<i32: 9, 1>} : memref<18x64xf32, #tpu.memory_space<vmem>>, vector<2x64xf32>
    %c64_354 = arith.constant 64 : index
    %c0_355 = arith.constant 0 : index
    %230 = vector.load %arg5[%c64_354, %c0_355] : memref<576x64xf32, #tpu.memory_space<vmem>>, vector<64x64xf32>
    %cst_356 = arith.constant dense<0.000000e+00> : vector<2x64xf32>
    %231 = tpu.matmul %229, %230, %cst_356 {dimension_numbers = #tpu.dot_dimension_numbers<[1], [0], [0], [1], [0, 0, 1, 1], [], []>} : vector<2x64xf32>, vector<64x64xf32>, vector<2x64xf32> -> vector<2x64xf32>
    %232 = arith.addf %228, %231 : vector<2x64xf32>
    %c2_357 = arith.constant 2 : index
    %c0_358 = arith.constant 0 : index
    %233 = tpu.strided_load %arg14[%c2_357, %c0_358] {strides = array<i32: 9, 1>} : memref<18x64xf32, #tpu.memory_space<vmem>>, vector<2x64xf32>
    %c128_359 = arith.constant 128 : index
    %c0_360 = arith.constant 0 : index
    %234 = vector.load %arg5[%c128_359, %c0_360] : memref<576x64xf32, #tpu.memory_space<vmem>>, vector<64x64xf32>
    %cst_361 = arith.constant dense<0.000000e+00> : vector<2x64xf32>
    %235 = tpu.matmul %233, %234, %cst_361 {dimension_numbers = #tpu.dot_dimension_numbers<[1], [0], [0], [1], [0, 0, 1, 1], [], []>} : vector<2x64xf32>, vector<64x64xf32>, vector<2x64xf32> -> vector<2x64xf32>
    %236 = arith.addf %232, %235 : vector<2x64xf32>
    %c3_362 = arith.constant 3 : index
    %c0_363 = arith.constant 0 : index
    %237 = tpu.strided_load %arg14[%c3_362, %c0_363] {strides = array<i32: 9, 1>} : memref<18x64xf32, #tpu.memory_space<vmem>>, vector<2x64xf32>
    %c192_364 = arith.constant 192 : index
    %c0_365 = arith.constant 0 : index
    %238 = vector.load %arg5[%c192_364, %c0_365] : memref<576x64xf32, #tpu.memory_space<vmem>>, vector<64x64xf32>
    %cst_366 = arith.constant dense<0.000000e+00> : vector<2x64xf32>
    %239 = tpu.matmul %237, %238, %cst_366 {dimension_numbers = #tpu.dot_dimension_numbers<[1], [0], [0], [1], [0, 0, 1, 1], [], []>} : vector<2x64xf32>, vector<64x64xf32>, vector<2x64xf32> -> vector<2x64xf32>
    %240 = arith.addf %236, %239 : vector<2x64xf32>
    %c4 = arith.constant 4 : index
    %c0_367 = arith.constant 0 : index
    %241 = tpu.strided_load %arg14[%c4, %c0_367] {strides = array<i32: 9, 1>} : memref<18x64xf32, #tpu.memory_space<vmem>>, vector<2x64xf32>
    %c256_368 = arith.constant 256 : index
    %c0_369 = arith.constant 0 : index
    %242 = vector.load %arg5[%c256_368, %c0_369] : memref<576x64xf32, #tpu.memory_space<vmem>>, vector<64x64xf32>
    %cst_370 = arith.constant dense<0.000000e+00> : vector<2x64xf32>
    %243 = tpu.matmul %241, %242, %cst_370 {dimension_numbers = #tpu.dot_dimension_numbers<[1], [0], [0], [1], [0, 0, 1, 1], [], []>} : vector<2x64xf32>, vector<64x64xf32>, vector<2x64xf32> -> vector<2x64xf32>
    %244 = arith.addf %240, %243 : vector<2x64xf32>
    %c5 = arith.constant 5 : index
    %c0_371 = arith.constant 0 : index
    %245 = tpu.strided_load %arg14[%c5, %c0_371] {strides = array<i32: 9, 1>} : memref<18x64xf32, #tpu.memory_space<vmem>>, vector<2x64xf32>
    %c320_372 = arith.constant 320 : index
    %c0_373 = arith.constant 0 : index
    %246 = vector.load %arg5[%c320_372, %c0_373] : memref<576x64xf32, #tpu.memory_space<vmem>>, vector<64x64xf32>
    %cst_374 = arith.constant dense<0.000000e+00> : vector<2x64xf32>
    %247 = tpu.matmul %245, %246, %cst_374 {dimension_numbers = #tpu.dot_dimension_numbers<[1], [0], [0], [1], [0, 0, 1, 1], [], []>} : vector<2x64xf32>, vector<64x64xf32>, vector<2x64xf32> -> vector<2x64xf32>
    %248 = arith.addf %244, %247 : vector<2x64xf32>
    %c6_375 = arith.constant 6 : index
    %c0_376 = arith.constant 0 : index
    %249 = tpu.strided_load %arg14[%c6_375, %c0_376] {strides = array<i32: 9, 1>} : memref<18x64xf32, #tpu.memory_space<vmem>>, vector<2x64xf32>
    %c384_377 = arith.constant 384 : index
    %c0_378 = arith.constant 0 : index
    %250 = vector.load %arg5[%c384_377, %c0_378] : memref<576x64xf32, #tpu.memory_space<vmem>>, vector<64x64xf32>
    %cst_379 = arith.constant dense<0.000000e+00> : vector<2x64xf32>
    %251 = tpu.matmul %249, %250, %cst_379 {dimension_numbers = #tpu.dot_dimension_numbers<[1], [0], [0], [1], [0, 0, 1, 1], [], []>} : vector<2x64xf32>, vector<64x64xf32>, vector<2x64xf32> -> vector<2x64xf32>
    %252 = arith.addf %248, %251 : vector<2x64xf32>
    %c7 = arith.constant 7 : index
    %c0_380 = arith.constant 0 : index
    %253 = tpu.strided_load %arg14[%c7, %c0_380] {strides = array<i32: 9, 1>} : memref<18x64xf32, #tpu.memory_space<vmem>>, vector<2x64xf32>
    %c448_381 = arith.constant 448 : index
    %c0_382 = arith.constant 0 : index
    %254 = vector.load %arg5[%c448_381, %c0_382] : memref<576x64xf32, #tpu.memory_space<vmem>>, vector<64x64xf32>
    %cst_383 = arith.constant dense<0.000000e+00> : vector<2x64xf32>
    %255 = tpu.matmul %253, %254, %cst_383 {dimension_numbers = #tpu.dot_dimension_numbers<[1], [0], [0], [1], [0, 0, 1, 1], [], []>} : vector<2x64xf32>, vector<64x64xf32>, vector<2x64xf32> -> vector<2x64xf32>
    %256 = arith.addf %252, %255 : vector<2x64xf32>
    %c8_384 = arith.constant 8 : index
    %c0_385 = arith.constant 0 : index
    %257 = tpu.strided_load %arg14[%c8_384, %c0_385] {strides = array<i32: 9, 1>} : memref<18x64xf32, #tpu.memory_space<vmem>>, vector<2x64xf32>
    %c512 = arith.constant 512 : index
    %c0_386 = arith.constant 0 : index
    %258 = vector.load %arg5[%c512, %c0_386] : memref<576x64xf32, #tpu.memory_space<vmem>>, vector<64x64xf32>
    %cst_387 = arith.constant dense<0.000000e+00> : vector<2x64xf32>
    %259 = tpu.matmul %257, %258, %cst_387 {dimension_numbers = #tpu.dot_dimension_numbers<[1], [0], [0], [1], [0, 0, 1, 1], [], []>} : vector<2x64xf32>, vector<64x64xf32>, vector<2x64xf32> -> vector<2x64xf32>
    %260 = arith.addf %256, %259 : vector<2x64xf32>
    %c0_388 = arith.constant 0 : index
    %c0_389 = arith.constant 0 : index
    %261 = vector.load %arg6[%c0_388, %c0_389] : memref<1x64xf32, #tpu.memory_space<vmem>>, vector<1x64xf32>
    %262 = vector.broadcast %261 : vector<1x64xf32> to vector<2x64xf32>
    %263 = arith.addf %260, %262 : vector<2x64xf32>
    %cst_390 = arith.constant 0.000000e+00 : f32
    %264 = vector.broadcast %cst_390 : f32 to vector<2x64xf32>
    %265 = arith.maximumf %263, %264 : vector<2x64xf32>
    %c0_391 = arith.constant 0 : index
    %c0_392 = arith.constant 0 : index
    %266 = vector.load %arg7[%c0_391, %c0_392] : memref<64x512xf32, #tpu.memory_space<vmem>>, vector<64x512xf32>
    %cst_393 = arith.constant dense<0.000000e+00> : vector<2x512xf32>
    %267 = tpu.matmul %265, %266, %cst_393 {dimension_numbers = #tpu.dot_dimension_numbers<[1], [0], [0], [1], [0, 0, 1, 1], [], []>} : vector<2x64xf32>, vector<64x512xf32>, vector<2x512xf32> -> vector<2x512xf32>
    %c0_394 = arith.constant 0 : index
    %c0_395 = arith.constant 0 : index
    %268 = vector.load %arg8[%c0_394, %c0_395] : memref<1x512xf32, #tpu.memory_space<vmem>>, vector<1x512xf32>
    %269 = vector.broadcast %268 : vector<1x512xf32> to vector<2x512xf32>
    %270 = arith.addf %267, %269 : vector<2x512xf32>
    %cst_396 = arith.constant 0.000000e+00 : f32
    %271 = vector.broadcast %cst_396 : f32 to vector<2x512xf32>
    %272 = arith.maximumf %270, %271 : vector<2x512xf32>
    %c0_397 = arith.constant 0 : index
    %c0_398 = arith.constant 0 : index
    %273 = vector.load %arg9[%c0_397, %c0_398] : memref<512x6xf32, #tpu.memory_space<vmem>>, vector<512x6xf32>
    %cst_399 = arith.constant dense<0.000000e+00> : vector<2x6xf32>
    %274 = tpu.matmul %272, %273, %cst_399 {dimension_numbers = #tpu.dot_dimension_numbers<[1], [0], [0], [1], [0, 0, 1, 1], [], []>} : vector<2x512xf32>, vector<512x6xf32>, vector<2x6xf32> -> vector<2x6xf32>
    %c0_400 = arith.constant 0 : index
    %c0_401 = arith.constant 0 : index
    %275 = vector.load %arg10[%c0_400, %c0_401] : memref<1x6xf32, #tpu.memory_space<vmem>>, vector<1x6xf32>
    %276 = vector.broadcast %275 : vector<1x6xf32> to vector<2x6xf32>
    %277 = arith.addf %274, %276 : vector<2x6xf32>
    %c0_402 = arith.constant 0 : index
    %c0_403 = arith.constant 0 : index
    %278 = vector.load %arg11[%c0_402, %c0_403] : memref<2x6xf32, #tpu.memory_space<vmem>>, vector<2x6xf32>
    tpu.vector_store %arg11[%c0_402, %c0_403], %277 {strides = array<i32>} : memref<2x6xf32, #tpu.memory_space<vmem>>, vector<2x6xf32>,
    return
  }
}

</mosaic_0001>

<bundles_post_ra>
// kernel: qlearner_forward.1
= control target key start
LH: loop header
LB: loop body
LE: loop exit
PB: predicated region body
PF: predicated region fallthrough
CT: control target
= control target key end

     0   :  { %vm87_vm0 = vcmask 523264   ;;  %s5765_s0 = inlined_call_operand.vmem [shape: f32[2,9,9,64], index: 0, kind: input, shape index: {}]   ;;  %s5766_s1 = inlined_call_operand.vmem [shape: f32[256,32], index: 1, kind: input, shape index: {}]   ;;  %s5767_s2 = inlined_call_operand.vmem [shape: f32[1,32], index: 2, kind: input, shape index: {}]   ;;  %s5768_s3 = inlined_call_operand.vmem [shape: f32[512,64], index: 3, kind: input, shape index: {}]   ;;  %s5769_s4 = inlined_call_operand.vmem [shape: f32[1,64], index: 4, kind: input, shape index: {}]   ;;  %s5770_s5 = inlined_call_operand.vmem [shape: f32[576,64], index: 5, kind: input, shape index: {}]   ;;  %s5771_s6 = inlined_call_operand.vmem [shape: f32[1,64], index: 6, kind: input, shape index: {}]   ;;  %s5772_s7 = inlined_call_operand.vmem [shape: f32[64,512], index: 7, kind: input, shape index: {}]   ;;  %s5773_s8 = inlined_call_operand.vmem [shape: f32[1,512], index: 8, kind: input, shape index: {}]   ;;  %s5774_s9 = inlined_call_operand.vmem [shape: f32[512,6], index: 9, kind: input, shape index: {}]   ;;  %s5775_s10 = inlined_call_operand.vmem [shape: f32[1,6], index: 10, kind: input, shape index: {}]   ;;  %s5776_s11 = inlined_call_operand.hbm [shape: f32[2,6], index: 11, kind: output, shape index: {}]  }
   0x1   :  { %v79_v0 = vld [vmem:[%s5766_s1 + $0x40] sm:$0xff]  ;;  %v80_v1 = vld [vmem:[%s5766_s1 + $0x48] sm:$0xff]  ;;  %v81_v2 = vld [vmem:[%s5766_s1 + $0x50] sm:$0xff] }
   0x2   :  { %v3937_v3 = vpack.c.bf16 %v80_v1, %v79_v0  ;;  %v82_v4 = vld [vmem:[%s5766_s1 + $0x58] sm:$0xff]  ;;  %v83_v6 = vld [vmem:[%s5766_s1 + $0x60] sm:$0xff]  ;;  %v84_v7 = vld [vmem:[%s5766_s1 + $0x68] sm:$0xff] }
   0x3   :  { %v3941_v5 = vpack.c.bf16 %v82_v4, %v81_v2  ;;  %v63_v8 = vld [vmem:[%s5765_s0 + $0x1] sm:$0xff]  ;;  %v3945_v9 = vpack.c.bf16 %v84_v7, %v83_v6  ;;  %v85_v10 = vld [vmem:[%s5766_s1 + $0x70] sm:$0xff]  ;;  %v86_v11 = vld [vmem:[%s5766_s1 + $0x78] sm:$0xff] }
   0x4   :  { %3938 = vmatprep.subr.bf16.mxu0 %v3937_v3  ;;  %3622 = vmatprep.mubr.msk.f32.mxu0 %vm87_vm0, %v63_v8  ;;  %v3949_v12 = vpack.c.bf16 %v86_v11, %v85_v10  ;;  %v55_v13 = vld [vmem:[%s5766_s1] sm:$0xff]  ;;  %v56_v14 = vld [vmem:[%s5766_s1 + $0x8] sm:$0xff]  ;;  %v57_v16 = vld [vmem:[%s5766_s1 + $0x10] sm:$0xff] }
   0x5   :  { %3940 = vmatpush3.bf16.msra.mxu0 %v3937_v3  ;;  %v3953_v15 = vpack.c.bf16 %v56_v14, %v55_v13  ;;  %v58_v17 = vld [vmem:[%s5766_s1 + $0x18] sm:$0xff]  ;;  %v4463_v19 = vld [vmem:[%s5765_s0 + $0x21] sm:$0xff]  ;;  %v61_v26 = vld [vmem:[%s5766_s1 + $0x30] sm:$0xff] }
   0x6   :  { %3942 = vmatprep.subr.bf16.mxu0 %v3941_v5  ;;  %v4458_v18 = vld [vmem:[%s5765_s0 + $0x11] sm:$0xff]  ;;  %v3957_v20 = vpack.c.bf16 %v58_v17, %v57_v16  ;;  %v59_v21 = vld [vmem:[%s5766_s1 + $0x20] sm:$0xff]  ;;  %v60_v22 = vld [vmem:[%s5766_s1 + $0x28] sm:$0xff] }
   0x7   :  { %v4478_v23 = vld [vmem:[%s5765_s0 + $0x31] sm:$0xff]  ;;  %v4483_v24 = vld [vmem:[%s5765_s0 + $0x41] sm:$0xff]  ;;  %v3961_v25 = vpack.c.bf16 %v60_v22, %v59_v21 }
   0x8   :  { %v62_v27 = vld [vmem:[%s5766_s1 + $0x38] sm:$0xff] }
   0x9   :  { %3944 = vmatpush3.bf16.msra.mxu0 %v3941_v5 }
   0xa   :  { %3946 = vmatprep.subr.bf16.mxu0 %v3945_v9 }
   0xd   :  { %3948 = vmatpush3.bf16.msra.mxu0 %v3945_v9 }
   0xe   :  { %3950 = vmatprep.subr.bf16.mxu0 %v3949_v12 }
  0x11   :  { %3952 = vmatpush3.bf16.msra.mxu0 %v3949_v12 }
  0x12   :  { %3954 = vmatprep.subr.bf16.mxu0 %v3953_v15 }
  0x14   :  { %3623 = vmatmul.mubr.msk.f32.vlgmr.msra.gmra.mrb[0].mxu0 %vm87_vm0, %v4458_v18 }
  0x15   :  { %3956 = vmatpush3.bf16.msra.mxu0 %v3953_v15  ;;  %3625 = vmatprep.mubr.msk.f32.mxu0 %vm87_vm0, %v4463_v19 }
  0x16   :  { %3958 = vmatprep.subr.bf16.mxu0 %v3957_v20 }
  0x17   :  { %16 = vsyncpa [#allocation6], 0  ;;  %v4498_v28 = vld [vmem:[%s5765_s0 + $0x51] sm:$0xff]  ;;  %v4503_v29 = vld [vmem:[%s5765_s0 + $0x61] sm:$0xff]  ;;  %v3965_v30 = vpack.c.bf16 %v62_v27, %v61_v26  ;;  %vm980_vm1 = vcmask 261120   ;;  %s4350_s21 = smov 96  }
  0x18   :  { %3626 = vmatmul.mubr.msk.f32.gmra.mrb[2].mxu0 %vm87_vm0, %v4478_v23  ;;  %v491_v31 = vld [vmem:[%s5766_s1 + $0x80] sm:$0xff]  ;;  %v492_v32 = vld [vmem:[%s5766_s1 + $0x88] sm:$0xff]  ;;  %v4518_v33 = vld [vmem:[%s5765_s0 + $0x71] sm:$0xff]  ;;  %vm998_vm2 = vcmask 256000   ;;  %vm1005_vm3 = vcmask 259075   ;;  %vm1012_vm4 = vcmask 261126  }
  0x19   :  { %3628 = vmatprep.mubr.msk.f32.mxu0 %vm87_vm0, %v4483_v24  ;;  %3960 = vmatpush3.bf16.msra.mxu0 %v3957_v20  ;;  %v71_v34 = vld [vmem:[%s5765_s0 + $0x91] sm:$0xff]  ;;  %v3969_v35 = vpack.c.bf16 %v492_v32, %v491_v31  ;;  %v4529_v36 = vld [vmem:[%s5765_s0 + $0xa1] sm:$0xff]  ;;  %v4742_v20 = vld [vmem:[%s5767_s2] ss:$0 sm:$0xff]  ;;  %s4349_s2 = smov 64   ;;  %vm1014_vm5 = vcmask 253952  }
  0x1a   :  { %3962 = vmatprep.subr.bf16.mxu0 %v3961_v25  ;;  %v4534_v37 = vld [vmem:[%s5765_s0 + $0xb1] sm:$0xff]  ;;  %v4543_v38 = vld [vmem:[%s5765_s0 + $0xc1] sm:$0xff]  ;;  %vm1021_vm6 = vcmask 257025   ;;  %vm1028_vm7 = vcmask 260100   ;;  %vm1035_vm8 = vcmask 261127   ;;  %vm1037_vm9 = vcmask 254976  }
  0x1b   :  { %v4548_v39 = vld [vmem:[%s5765_s0 + $0xd1] sm:$0xff]  ;;  %v4557_v40 = vld [vmem:[%s5765_s0 + $0xe1] sm:$0xff]  ;;  %vm1045_vm10 = vcmask 518400   ;;  %vm1102_vm11 = vcmask 780800   ;;  %vm1159_vm12 = vcmask 1043200   ;;  %vm1054_vm13 = vcmask 521475  }
  0x1c   :  { %3629 = vmatmul.mubr.msk.f32.gmra.mrb[4].mxu0 %vm87_vm0, %v4498_v28  ;;  %v4562_v41 = vld [vmem:[%s5765_s0 + $0xf1] sm:$0xff]  ;;  %v4571_v42 = vld [vmem:[%s5765_s0 + $0x101] sm:$0xff]  ;;  %vm1111_vm14 = vcmask 783875   ;;  %vm1168_vm15 = vcmask 1046275   ;;  %s4354_s15 = smov [#allocation5]  }
  0x1d   :  { %3631 = vmatprep.mubr.msk.f32.mxu0 %vm87_vm0, %v4503_v29  ;;  %3964 = vmatpush3.bf16.msra.mxu0 %v3961_v25  ;;  %v39_v43 = vld [vmem:[%s5765_s0] sm:$0xff]  ;;  %v493_v44 = vld [vmem:[%s5766_s1 + $0x90] sm:$0xff]  ;;  %v494_v45 = vld [vmem:[%s5766_s1 + $0x98] sm:$0xff]  ;;  %s3158_s16 = sshll.u32 %s4354_s15, 4  ;;  %s3159_s16 = int_to_ptr.vmem [resolvable:$true] %s3158_s16 }
  0x1e   :  { %3966 = vmatprep.subr.bf16.mxu0 %v3965_v30  ;;  %v40_v46 = vld [vmem:[%s5765_s0 + $0x10] sm:$0xff]  ;;  %v41_v47 = vld [vmem:[%s5765_s0 + $0x20] sm:$0xff]  ;;  %v3973_v48 = vpack.c.bf16 %v494_v45, %v493_v44  ;;  %v496_v50 = vld [vmem:[%s5766_s1 + $0xa8] sm:$0xff]  ;;  %s4324_s17 = scalar_lea.vmem %s3159_s16, 32  ;;  %p4329_p1 = scmp.lt.s32.totalorder %s3159_s16, %s3159_s16 }
  0x1f   :  { %v495_v49 = vld [vmem:[%s5766_s1 + $0xa0] sm:$0xff]  ;;  %v42_v51 = vld [vmem:[%s5765_s0 + $0x30] sm:$0xff]  ;;  %v498_v55 = vld [vmem:[%s5766_s1 + $0xb8] sm:$0xff]  ;;  %p4325_p0 = scmp.ne.s32.totalorder %s3159_s16, %s4324_s17  ;;  %p4330_p2 = scmp.lt.s32.totalorder %s4324_s17, %s4324_s17 }
  0x20   :  { %3632 = vmatmul.mubr.msk.f32.gmra.mrb[6].mxu0 %vm87_vm0, %v4518_v33  ;;  %v43_v52 = vld [vmem:[%s5765_s0 + $0x40] sm:$0xff]  ;;  %v3977_v53 = vpack.c.bf16 %v496_v50, %v495_v49  ;;  %v497_v54 = vld [vmem:[%s5766_s1 + $0xb0] sm:$0xff]  ;;  %v725_v60 = vld [vmem:[%s5766_s1 + $0xc8] sm:$0xff] }
  0x21   :  { %3634 = vmatprep.mubr.msk.f32.mxu0 %vm87_vm0, %v71_v34  ;;  %3968 = vmatpush3.bf16.msra.mxu0 %v3965_v30  ;;  %v44_v56 = vld [vmem:[%s5765_s0 + $0x50] sm:$0xff]  ;;  %v45_v57 = vld [vmem:[%s5765_s0 + $0x60] sm:$0xff]  ;;  %v3981_v58 = vpack.c.bf16 %v498_v55, %v497_v54  ;;  %v727_v8 = vld [vmem:[%s5766_s1 + $0xd8] sm:$0xff]  ;;  %p4331_p3 = por %p4330_p2, %p4329_p1 }
  0x22   :  { %3970 = vmatprep.subr.bf16.mxu0 %v3969_v35  ;;  %v724_v59 = vld [vmem:[%s5766_s1 + $0xc0] sm:$0xff]  ;;  %v46_v61 = vld [vmem:[%s5765_s0 + $0x70] sm:$0xff]  ;;  %v729_v11 = vld [vmem:[%s5766_s1 + $0xe8] sm:$0xff] }
  0x23   :  { %v47_v62 = vld [vmem:[%s5765_s0 + $0x90] sm:$0xff]  ;;  %v3985_v63 = vpack.c.bf16 %v725_v60, %v724_v59  ;;  %v48_v0 = vld [vmem:[%s5765_s0 + $0xa0] sm:$0xff]  ;;  %v731_v14 = vld [vmem:[%s5766_s1 + $0xf8] sm:$0xff]  ;;  %p4332_p4 = pnand %p4331_p3, %p4325_p0 }
  0x24   :  { %3635 = vmatmul.mubr.msk.f32.gmra.mrb[8].mxu0 %vm87_vm0, %v4529_v36  ;;  %v49_v1 = vld [vmem:[%s5765_s0 + $0xb0] sm:$0xff]  ;;  %v50_v2 = vld [vmem:[%s5765_s0 + $0xc0] sm:$0xff] }
  0x25   :  { %3637 = vmatprep.mubr.msk.f32.mxu0 %vm87_vm0, %v4534_v37  ;;  %v51_v3 = vld [vmem:[%s5765_s0 + $0xd0] sm:$0xff]  ;;  %v52_v4 = vld [vmem:[%s5765_s0 + $0xe0] sm:$0xff] }
  0x26   :  { %v53_v5 = vld [vmem:[%s5765_s0 + $0xf0] sm:$0xff]  ;;  %v54_v6 = vld [vmem:[%s5765_s0 + $0x100] sm:$0xff] }
  0x27   :  { %v726_v7 = vld [vmem:[%s5766_s1 + $0xd0] sm:$0xff]  ;;  %v728_v10 = vld [vmem:[%s5766_s1 + $0xe0] sm:$0xff] }
  0x28   :  { %3638 = vmatmul.mubr.msk.f32.gmra.mrb[10].mxu0 %vm87_vm0, %v4543_v38  ;;  %v3989_v9 = vpack.c.bf16 %v727_v8, %v726_v7  ;;  %v3993_v12 = vpack.c.bf16 %v729_v11, %v728_v10  ;;  %v730_v13 = vld [vmem:[%s5766_s1 + $0xf0] sm:$0xff]  ;;  %v3205_v16 = vld [vmem:[%s5765_s0 + $0x80] sm:$0xff] }
  0x29   :  { %3640 = vmatprep.mubr.msk.f32.mxu0 %vm87_vm0, %v4548_v39  ;;  %v3997_v15 = vpack.c.bf16 %v731_v14, %v730_v13  ;;  %v3213_v17 = vld [vmem:[%s5765_s0 + $0x110] sm:$0xff] }
  0x2c   :  { %3641 = vmatmul.mubr.msk.f32.gmra.mrb[12].mxu0 %vm87_vm0, %v4557_v40 }
  0x2d   :  { %3643 = vmatprep.mubr.msk.f32.mxu0 %vm87_vm0, %v4562_v41 }
  0x30   :  { %3644 = vmatmul.mubr.msk.f32.gmra.mrb[14].mxu0 %vm87_vm0, %v4571_v42 }
  0x31   :  { %3662 = vmatprep.mubr.msk.f32.mxu0 %vm87_vm0, %v39_v43 }
  0x34   :  { %3663 = vmatmul.mubr.msk.f32.vlgmr.msra.gmra.mrb[0].mxu0 %vm87_vm0, %v40_v46 }
  0x35   :  { %3972 = vmatpush3.bf16.msra.mxu0 %v3969_v35  ;;  %3665 = vmatprep.mubr.msk.f32.mxu0 %vm87_vm0, %v41_v47 }
  0x36   :  { %3974 = vmatprep.subr.bf16.mxu0 %v3973_v48 }
  0x38   :  { %3666 = vmatmul.mubr.msk.f32.gmra.mrb[2].mxu0 %vm87_vm0, %v42_v51 }
  0x39   :  { %3668 = vmatprep.mubr.msk.f32.mxu0 %vm87_vm0, %v43_v52  ;;  %3976 = vmatpush3.bf16.msra.mxu0 %v3973_v48 }
  0x3a   :  { %3978 = vmatprep.subr.bf16.mxu0 %v3977_v53 }
  0x3c   :  { %3669 = vmatmul.mubr.msk.f32.gmra.mrb[4].mxu0 %vm87_vm0, %v44_v56 }
  0x3d   :  { %3671 = vmatprep.mubr.msk.f32.mxu0 %vm87_vm0, %v45_v57  ;;  %3980 = vmatpush3.bf16.msra.mxu0 %v3977_v53 }
  0x3e   :  { %3982 = vmatprep.subr.bf16.mxu0 %v3981_v58 }
  0x40   :  { %3672 = vmatmul.mubr.msk.f32.gmra.mrb[6].mxu0 %vm87_vm0, %v46_v61 }
  0x41   :  { %3674 = vmatprep.mubr.msk.f32.mxu0 %vm87_vm0, %v47_v62  ;;  %3984 = vmatpush3.bf16.msra.mxu0 %v3981_v58 }
  0x42   :  { %3986 = vmatprep.subr.bf16.mxu0 %v3985_v63 }
  0x44   :  { %3675 = vmatmul.mubr.msk.f32.gmra.mrb[8].mxu0 %vm87_vm0, %v48_v0 }
  0x45   :  { %3677 = vmatprep.mubr.msk.f32.mxu0 %vm87_vm0, %v49_v1 }
  0x48   :  { %3678 = vmatmul.mubr.msk.f32.gmra.mrb[10].mxu0 %vm87_vm0, %v50_v2 }
  0x49   :  { %3680 = vmatprep.mubr.msk.f32.mxu0 %vm87_vm0, %v51_v3 }
  0x4c   :  { %3681 = vmatmul.mubr.msk.f32.gmra.mrb[12].mxu0 %vm87_vm0, %v52_v4 }
  0x4d   :  { %3683 = vmatprep.mubr.msk.f32.mxu0 %vm87_vm0, %v53_v5 }
  0x50   :  { %3684 = vmatmul.mubr.msk.f32.gmra.mrb[14].mxu0 %vm87_vm0, %v54_v6 }
  0x51   :  { %3702 = vmatprep.mubr.msk.f32.mxu0 %vm87_vm0, %v40_v46 }
  0x54   :  { %3703 = vmatmul.mubr.msk.f32.vlgmr.msra.gmra.mrb[0].mxu0 %vm87_vm0, %v41_v47 }
  0x55   :  { %3988 = vmatpush3.bf16.msra.mxu0 %v3985_v63  ;;  %3705 = vmatprep.mubr.msk.f32.mxu0 %vm87_vm0, %v42_v51 }
  0x56   :  { %3990 = vmatprep.subr.bf16.mxu0 %v3989_v9 }
  0x58   :  { %3706 = vmatmul.mubr.msk.f32.gmra.mrb[2].mxu0 %vm87_vm0, %v43_v52 }
  0x59   :  { %3708 = vmatprep.mubr.msk.f32.mxu0 %vm87_vm0, %v44_v56  ;;  %3992 = vmatpush3.bf16.msra.mxu0 %v3989_v9 }
  0x5a   :  { %3994 = vmatprep.subr.bf16.mxu0 %v3993_v12 }
  0x5c   :  { %3709 = vmatmul.mubr.msk.f32.gmra.mrb[4].mxu0 %vm87_vm0, %v45_v57 }
  0x5d   :  { %3711 = vmatprep.mubr.msk.f32.mxu0 %vm87_vm0, %v46_v61  ;;  %3996 = vmatpush3.bf16.msra.mxu0 %v3993_v12 }
  0x5e   :  { %3998 = vmatprep.subr.bf16.mxu0 %v3997_v15 }
  0x60   :  { %3712 = vmatmul.mubr.msk.f32.gmra.mrb[6].mxu0 %vm87_vm0, %v3205_v16 }
  0x61   :  { %3714 = vmatprep.mubr.msk.f32.mxu0 %vm87_vm0, %v48_v0  ;;  %4000 = vmatpush3.bf16.msra.mxu0 %v3997_v15 }
  0x64   :  { %3715 = vmatmul.mubr.msk.f32.gmra.mrb[8].mxu0 %vm87_vm0, %v49_v1 }
  0x65   :  { %3717 = vmatprep.mubr.msk.f32.mxu0 %vm87_vm0, %v50_v2 }
  0x68   :  { %3718 = vmatmul.mubr.msk.f32.gmra.mrb[10].mxu0 %vm87_vm0, %v51_v3 }
  0x69   :  { %3720 = vmatprep.mubr.msk.f32.mxu0 %vm87_vm0, %v52_v4 }
  0x6c   :  { %3721 = vmatmul.mubr.msk.f32.gmra.mrb[12].mxu0 %vm87_vm0, %v53_v5 }
  0x6d   :  { %3723 = vmatprep.mubr.msk.f32.mxu0 %vm87_vm0, %v54_v6 }
  0x70   :  { %3724 = vmatmul.mubr.msk.f32.gmra.mrb[14].mxu0 %vm87_vm0, %v3213_v17 }
  0x71   :  { %3742 = vmatprep.mubr.msk.f32.mxu0 %vm87_vm0, %v4458_v18  ;;  %v3237_v18 = vld [vmem:[%s5765_s0 + $0x81] sm:$0xff] }
  0x74   :  { %3743 = vmatmul.mubr.msk.f32.vlgmr.msra.gmra.mrb[0].mxu0 %vm87_vm0, %v4463_v19  ;;  %v3245_v19 = vld [vmem:[%s5765_s0 + $0x111] sm:$0xff]  ;;  %s4348_s0 = smov 32  }
  0x75   :  { %3745 = vmatprep.mubr.msk.f32.mxu0 %vm87_vm0, %v4478_v23 }
  0x78   :  { %3746 = vmatmul.mubr.msk.f32.gmra.mrb[2].mxu0 %vm87_vm0, %v4483_v24 }
  0x79   :  { %3748 = vmatprep.mubr.msk.f32.mxu0 %vm87_vm0, %v4498_v28 }
  0x7c   :  { %3749 = vmatmul.mubr.msk.f32.gmra.mrb[4].mxu0 %vm87_vm0, %v4503_v29 }
  0x7d   :  { %3751 = vmatprep.mubr.msk.f32.mxu0 %vm87_vm0, %v4518_v33 }
  0x80   :  { %3752 = vmatmul.mubr.msk.f32.gmra.mrb[6].mxu0 %vm87_vm0, %v3237_v18 }
  0x81   :  { %3754 = vmatprep.mubr.msk.f32.mxu0 %vm87_vm0, %v4529_v36 }
  0x84   :  { %3755 = vmatmul.mubr.msk.f32.gmra.mrb[8].mxu0 %vm87_vm0, %v4534_v37 }
  0x85   :  { %3757 = vmatprep.mubr.msk.f32.mxu0 %vm87_vm0, %v4543_v38 }
  0x88   :  { %3758 = vmatmul.mubr.msk.f32.gmra.mrb[10].mxu0 %vm87_vm0, %v4548_v39 }
  0x89   :  { %3760 = vmatprep.mubr.msk.f32.mxu0 %vm87_vm0, %v4557_v40 }
  0x8c   :  { %3761 = vmatmul.mubr.msk.f32.gmra.mrb[12].mxu0 %vm87_vm0, %v4562_v41 }
  0x8d   :  { %3763 = vmatprep.mubr.msk.f32.mxu0 %vm87_vm0, %v4571_v42 }
  0x90   :  { %3764 = vmatmul.mubr.msk.f32.gmra.mrb[14].mxu0 %vm87_vm0, %v3245_v19  ;;  %v1752_v19 = vld [vmem:[%s5768_s3 + $0x80] sm:$0xff] }
 0x147   :  { %v3744_v21 = vpop.f32.mrb[0].mxu0 }
 0x148   :  { %v949_v22 = vadd.f32 %v3744_v21, %v4742_v20  ;;  %v846_v23 = vpop.f32.mrb[1].mxu0  ;;  %v1736_v21 = vld [vmem:[%s5768_s3] sm:$0xff] }
 0x149   :  { %v948_v24 = vadd.f32 %v4742_v20, %v846_v23 }
 0x14a   :  { %v965_v25 = vmax.f32 %v949_v22, 0.0 }
 0x14b   :  { %v964_v26 = vmax.f32 %v948_v24, 0.0  ;;  %v3747_v27 = vpop.f32.mrb[2].mxu0  ;;  %v1737_v24 = vld [vmem:[%s5768_s3 + $0x8] sm:$0xff] }
 0x14c   :  { %982 = vst.msk [vmem:[#allocation2 + $0x8] sm:$0xff] %vm980_vm1, %v965_v25  ;;  %v951_v28 = vadd.f32 %v3747_v27, %v4742_v20  ;;  %v856_v29 = vpop.f32.mrb[3].mxu0  ;;  %v4003_v27 = vpack.c.bf16 %v1737_v24, %v1736_v21 }
 0x14d   :  { %981 = vst.msk [vmem:[#allocation2] sm:$0xff] %vm980_vm1, %v964_v26  ;;  %v950_v30 = vadd.f32 %v4742_v20, %v856_v29  ;;  %v1754_v29 = vld [vmem:[%s5768_s3 + $0x90] sm:$0xff] }
 0x14e   :  { %v967_v31 = vmax.f32 %v951_v28, 0.0 }
 0x14f   :  { %v966_v32 = vmax.f32 %v950_v30, 0.0  ;;  %v3750_v33 = vpop.f32.mrb[4].mxu0  ;;  %v1755_v30 = vld [vmem:[%s5768_s3 + $0x98] sm:$0xff] }
 0x150   :  { %984 = vst.msk [vmem:[#allocation2 + $0x18] sm:$0xff] %vm980_vm1, %v967_v31  ;;  %v953_v34 = vadd.f32 %v3750_v33, %v4742_v20  ;;  %v866_v35 = vpop.f32.mrb[5].mxu0  ;;  %v4005_v31 = vpack.c.bf16 %v1755_v30, %v1754_v29  ;;  %v1739_v33 = vld [vmem:[%s5768_s3 + $0x18] sm:$0xff]  ;;  %v1750_v29 = vld [vmem:[%s5768_s3 + $0x70] sm:$0xff] }
 0x151   :  { %983 = vst.msk [vmem:[#allocation2 + $0x10] sm:$0xff] %vm980_vm1, %v966_v32  ;;  %v952_v36 = vadd.f32 %v4742_v20, %v866_v35  ;;  %v1738_v32 = vld [vmem:[%s5768_s3 + $0x10] sm:$0xff]  ;;  %v1751_v30 = vld [vmem:[%s5768_s3 + $0x78] sm:$0xff] }
 0x152   :  { %v969_v37 = vmax.f32 %v953_v34, 0.0  ;;  %v4007_v35 = vpack.c.bf16 %v1739_v33, %v1738_v32  ;;  %v4031_v33 = vpack.c.bf16 %v1751_v30, %v1750_v29 }
 0x153   :  { %v968_v38 = vmax.f32 %v952_v36, 0.0  ;;  %v3753_v39 = vpop.f32.mrb[6].mxu0  ;;  %v1246_v40 = vld [vmem:[#allocation2 + $0x9] ss:$2 sm:$0x7] }
 0x154   :  { %986 = vst.msk [vmem:[#allocation2 + $0x28] sm:$0xff] %vm980_vm1, %v969_v37  ;;  %v955_v41 = vadd.f32 %v3753_v39, %v4742_v20  ;;  %1248 = vrot.lane.b32.xlu0 %v1246_v40, %s4348_s0  ;;  %v876_v42 = vpop.f32.mrb[7].mxu0  ;;  %v1040_v43 = vld [vmem:[#allocation2 + $0x1] ss:$2 sm:$0x7]  ;;  %v1757_v40 = vld [vmem:[%s5768_s3 + $0xa8] sm:$0xff] }
 0x155   :  { %985 = vst.msk [vmem:[#allocation2 + $0x20] sm:$0xff] %vm980_vm1, %v968_v38  ;;  %v954_v44 = vadd.f32 %v4742_v20, %v876_v42  ;;  %1042 = vrot.lane.b32.xlu1 %v1040_v43, %s4348_s0  ;;  %v1295_v48 = vld [vmem:[#allocation2 + $0xa] ss:$2 sm:$0x7]  ;;  %v1756_v39 = vld [vmem:[%s5768_s3 + $0xa0] sm:$0xff] }
 0x156   :  { %v971_v45 = vmax.f32 %v955_v41, 0.0  ;;  %v1097_v51 = vld [vmem:[#allocation2 + $0x2] ss:$2 sm:$0x7]  ;;  %v4009_v41 = vpack.c.bf16 %v1757_v40, %v1756_v39  ;;  %v1741_v43 = vld [vmem:[%s5768_s3 + $0x28] sm:$0xff] }
 0x157   :  { %v970_v46 = vmax.f32 %v954_v44, 0.0  ;;  %v3756_v47 = vpop.f32.mrb[8].mxu0  ;;  %v1344_v56 = vld [vmem:[#allocation2 + $0xb] ss:$2 sm:$0x7]  ;;  %v1740_v42 = vld [vmem:[%s5768_s3 + $0x20] sm:$0xff] }
 0x158   :  { %988 = vst.msk [vmem:[#allocation2 + $0x38] sm:$0xff] %vm980_vm1, %v971_v45  ;;  %v957_v49 = vadd.f32 %v3756_v47, %v4742_v20  ;;  %1297 = vrot.lane.b32.xlu0 %v1295_v48, %s4349_s2  ;;  %v886_v50 = vpop.f32.mrb[9].mxu0  ;;  %v1154_v59 = vld [vmem:[#allocation2 + $0x3] ss:$2 sm:$0x7]  ;;  %v4011_v45 = vpack.c.bf16 %v1741_v43, %v1740_v42 }
 0x159   :  { %987 = vst.msk [vmem:[#allocation2 + $0x30] sm:$0xff] %vm980_vm1, %v970_v46  ;;  %v956_v52 = vadd.f32 %v4742_v20, %v886_v50  ;;  %1099 = vrot.lane.b32.xlu1 %v1097_v51, %s4349_s2  ;;  %v1589_v0 = vld [vmem:[#allocation2 + $0x19] ss:$2 sm:$0x7] }
 0x15a   :  { %v973_v53 = vmax.f32 %v957_v49, 0.0  ;;  %v1423_v3 = vld [vmem:[#allocation2 + $0x11] ss:$2 sm:$0x7]  ;;  %v1759_v50 = vld [vmem:[%s5768_s3 + $0xb8] sm:$0xff] }
 0x15b   :  { %v972_v54 = vmax.f32 %v956_v52, 0.0  ;;  %v3759_v55 = vpop.f32.mrb[10].mxu0  ;;  %v1634_v8 = vld [vmem:[#allocation2 + $0x1a] ss:$2 sm:$0x7]  ;;  %v1758_v49 = vld [vmem:[%s5768_s3 + $0xb0] sm:$0xff] }
 0x15c   :  { %990 = vst.msk [vmem:[#allocation2 + $0x48] sm:$0xff] %vm980_vm1, %v973_v53  ;;  %v959_v57 = vadd.f32 %v3759_v55, %v4742_v20  ;;  %1346 = vrot.lane.b32.xlu0 %v1344_v56, %s4350_s21  ;;  %v896_v58 = vpop.f32.mrb[11].mxu0  ;;  %v1468_v11 = vld [vmem:[#allocation2 + $0x12] ss:$2 sm:$0x7]  ;;  %v4013_v51 = vpack.c.bf16 %v1759_v50, %v1758_v49  ;;  %v1743_v53 = vld [vmem:[%s5768_s3 + $0x38] sm:$0xff] }
 0x15d   :  { %989 = vst.msk [vmem:[#allocation2 + $0x40] sm:$0xff] %vm980_vm1, %v972_v54  ;;  %v958_v60 = vadd.f32 %v4742_v20, %v896_v58  ;;  %1156 = vrot.lane.b32.xlu1 %v1154_v59, %s4350_s21  ;;  %v1679_v13 = vld [vmem:[#allocation2 + $0x1b] ss:$2 sm:$0x7]  ;;  %v1742_v52 = vld [vmem:[%s5768_s3 + $0x30] sm:$0xff]  ;;  %v1760_v59 = vld [vmem:[%s5768_s3 + $0xc0] sm:$0xff] }
 0x15e   :  { %v975_v61 = vmax.f32 %v959_v57, 0.0  ;;  %v1513_v15 = vld [vmem:[#allocation2 + $0x13] ss:$2 sm:$0x7]  ;;  %v4015_v55 = vpack.c.bf16 %v1743_v53, %v1742_v52 }
 0x15f   :  { %v974_v62 = vmax.f32 %v958_v60, 0.0  ;;  %v3762_v63 = vpop.f32.mrb[12].mxu0  ;;  %v1253_v17 = vld [vmem:[#allocation2 + $0x19] ss:$2 sm:$0x7]  ;;  %v1761_v60 = vld [vmem:[%s5768_s3 + $0xc8] sm:$0xff] }
 0x160   :  { %992 = vst.msk [vmem:[#allocation2 + $0x58] sm:$0xff] %vm980_vm1, %v975_v61  ;;  %v961_v1 = vadd.f32 %v3762_v63, %v4742_v20  ;;  %1591 = vrot.lane.b32.xlu0 %v1589_v0, %s4348_s0  ;;  %v906_v2 = vpop.f32.mrb[13].mxu0  ;;  %v1302_v18 = vld [vmem:[#allocation2 + $0x1a] ss:$2 sm:$0x7]  ;;  %v1255_v22 = vrot.slane %v1253_v17, 5  ;;  %v4017_v61 = vpack.c.bf16 %v1761_v60, %v1760_v59 }
 0x161   :  { %991 = vst.msk [vmem:[#allocation2 + $0x50] sm:$0xff] %vm980_vm1, %v974_v62  ;;  %v960_v4 = vadd.f32 %v4742_v20, %v906_v2  ;;  %1425 = vrot.lane.b32.xlu1 %v1423_v3, %s4348_s0  ;;  %v1304_v25 = vrot.slane %v1302_v18, 5  ;;  %v1048_v26 = vld [vmem:[#allocation2 + $0x11] ss:$2 sm:$0x7]  ;;  %v1744_v62 = vld [vmem:[%s5768_s3 + $0x40] sm:$0xff] }
 0x162   :  { %v977_v5 = vmax.f32 %v961_v1, 0.0  ;;  %v1351_v28 = vld [vmem:[#allocation2 + $0x1b] ss:$2 sm:$0x7]  ;;  %v1050_v34 = vrot.slane %v1048_v26, 5  ;;  %v1745_v63 = vld [vmem:[%s5768_s3 + $0x48] sm:$0xff] }
 0x163   :  { %v976_v6 = vmax.f32 %v960_v4, 0.0  ;;  %v3765_v7 = vpop.f32.mrb[14].mxu0  ;;  %v1353_v36 = vrot.slane %v1351_v28, 5  ;;  %v1105_v37 = vld [vmem:[#allocation2 + $0x12] ss:$2 sm:$0x7]  ;;  %v4019_v1 = vpack.c.bf16 %v1745_v63, %v1744_v62 }
 0x164   :  { %994 = vst.msk [vmem:[#allocation2 + $0x68] sm:$0xff] %vm980_vm1, %v977_v5  ;;  %v963_v9 = vadd.f32 %v3765_v7, %v4742_v20  ;;  %1636 = vrot.lane.b32.xlu0 %v1634_v8, %s4349_s2  ;;  %v916_v10 = vpop.f32.mrb[15].mxu0  ;;  %v1261_v38 = vld [vmem:[#allocation2 + $0x29] ss:$2 sm:$0x7]  ;;  %v1107_v44 = vrot.slane %v1105_v37, 5 }
 0x165   :  { %993 = vst.msk [vmem:[#allocation2 + $0x60] sm:$0xff] %vm980_vm1, %v976_v6  ;;  %v962_v12 = vadd.f32 %v4742_v20, %v916_v10  ;;  %1470 = vrot.lane.b32.xlu1 %v1468_v11, %s4349_s2  ;;  %v1753_v20 = vld [vmem:[%s5768_s3 + $0x88] sm:$0xff]  ;;  %v1263_v46 = vrot.slane %v1261_v38, 2  ;;  %v1162_v47 = vld [vmem:[#allocation2 + $0x13] ss:$2 sm:$0x7] }
 0x166   :  { %v979_v14 = vmax.f32 %v963_v9, 0.0  ;;  %v4001_v23 = vpack.c.bf16 %v1753_v20, %v1752_v19  ;;  %v1595_v48 = vld [vmem:[#allocation2 + $0x29] ss:$2 sm:$0x7]  ;;  %v1164_v54 = vrot.slane %v1162_v47, 5  ;;  %v1762_v5 = vld [vmem:[%s5768_s3 + $0xd0] sm:$0xff] }
 0x167   :  { %v978_v16 = vmax.f32 %v962_v12, 0.0  ;;  %v1597_v56 = vrot.slane %v1595_v48, 5  ;;  %v1310_v57 = vld [vmem:[#allocation2 + $0x2a] ss:$2 sm:$0x7]  ;;  %v1763_v6 = vld [vmem:[%s5768_s3 + $0xd8] sm:$0xff] }
 0x168   :  { %996 = vst.msk [vmem:[#allocation2 + $0x78] sm:$0xff] %vm980_vm1, %v979_v14  ;;  %1681 = vrot.lane.b32.xlu0 %v1679_v13, %s4350_s21  ;;  %4002 = vmatprep.subr.bf16.mxu1 %v4001_v23  ;;  %v1640_v58 = vld [vmem:[#allocation2 + $0x2a] ss:$2 sm:$0x7]  ;;  %v1312_v0 = vrot.slane %v1310_v57, 2  ;;  %v4021_v7 = vpack.c.bf16 %v1763_v6, %v1762_v5  ;;  %v1746_v8 = vld [vmem:[%s5768_s3 + $0x50] sm:$0xff] }
 0x169   :  { %995 = vst.msk [vmem:[#allocation2 + $0x70] sm:$0xff] %vm980_vm1, %v978_v16  ;;  %1515 = vrot.lane.b32.xlu1 %v1513_v15, %s4350_s21  ;;  %4004 = vmatpush3.bf16.msra.mxu1 %v4003_v27  ;;  %v1642_v2 = vrot.slane %v1640_v58, 5  ;;  %v1359_v3 = vld [vmem:[#allocation2 + $0x2b] ss:$2 sm:$0x7]  ;;  %v1747_v9 = vld [vmem:[%s5768_s3 + $0x58] sm:$0xff] }
 0x16a   :  { %4006 = vmatprep.subr.bf16.mxu1 %v4005_v31  ;;  %v1685_v4 = vld [vmem:[#allocation2 + $0x2b] ss:$2 sm:$0x7]  ;;  %v1361_v10 = vrot.slane %v1359_v3, 2  ;;  %v4023_v11 = vpack.c.bf16 %v1747_v9, %v1746_v8  ;;  %v1764_v15 = vld [vmem:[%s5768_s3 + $0xe0] sm:$0xff]  ;;  %v1767_v26 = vld [vmem:[%s5768_s3 + $0xf8] sm:$0xff] }
 0x16b   :  { %v1687_v12 = vrot.slane %v1685_v4, 5  ;;  %v1429_v13 = vld [vmem:[#allocation2 + $0x21] ss:$2 sm:$0x7]  ;;  %v1765_v16 = vld [vmem:[%s5768_s3 + $0xe8] sm:$0xff]  ;;  %vm1063_vm1 = vcmask 523526  }
 0x16c   :  { %1256 = vrot.lane.b32.xlu0 %v1255_v22, %s4348_s0  ;;  %v1057_v14 = vld [vmem:[#allocation2 + $0x21] ss:$2 sm:$0x7]  ;;  %v4025_v17 = vpack.c.bf16 %v1765_v16, %v1764_v15  ;;  %v1749_v19 = vld [vmem:[%s5768_s3 + $0x68] sm:$0xff]  ;;  %v1431_v20 = vrot.slane %v1429_v13, 5 }
 0x16d   :  { %1305 = vrot.lane.b32.xlu1 %v1304_v25, %s4349_s2  ;;  %4008 = vmatpush3.bf16.msra.mxu1 %v4007_v35  ;;  %v1748_v18 = vld [vmem:[%s5768_s3 + $0x60] sm:$0xff]  ;;  %v1059_v23 = vrot.slane %v1057_v14, 2  ;;  %v1766_v25 = vld [vmem:[%s5768_s3 + $0xf0] sm:$0xff]  ;;  %v1603_v37 = vld [vmem:[#allocation2 + $0x39] ss:$2 sm:$0x7] }
 0x16e   :  { %4010 = vmatprep.subr.bf16.mxu1 %v4009_v41  ;;  %v1474_v21 = vld [vmem:[#allocation2 + $0x22] ss:$2 sm:$0x7]  ;;  %v4027_v22 = vpack.c.bf16 %v1749_v19, %v1748_v18  ;;  %v4029_v28 = vpack.c.bf16 %v1767_v26, %v1766_v25  ;;  %v1519_v31 = vld [vmem:[#allocation2 + $0x23] ss:$2 sm:$0x7] }
 0x16f   :  { %v1114_v24 = vld [vmem:[#allocation2 + $0x22] ss:$2 sm:$0x7]  ;;  %v1476_v27 = vrot.slane %v1474_v21, 5  ;;  %v1521_v35 = vrot.slane %v1519_v31, 5  ;;  %v1605_v41 = vrot.slane %v1603_v37, 2 }
 0x170   :  { %1051 = vrot.lane.b32.xlu0 %v1050_v34, %s4348_s0  ;;  %v1171_v32 = vld [vmem:[#allocation2 + $0x23] ss:$2 sm:$0x7]  ;;  %v1116_v34 = vrot.slane %v1114_v24, 2 }
 0x171   :  { %1354 = vrot.lane.b32.xlu1 %v1353_v36, %s4350_s21  ;;  %4012 = vmatpush3.bf16.msra.mxu1 %v4011_v45  ;;  %v1173_v36 = vrot.slane %v1171_v32, 2  ;;  %v1211_v38 = vld [vmem:[#allocation2 + $0x8] ss:$2 sm:$0x7] }
 0x172   :  { %4014 = vmatprep.subr.bf16.mxu1 %v4013_v51  ;;  %v1437_v39 = vld [vmem:[#allocation2 + $0x31] ss:$2 sm:$0x7]  ;;  %1212 = vst.msk [vmem:[#allocation3 + $0x8] sm:$0x7] %vm998_vm2, %v1211_v38 }
 0x173   :  { %v997_v40 = vld [vmem:[#allocation2] ss:$2 sm:$0x7]  ;;  %v1439_v42 = vrot.slane %v1437_v39, 2 }
 0x174   :  { %1108 = vrot.lane.b32.xlu0 %v1107_v44, %s4349_s2  ;;  %999 = vst.msk [vmem:[#allocation3] sm:$0x7] %vm998_vm2, %v997_v40  ;;  %v1648_v43 = vld [vmem:[#allocation2 + $0x3a] ss:$2 sm:$0x7] }
 0x175   :  { %1264 = vrot.lane.b32.xlu1 %v1263_v46, %s4348_s0  ;;  %4016 = vmatpush3.bf16.msra.mxu1 %v4015_v55  ;;  %v1482_v44 = vld [vmem:[#allocation2 + $0x32] ss:$2 sm:$0x7]  ;;  %v1558_v45 = vld [vmem:[#allocation2 + $0x18] ss:$2 sm:$0x7] }
 0x176   :  { %4018 = vmatprep.subr.bf16.mxu1 %v4017_v61  ;;  %v1650_v46 = vrot.slane %v1648_v43, 2  ;;  %v1484_v47 = vrot.slane %v1482_v44, 2  ;;  %1559 = vst.msk [vmem:[#allocation3 + $0x18] sm:$0x7] %vm998_vm2, %v1558_v45 }
 0x177   :  { %v1392_v48 = vld [vmem:[#allocation2 + $0x10] ss:$2 sm:$0x7]  ;;  %v1693_v49 = vld [vmem:[#allocation2 + $0x3b] ss:$2 sm:$0x7] }
 0x178   :  { %1165 = vrot.lane.b32.xlu0 %v1164_v54, %s4350_s21  ;;  %v1527_v50 = vld [vmem:[#allocation2 + $0x33] ss:$2 sm:$0x7]  ;;  %1393 = vst.msk [vmem:[#allocation3 + $0x10] sm:$0x7] %vm998_vm2, %v1392_v48  ;;  %v1695_v51 = vrot.slane %v1693_v49, 2 }
 0x179   :  { %1598 = vrot.lane.b32.xlu1 %v1597_v56, %s4348_s0  ;;  %4020 = vmatpush3.bf16.msra.mxu1 %v4019_v1  ;;  %v1529_v52 = vrot.slane %v1527_v50, 2  ;;  %v1270_v53 = vld [vmem:[#allocation2 + $0x49] ss:$2 sm:$0x7]  ;;  %vm1065_vm2 = vcmask 516352  }
 0x17a   :  { %4022 = vmatprep.subr.bf16.mxu1 %v4021_v7  ;;  %v1068_v54 = vld [vmem:[#allocation2 + $0x41] ss:$2 sm:$0x7]  ;;  %v1214_v55 = vld [vmem:[#allocation2 + $0x18] ss:$2 sm:$0x7] }
 0x17b   :  { %v1216_v56 = vrot.slane %v1214_v55, 5  ;;  %v1272_v57 = vrot.slane %v1270_v53, 7  ;;  %v1070_v58 = vrot.slane %v1068_v54, 7  ;;  %v1319_v59 = vld [vmem:[#allocation2 + $0x4a] ss:$2 sm:$0x7] }
 0x17c   :  { %1313 = vrot.lane.b32.xlu0 %v1312_v0, %s4349_s2  ;;  %v1125_v60 = vld [vmem:[#allocation2 + $0x42] ss:$2 sm:$0x7]  ;;  %v1001_v61 = vld [vmem:[#allocation2 + $0x10] ss:$2 sm:$0x7] }
 0x17d   :  { %1643 = vrot.lane.b32.xlu1 %v1642_v2, %s4349_s2  ;;  %4024 = vmatpush3.bf16.msra.mxu1 %v4023_v11  ;;  %1218 = vst.msk [vmem:[#allocation3 + $0x8] sm:$0x38] %vm1005_vm3, %v1216_v56  ;;  %v1003_v62 = vrot.slane %v1001_v61, 5  ;;  %v1220_v63 = vld [vmem:[#allocation2 + $0x28] ss:$2 sm:$0x7] }
 0x17e   :  { %4026 = vmatprep.subr.bf16.mxu1 %v4025_v17  ;;  %v1368_v0 = vld [vmem:[#allocation2 + $0x4b] ss:$2 sm:$0x7]  ;;  %v1222_v1 = vrot.slane %v1220_v63, 2  ;;  %v1321_v3 = vrot.slane %v1319_v59, 7  ;;  %v1127_v7 = vrot.slane %v1125_v60, 7 }
 0x17f   :  { %v1560_v2 = vld [vmem:[#allocation2 + $0x28] ss:$2 sm:$0x7]  ;;  %v1182_v4 = vld [vmem:[#allocation2 + $0x43] ss:$2 sm:$0x7] }
 0x180   :  { %1362 = vrot.lane.b32.xlu0 %v1361_v10, %s4350_s21  ;;  %1006 = vst.msk [vmem:[#allocation3] sm:$0x38] %vm1005_vm3, %v1003_v62  ;;  %v1562_v5 = vrot.slane %v1560_v2, 5  ;;  %v1394_v6 = vld [vmem:[#allocation2 + $0x20] ss:$2 sm:$0x7] }
 0x181   :  { %1688 = vrot.lane.b32.xlu1 %v1687_v12, %s4350_s21  ;;  %4028 = vmatpush3.bf16.msra.mxu1 %v4027_v22  ;;  %1224 = vst.msk [vmem:[#allocation3 + $0x8] sm:$0xc0] %vm1012_vm4, %v1222_v1  ;;  %v1396_v8 = vrot.slane %v1394_v6, 5  ;;  %v1008_v9 = vld [vmem:[#allocation2 + $0x20] ss:$2 sm:$0x7] }
 0x182   :  { %4030 = vmatprep.subr.bf16.mxu1 %v4029_v28  ;;  %1225 = vst.msk [vmem:[#allocation3 + $0x28] sm:$0x1] %vm1014_vm5, %v1222_v1  ;;  %v1010_v10 = vrot.slane %v1008_v9, 2  ;;  %v1566_v11 = vld [vmem:[#allocation2 + $0x38] ss:$2 sm:$0x7] }
 0x183   :  { %1564 = vst.msk [vmem:[#allocation3 + $0x18] sm:$0x38] %vm1005_vm3, %v1562_v5  ;;  %v1611_v12 = vld [vmem:[#allocation2 + $0x59] ss:$2 sm:$0x7]  ;;  %v1568_v13 = vrot.slane %v1566_v11, 2 }
 0x184   :  { %1432 = vrot.lane.b32.xlu0 %v1431_v20, %s4348_s0  ;;  %1398 = vst.msk [vmem:[#allocation3 + $0x10] sm:$0x38] %vm1005_vm3, %v1396_v8  ;;  %v1400_v14 = vld [vmem:[#allocation2 + $0x30] ss:$2 sm:$0x7]  ;;  %v1370_v15 = vrot.slane %v1368_v0, 7 }
 0x185   :  { %1060 = vrot.lane.b32.xlu1 %v1059_v23, %s4348_s0  ;;  %4032 = vmatpush3.bf16.msra.mxu1 %v4031_v33  ;;  %v1278_v16 = vld [vmem:[#allocation2 + $0x59] ss:$2 sm:$0x7]  ;;  %1013 = vst.msk [vmem:[#allocation3] sm:$0xc0] %vm1012_vm4, %v1010_v10  ;;  %v1402_v17 = vrot.slane %v1400_v14, 2 }
 0x186   :  { %1015 = vst.msk [vmem:[#allocation3 + $0x20] sm:$0x1] %vm1014_vm5, %v1010_v10  ;;  %v1227_v18 = vld [vmem:[#allocation2 + $0x48] ss:$2 sm:$0x7]  ;;  %v1184_v19 = vrot.slane %v1182_v4, 7 }
 0x187   :  { %1570 = vst.msk [vmem:[#allocation3 + $0x18] sm:$0xc0] %vm1012_vm4, %v1568_v13  ;;  %v1229_v20 = vrot.slane %v1227_v18, 7  ;;  %v1017_v21 = vld [vmem:[#allocation2 + $0x40] ss:$2 sm:$0x7] }
 0x188   :  { %1477 = vrot.lane.b32.xlu0 %v1476_v27, %s4349_s2  ;;  %1571 = vst.msk [vmem:[#allocation3 + $0x38] sm:$0x1] %vm1014_vm5, %v1568_v13  ;;  %1405 = vst.msk [vmem:[#allocation3 + $0x30] sm:$0x1] %vm1014_vm5, %v1402_v17  ;;  %v1019_v22 = vrot.slane %v1017_v21, 7  ;;  %v1613_v27 = vrot.slane %v1611_v12, 7 }
 0x189   :  { %1117 = vrot.lane.b32.xlu1 %v1116_v34, %s4349_s2  ;;  %1404 = vst.msk [vmem:[#allocation3 + $0x10] sm:$0xc0] %vm1012_vm4, %v1402_v17  ;;  %v1572_v23 = vld [vmem:[#allocation2 + $0x58] ss:$2 sm:$0x7]  ;;  %v1280_v31 = vrot.slane %v1278_v16, 4 }
 0x18a   :  { %v1656_v24 = vld [vmem:[#allocation2 + $0x5a] ss:$2 sm:$0x7]  ;;  %1231 = vst.msk [vmem:[#allocation3 + $0x28] sm:$0xe] %vm1021_vm6, %v1229_v20  ;;  %v1574_v25 = vrot.slane %v1572_v23, 7 }
 0x18b   :  { %v1233_v26 = vld [vmem:[#allocation2 + $0x58] ss:$2 sm:$0x7]  ;;  %1022 = vst.msk [vmem:[#allocation3 + $0x20] sm:$0xe] %vm1021_vm6, %v1019_v22  ;;  %v1658_v39 = vrot.slane %v1656_v24, 7 }
 0x18c   :  { %1522 = vrot.lane.b32.xlu0 %v1521_v35, %s4350_s21  ;;  %v1327_v28 = vld [vmem:[#allocation2 + $0x5a] ss:$2 sm:$0x7]  ;;  %v1235_v29 = vrot.slane %v1233_v26, 4  ;;  %1576 = vst.msk [vmem:[#allocation3 + $0x38] sm:$0xe] %vm1021_vm6, %v1574_v25 }
 0x18d   :  { %1174 = vrot.lane.b32.xlu1 %v1173_v36, %s4350_s21  ;;  %v1024_v30 = vld [vmem:[#allocation2 + $0x50] ss:$2 sm:$0x7]  ;;  %v1239_v35 = vld [vmem:[#allocation2 + $0x68] ss:$2 sm:$0x7] }
 0x18e   :  { %v1026_v32 = vrot.slane %v1024_v30, 4  ;;  %v1406_v33 = vld [vmem:[#allocation2 + $0x50] ss:$2 sm:$0x7]  ;;  %1237 = vst.msk [vmem:[#allocation3 + $0x28] sm:$0x70] %vm1028_vm7, %v1235_v29 }
 0x18f   :  { %v1408_v34 = vrot.slane %v1406_v33, 7  ;;  %v1701_v36 = vld [vmem:[#allocation2 + $0x5b] ss:$2 sm:$0x7]  ;;  %v1241_v37 = vrot.slane %v1239_v35, 1  ;;  %v1329_v43 = vrot.slane %v1327_v28, 4 }
 0x190   :  { %1606 = vrot.lane.b32.xlu0 %v1605_v41, %s4348_s0  ;;  %1029 = vst.msk [vmem:[#allocation3 + $0x20] sm:$0x70] %vm1028_vm7, %v1026_v32  ;;  %v1577_v38 = vld [vmem:[#allocation2 + $0x68] ss:$2 sm:$0x7]  ;;  %v1703_v50 = vrot.slane %v1701_v36, 7 }
 0x191   :  { %1440 = vrot.lane.b32.xlu1 %v1439_v42, %s4348_s0  ;;  %v1376_v40 = vld [vmem:[#allocation2 + $0x5b] ss:$2 sm:$0x7]  ;;  %1410 = vst.msk [vmem:[#allocation3 + $0x30] sm:$0xe] %vm1021_vm6, %v1408_v34  ;;  %v1579_v41 = vrot.slane %v1577_v38, 4 }
 0x192   :  { %v1411_v42 = vld [vmem:[#allocation2 + $0x60] ss:$2 sm:$0x7]  ;;  %1243 = vst.msk [vmem:[#allocation3 + $0x28] sm:$0x80] %vm1035_vm8, %v1241_v37  ;;  %v1785_v0 = vld [vmem:[%s5768_s3 + $0x188] sm:$0xff] }
 0x193   :  { %1244 = vst.msk [vmem:[#allocation3 + $0x48] sm:$0x3] %vm1037_vm9, %v1241_v37  ;;  %v1413_v44 = vrot.slane %v1411_v42, 4  ;;  %v1031_v45 = vld [vmem:[#allocation2 + $0x60] ss:$2 sm:$0x7] }
 0x194   :  { %1651 = vrot.lane.b32.xlu0 %v1650_v46, %s4349_s2  ;;  %1581 = vst.msk [vmem:[#allocation3 + $0x38] sm:$0x70] %vm1028_vm7, %v1579_v41  ;;  %v1033_v46 = vrot.slane %v1031_v45, 1  ;;  %v1417_v49 = vld [vmem:[#allocation2 + $0x70] ss:$2 sm:$0x7] }
 0x195   :  { %1485 = vrot.lane.b32.xlu1 %v1484_v47, %s4349_s2  ;;  %v1583_v47 = vld [vmem:[#allocation2 + $0x78] ss:$2 sm:$0x7]  ;;  %1415 = vst.msk [vmem:[#allocation3 + $0x30] sm:$0x70] %vm1028_vm7, %v1413_v44  ;;  %v1784_v63 = vld [vmem:[%s5768_s3 + $0x180] sm:$0xff] }
 0x196   :  { %v1585_v48 = vrot.slane %v1583_v47, 1  ;;  %1036 = vst.msk [vmem:[#allocation3 + $0x20] sm:$0x80] %vm1035_vm8, %v1033_v46  ;;  %v1077_v53 = vld [vmem:[#allocation2 + $0x51] ss:$2 sm:$0x7]  ;;  %v4033_v1 = vpack.c.bf16 %v1785_v0, %v1784_v63 }
 0x197   :  { %1038 = vst.msk [vmem:[#allocation3 + $0x40] sm:$0x3] %vm1037_vm9, %v1033_v46  ;;  %v1445_v54 = vld [vmem:[#allocation2 + $0x51] ss:$2 sm:$0x7]  ;;  %v1079_v55 = vrot.slane %v1077_v53, 4 }
 0x198   :  { %1696 = vrot.lane.b32.xlu0 %v1695_v51, %s4350_s21  ;;  %v1419_v51 = vrot.slane %v1417_v49, 1  ;;  %1587 = vst.msk [vmem:[#allocation3 + $0x38] sm:$0x80] %vm1035_vm8, %v1585_v48  ;;  %v1447_v56 = vrot.slane %v1445_v54, 7  ;;  %4034 = vmatprep.subr.bf16.mxu1 %v4033_v1  ;;  %vm1120_vm3 = vcmask 785926   ;;  %vm1122_vm4 = vcmask 778752  }
 0x199   :  { %1530 = vrot.lane.b32.xlu1 %v1529_v52, %s4350_s21  ;;  %v1378_v52 = vrot.slane %v1376_v40, 4  ;;  %1588 = vst.msk [vmem:[#allocation3 + $0x58] sm:$0x3] %vm1037_vm9, %v1585_v48  ;;  %v1191_v61 = vld [vmem:[#allocation2 + $0x53] ss:$2 sm:$0x7] }
 0x19a   :  { %1421 = vst.msk [vmem:[#allocation3 + $0x30] sm:$0x80] %vm1035_vm8, %v1419_v51  ;;  %v1535_v62 = vld [vmem:[#allocation2 + $0x53] ss:$2 sm:$0x7]  ;;  %v1193_v2 = vrot.slane %v1191_v61, 4 }
 0x19b   :  { %1422 = vst.msk [vmem:[#allocation3 + $0x50] sm:$0x3] %vm1037_vm9, %v1419_v51  ;;  %v1286_v4 = vld [vmem:[#allocation2 + $0x69] ss:$2 sm:$0x7]  ;;  %vm1177_vm5 = vcmask 1048326  }
 0x19c   :  { %1273 = vrot.lane.b32.xlu0 %v1272_v57, %s4348_s0  ;;  %v1134_v57 = vld [vmem:[#allocation2 + $0x52] ss:$2 sm:$0x7]  ;;  %v1618_v5 = vld [vmem:[#allocation2 + $0x69] ss:$2 sm:$0x7] }
 0x19d   :  { %1071 = vrot.lane.b32.xlu1 %v1070_v58, %s4348_s0  ;;  %v1490_v58 = vld [vmem:[#allocation2 + $0x52] ss:$2 sm:$0x7]  ;;  %v1136_v59 = vrot.slane %v1134_v57, 4  ;;  %v1288_v6 = vrot.slane %v1286_v4, 1  ;;  %vm1179_vm6 = vcmask 1041152  }
 0x19e   :  { %v1492_v60 = vrot.slane %v1490_v58, 7  ;;  %v1335_v8 = vld [vmem:[#allocation2 + $0x6a] ss:$2 sm:$0x7]  ;;  %vm1074_vm7 = vcmask 519425   ;;  %vm1131_vm8 = vcmask 781825  }
 0x19f   :  { %v1663_v9 = vld [vmem:[#allocation2 + $0x6a] ss:$2 sm:$0x7]  ;;  %v1337_v10 = vrot.slane %v1335_v8, 1  ;;  %v1768_v8 = vld [vmem:[%s5768_s3 + $0x100] sm:$0xff]  ;;  %vm1188_vm9 = vcmask 1044225  }
 0x1a0   :  { %1322 = vrot.lane.b32.xlu0 %v1321_v3, %s4349_s2  ;;  %v1537_v3 = vrot.slane %v1535_v62, 7  ;;  %v1665_v11 = vrot.slane %v1663_v9, 4  ;;  %v1384_v12 = vld [vmem:[#allocation2 + $0x6b] ss:$2 sm:$0x7] }
 0x1a1   :  { %1128 = vrot.lane.b32.xlu1 %v1127_v7, %s4349_s2  ;;  %v1620_v7 = vrot.slane %v1618_v5, 4  ;;  %v1708_v13 = vld [vmem:[#allocation2 + $0x6b] ss:$2 sm:$0x7] }
 0x1a2   :  { %v1710_v17 = vrot.slane %v1708_v13, 4  ;;  %v1452_v18 = vld [vmem:[#allocation2 + $0x61] ss:$2 sm:$0x7]  ;;  %v1769_v9 = vld [vmem:[%s5768_s3 + $0x108] sm:$0xff] }
 0x1a3   :  { %v1454_v21 = vrot.slane %v1452_v18, 4  ;;  %v1497_v24 = vld [vmem:[#allocation2 + $0x62] ss:$2 sm:$0x7]  ;;  %v4035_v13 = vpack.c.bf16 %v1769_v9, %v1768_v8 }
 0x1a4   :  { %1371 = vrot.lane.b32.xlu0 %v1370_v15, %s4350_s21  ;;  %v1386_v15 = vrot.slane %v1384_v12, 1  ;;  %v1143_v25 = vld [vmem:[#allocation2 + $0x62] ss:$2 sm:$0x7]  ;;  %v1787_v12 = vld [vmem:[%s5768_s3 + $0x198] sm:$0xff] }
 0x1a5   :  { %1185 = vrot.lane.b32.xlu1 %v1184_v19, %s4350_s21  ;;  %v1086_v19 = vld [vmem:[#allocation2 + $0x61] ss:$2 sm:$0x7]  ;;  %v1145_v29 = vrot.slane %v1143_v25, 1 }
 0x1a6   :  { %v1088_v23 = vrot.slane %v1086_v19, 1  ;;  %v1626_v30 = vld [vmem:[#allocation2 + $0x79] ss:$2 sm:$0x7]  ;;  %v1772_v25 = vld [vmem:[%s5768_s3 + $0x120] sm:$0xff] }
 0x1a7   :  { %v1628_v33 = vrot.slane %v1626_v30, 1  ;;  %v1671_v36 = vld [vmem:[#allocation2 + $0x7a] ss:$2 sm:$0x7] }
 0x1a8   :  { %1614 = vrot.lane.b32.xlu0 %v1613_v27, %s4348_s0  ;;  %v1499_v27 = vrot.slane %v1497_v24, 4  ;;  %v1460_v37 = vld [vmem:[#allocation2 + $0x71] ss:$2 sm:$0x7] }
 0x1a9   :  { %1281 = vrot.lane.b32.xlu1 %v1280_v31, %s4348_s0  ;;  %v1200_v31 = vld [vmem:[#allocation2 + $0x63] ss:$2 sm:$0x7]  ;;  %v1462_v41 = vrot.slane %v1460_v37, 1  ;;  %v1793_v37 = vld [vmem:[%s5768_s3 + $0x1c8] sm:$0xff] }
 0x1aa   :  { %v1202_v35 = vrot.slane %v1200_v31, 1  ;;  %v1716_v42 = vld [vmem:[#allocation2 + $0x7b] ss:$2 sm:$0x7] }
 0x1ab   :  { %v1718_v45 = vrot.slane %v1716_v42, 1  ;;  %v1542_v48 = vld [vmem:[#allocation2 + $0x63] ss:$2 sm:$0x7]  ;;  %v1777_v42 = vld [vmem:[%s5768_s3 + $0x148] sm:$0xff] }
 0x1ac   :  { %1659 = vrot.lane.b32.xlu0 %v1658_v39, %s4349_s2  ;;  %v1673_v39 = vrot.slane %v1671_v36, 1  ;;  %v1550_v49 = vld [vmem:[#allocation2 + $0x73] ss:$2 sm:$0x7]  ;;  %v1544_v51 = vrot.slane %v1542_v48, 4  ;;  %v1792_v36 = vld [vmem:[%s5768_s3 + $0x1c0] sm:$0xff] }
 0x1ad   :  { %1330 = vrot.lane.b32.xlu1 %v1329_v43, %s4349_s2  ;;  %v1505_v43 = vld [vmem:[#allocation2 + $0x72] ss:$2 sm:$0x7]  ;;  %v1552_v53 = vrot.slane %v1550_v49, 1 }
 0x1ae   :  { %v1507_v47 = vrot.slane %v1505_v43, 1  ;;  %v1778_v49 = vld [vmem:[%s5768_s3 + $0x150] sm:$0xff] }
 0x1b0   :  { %1704 = vrot.lane.b32.xlu0 %v1703_v50, %s4350_s21 }
 0x1b1   :  { %1379 = vrot.lane.b32.xlu1 %v1378_v52, %s4350_s21 }
 0x1b4   :  { %1080 = vrot.lane.b32.xlu0 %v1079_v55, %s4348_s0 }
 0x1b5   :  { %1448 = vrot.lane.b32.xlu1 %v1447_v56, %s4348_s0 }
 0x1b8   :  { %1137 = vrot.lane.b32.xlu0 %v1136_v59, %s4349_s2 }
 0x1b9   :  { %1493 = vrot.lane.b32.xlu1 %v1492_v60, %s4349_s2 }
 0x1bc   :  { %1194 = vrot.lane.b32.xlu0 %v1193_v2, %s4350_s21 }
 0x1bd   :  { %1538 = vrot.lane.b32.xlu1 %v1537_v3, %s4350_s21 }
 0x1c0   :  { %1289 = vrot.lane.b32.xlu0 %v1288_v6, %s4348_s0 }
 0x1c1   :  { %1621 = vrot.lane.b32.xlu1 %v1620_v7, %s4348_s0 }
 0x1c4   :  { %1338 = vrot.lane.b32.xlu0 %v1337_v10, %s4349_s2 }
 0x1c5   :  { %1666 = vrot.lane.b32.xlu1 %v1665_v11, %s4349_s2  ;;  %v1786_v11 = vld [vmem:[%s5768_s3 + $0x190] sm:$0xff] }
 0x1c6   :  { %v1249_v14 = vpop.permute.xlu0 %1248 }
 0x1c7   :  { %1251 = vst.msk [vmem:[#allocation3 + $0x8] sm:$0x7] %vm1045_vm10, %v1249_v14  ;;  %v1043_v16 = vpop.permute.xlu1 %1042 }
 0x1c8   :  { %1046 = vst.msk [vmem:[#allocation3] sm:$0x7] %vm1045_vm10, %v1043_v16  ;;  %1387 = vrot.lane.b32.xlu0 %v1386_v15, %s4350_s21  ;;  %v4037_v15 = vpack.c.bf16 %v1787_v12, %v1786_v11  ;;  %v1770_v16 = vld [vmem:[%s5768_s3 + $0x110] sm:$0xff] }
 0x1c9   :  { %1711 = vrot.lane.b32.xlu1 %v1710_v17, %s4350_s21  ;;  %v1771_v17 = vld [vmem:[%s5768_s3 + $0x118] sm:$0xff] }
 0x1ca   :  { %v1298_v20 = vpop.permute.xlu0 %1297 }
 0x1cb   :  { %1300 = vst.msk [vmem:[#allocation3 + $0x8] sm:$0x7] %vm1102_vm11, %v1298_v20  ;;  %v1100_v22 = vpop.permute.xlu1 %1099  ;;  %v1788_v20 = vld [vmem:[%s5768_s3 + $0x1a0] sm:$0xff] }
 0x1cc   :  { %1103 = vst.msk [vmem:[#allocation3] sm:$0x7] %vm1102_vm11, %v1100_v22  ;;  %1455 = vrot.lane.b32.xlu0 %v1454_v21, %s4348_s0  ;;  %v1789_v21 = vld [vmem:[%s5768_s3 + $0x1a8] sm:$0xff]  ;;  %v4039_v22 = vpack.c.bf16 %v1771_v17, %v1770_v16 }
 0x1cd   :  { %1089 = vrot.lane.b32.xlu1 %v1088_v23, %s4348_s0  ;;  %v4041_v24 = vpack.c.bf16 %v1789_v21, %v1788_v20 }
 0x1ce   :  { %v1347_v26 = vpop.permute.xlu0 %1346 }
 0x1cf   :  { %1349 = vst.msk [vmem:[#allocation3 + $0x8] sm:$0x7] %vm1159_vm12, %v1347_v26  ;;  %v1157_v28 = vpop.permute.xlu1 %1156  ;;  %v1773_v26 = vld [vmem:[%s5768_s3 + $0x128] sm:$0xff] }
 0x1d0   :  { %1160 = vst.msk [vmem:[#allocation3] sm:$0x7] %vm1159_vm12, %v1157_v28  ;;  %1500 = vrot.lane.b32.xlu0 %v1499_v27, %s4349_s2  ;;  %v1790_v28 = vld [vmem:[%s5768_s3 + $0x1b0] sm:$0xff]  ;;  %v4043_v30 = vpack.c.bf16 %v1773_v26, %v1772_v25 }
 0x1d1   :  { %1146 = vrot.lane.b32.xlu1 %v1145_v29, %s4349_s2  ;;  %v1791_v29 = vld [vmem:[%s5768_s3 + $0x1b8] sm:$0xff] }
 0x1d2   :  { %v1592_v32 = vpop.permute.xlu0 %1591 }
 0x1d3   :  { %1594 = vst.msk [vmem:[#allocation3 + $0x18] sm:$0x7] %vm1045_vm10, %v1592_v32  ;;  %v1426_v34 = vpop.permute.xlu1 %1425  ;;  %v4045_v32 = vpack.c.bf16 %v1791_v29, %v1790_v28 }
 0x1d4   :  { %1428 = vst.msk [vmem:[#allocation3 + $0x10] sm:$0x7] %vm1045_vm10, %v1426_v34  ;;  %1629 = vrot.lane.b32.xlu0 %v1628_v33, %s4348_s0  ;;  %v1774_v33 = vld [vmem:[%s5768_s3 + $0x130] sm:$0xff]  ;;  %v1775_v34 = vld [vmem:[%s5768_s3 + $0x138] sm:$0xff]  ;;  %vm1083_vm10 = vcmask 522500  }
 0x1d5   :  { %1203 = vrot.lane.b32.xlu1 %v1202_v35, %s4350_s21 }
 0x1d6   :  { %v1637_v38 = vpop.permute.xlu0 %1636 }
 0x1d7   :  { %1639 = vst.msk [vmem:[#allocation3 + $0x18] sm:$0x7] %vm1102_vm11, %v1637_v38  ;;  %v1471_v40 = vpop.permute.xlu1 %1470  ;;  %v4047_v38 = vpack.c.bf16 %v1775_v34, %v1774_v33 }
 0x1d8   :  { %1473 = vst.msk [vmem:[#allocation3 + $0x10] sm:$0x7] %vm1102_vm11, %v1471_v40  ;;  %1674 = vrot.lane.b32.xlu0 %v1673_v39, %s4349_s2  ;;  %v4049_v40 = vpack.c.bf16 %v1793_v37, %v1792_v36  ;;  %vm1140_vm11 = vcmask 784900  }
 0x1d9   :  { %1463 = vrot.lane.b32.xlu1 %v1462_v41, %s4348_s0  ;;  %v1776_v41 = vld [vmem:[%s5768_s3 + $0x140] sm:$0xff] }
 0x1da   :  { %v1682_v44 = vpop.permute.xlu0 %1681 }
 0x1db   :  { %1684 = vst.msk [vmem:[#allocation3 + $0x18] sm:$0x7] %vm1159_vm12, %v1682_v44  ;;  %v1516_v46 = vpop.permute.xlu1 %1515  ;;  %v1794_v44 = vld [vmem:[%s5768_s3 + $0x1d0] sm:$0xff] }
 0x1dc   :  { %1518 = vst.msk [vmem:[#allocation3 + $0x10] sm:$0x7] %vm1159_vm12, %v1516_v46  ;;  %1719 = vrot.lane.b32.xlu0 %v1718_v45, %s4350_s21  ;;  %v1795_v45 = vld [vmem:[%s5768_s3 + $0x1d8] sm:$0xff]  ;;  %v4051_v46 = vpack.c.bf16 %v1777_v42, %v1776_v41  ;;  %vm1197_vm12 = vcmask 1047300   ;;  %v1985_v41 = vld [vmem:[%s5770_s5 + $0x40] sm:$0xff]  ;;  %v1986_v42 = vld [vmem:[%s5770_s5 + $0x48] sm:$0xff] }
 0x1dd   :  { %1508 = vrot.lane.b32.xlu1 %v1507_v47, %s4349_s2  ;;  %v4053_v48 = vpack.c.bf16 %v1795_v45, %v1794_v44  ;;  %v4351_v44 = vmov 0.0|0.0   ;;  %v4066_v45 = vpack.c.bf16 %v1986_v42, %v1985_v41 }
 0x1de   :  { %v1257_v50 = vpop.permute.xlu0 %1256  ;;  %4113 = vmatprep.subr.bf16.mxu0 %v4351_v44 }
 0x1df   :  { %1259 = vst.msk [vmem:[#allocation3 + $0x8] sm:$0x38] %vm1054_vm13, %v1257_v50  ;;  %v1306_v52 = vpop.permute.xlu1 %1305  ;;  %v1779_v50 = vld [vmem:[%s5768_s3 + $0x158] sm:$0xff] }
 0x1e0   :  { %1308 = vst.msk [vmem:[#allocation3 + $0x8] sm:$0x38] %vm1111_vm14, %v1306_v52  ;;  %1545 = vrot.lane.b32.xlu0 %v1544_v51, %s4350_s21  ;;  %v1796_v52 = vld [vmem:[%s5768_s3 + $0x1e0] sm:$0xff] }
 0x1e1   :  { %1553 = vrot.lane.b32.xlu1 %v1552_v53, %s4350_s21  ;;  %v1797_v53 = vld [vmem:[%s5768_s3 + $0x1e8] sm:$0xff] }
 0x1e2   :  { %v1052_v54 = vpop.permute.xlu0 %1051 }
 0x1e3   :  { %1055 = vst.msk [vmem:[#allocation3] sm:$0x38] %vm1054_vm13, %v1052_v54  ;;  %v1355_v55 = vpop.permute.xlu1 %1354  ;;  %v4055_v54 = vpack.c.bf16 %v1779_v50, %v1778_v49  ;;  %v1988_v49 = vld [vmem:[%s5770_s5 + $0x58] sm:$0xff]  ;;  %v2311_v50 = vld [vmem:[%s5770_s5 + $0x110] sm:$0xff] }
 0x1e4   :  { %1357 = vst.msk [vmem:[#allocation3 + $0x8] sm:$0x38] %vm1168_vm15, %v1355_v55 }
 0x1e6   :  { %v1109_v56 = vpop.permute.xlu0 %1108 }
 0x1e7   :  { %1112 = vst.msk [vmem:[#allocation3] sm:$0x38] %vm1111_vm14, %v1109_v56  ;;  %v1265_v57 = vpop.permute.xlu1 %1264  ;;  %v4057_v56 = vpack.c.bf16 %v1797_v53, %v1796_v52  ;;  %v2312_v52 = vld [vmem:[%s5770_s5 + $0x118] sm:$0xff] }
 0x1e8   :  { %1267 = vst.msk [vmem:[#allocation3 + $0x8] sm:$0xc0] %vm1063_vm1, %v1265_v57  ;;  %v4117_v53 = vpack.c.bf16 %v2312_v52, %v2311_v50  ;;  %v1981_v52 = vld [vmem:[%s5770_s5 + $0x30] sm:$0xff] }
 0x1e9   :  { %1268 = vst.msk [vmem:[#allocation3 + $0x28] sm:$0x1] %vm1065_vm2, %v1265_v57  ;;  %v1780_v57 = vld [vmem:[%s5768_s3 + $0x160] sm:$0xff] }
 0x1ea   :  { %v1166_v58 = vpop.permute.xlu0 %1165 }
 0x1eb   :  { %1169 = vst.msk [vmem:[#allocation3] sm:$0x38] %vm1168_vm15, %v1166_v58  ;;  %v1599_v59 = vpop.permute.xlu1 %1598  ;;  %v1781_v58 = vld [vmem:[%s5768_s3 + $0x168] sm:$0xff] }
 0x1ec   :  { %1601 = vst.msk [vmem:[#allocation3 + $0x18] sm:$0x38] %vm1054_vm13, %v1599_v59 }
 0x1ee   :  { %v1314_v60 = vpop.permute.xlu0 %1313 }
 0x1ef   :  { %1316 = vst.msk [vmem:[#allocation3 + $0x8] sm:$0xc0] %vm1120_vm3, %v1314_v60  ;;  %v1644_v61 = vpop.permute.xlu1 %1643 }
 0x1f0   :  { %1317 = vst.msk [vmem:[#allocation3 + $0x28] sm:$0x1] %vm1122_vm4, %v1314_v60  ;;  %v1798_v60 = vld [vmem:[%s5768_s3 + $0x1f0] sm:$0xff] }
 0x1f1   :  { %1646 = vst.msk [vmem:[#allocation3 + $0x18] sm:$0x38] %vm1111_vm14, %v1644_v61  ;;  %v1799_v61 = vld [vmem:[%s5768_s3 + $0x1f8] sm:$0xff] }
 0x1f2   :  { %v1363_v62 = vpop.permute.xlu0 %1362 }
 0x1f3   :  { %1365 = vst.msk [vmem:[#allocation3 + $0x8] sm:$0xc0] %vm1177_vm5, %v1363_v62  ;;  %v1689_v63 = vpop.permute.xlu1 %1688 }
 0x1f4   :  { %1366 = vst.msk [vmem:[#allocation3 + $0x28] sm:$0x1] %vm1179_vm6, %v1363_v62  ;;  %v4059_v62 = vpack.c.bf16 %v1781_v58, %v1780_v57  ;;  %v2314_v58 = vld [vmem:[%s5770_s5 + $0x128] sm:$0xff] }
 0x1f5   :  { %1691 = vst.msk [vmem:[#allocation3 + $0x18] sm:$0x38] %vm1168_vm15, %v1689_v63 }
 0x1f6   :  { %v1433_v0 = vpop.permute.xlu0 %1432 }
 0x1f7   :  { %1435 = vst.msk [vmem:[#allocation3 + $0x10] sm:$0x38] %vm1054_vm13, %v1433_v0  ;;  %v1061_v1 = vpop.permute.xlu1 %1060  ;;  %v4061_v0 = vpack.c.bf16 %v1799_v61, %v1798_v60  ;;  %vm1092_vm13 = vcmask 523527   ;;  %v1992_v60 = vld [vmem:[%s5770_s5 + $0x78] sm:$0xff]  ;;  %v4353_v61 = vmov 0.0  }
 0x1f8   :  { %1064 = vst.msk [vmem:[#allocation3] sm:$0xc0] %vm1063_vm1, %v1061_v1 }
 0x1f9   :  { %1066 = vst.msk [vmem:[#allocation3 + $0x20] sm:$0x1] %vm1065_vm2, %v1061_v1  ;;  %v1782_v1 = vld [vmem:[%s5768_s3 + $0x170] sm:$0xff] }
 0x1fa   :  { %v1478_v2 = vpop.permute.xlu0 %1477  ;;  %v1725_v3 = vld [vmem:[#allocation3 + $0x8] sm:$0xff] }
 0x1fb   :  { %1480 = vst.msk [vmem:[#allocation3 + $0x10] sm:$0x38] %vm1111_vm14, %v1478_v2  ;;  %1871 = vmatprep.mubr.f32.mxu1 %v1725_v3  ;;  %v1118_v4 = vpop.permute.xlu1 %1117  ;;  %v1783_v2 = vld [vmem:[%s5768_s3 + $0x178] sm:$0xff]  ;;  %vm1094_vm14 = vcmask 517376  }
 0x1fc   :  { %1121 = vst.msk [vmem:[#allocation3] sm:$0xc0] %vm1120_vm3, %v1118_v4 }
 0x1fd   :  { %1123 = vst.msk [vmem:[#allocation3 + $0x20] sm:$0x1] %vm1122_vm4, %v1118_v4  ;;  %v4063_v4 = vpack.c.bf16 %v1783_v2, %v1782_v1 }
 0x1fe   :  { %v1523_v5 = vpop.permute.xlu0 %1522 }
 0x1ff   :  { %1525 = vst.msk [vmem:[#allocation3 + $0x10] sm:$0x38] %vm1168_vm15, %v1523_v5  ;;  %v1175_v6 = vpop.permute.xlu1 %1174  ;;  %vm1149_vm15 = vcmask 785927  }
 0x200   :  { %1178 = vst.msk [vmem:[#allocation3] sm:$0xc0] %vm1177_vm5, %v1175_v6 }
 0x201   :  { %1180 = vst.msk [vmem:[#allocation3 + $0x20] sm:$0x1] %vm1179_vm6, %v1175_v6 }
 0x202   :  { %v1607_v7 = vpop.permute.xlu0 %1606 }
 0x203   :  { %1609 = vst.msk [vmem:[#allocation3 + $0x18] sm:$0xc0] %vm1063_vm1, %v1607_v7  ;;  %v1441_v10 = vpop.permute.xlu1 %1440 }
 0x204   :  { %1610 = vst.msk [vmem:[#allocation3 + $0x38] sm:$0x1] %vm1065_vm2, %v1607_v7  ;;  %1444 = vst.msk [vmem:[#allocation3 + $0x30] sm:$0x1] %vm1065_vm2, %v1441_v10  ;;  %vm1206_vm2 = vcmask 1048327  }
 0x205   :  { %1443 = vst.msk [vmem:[#allocation3 + $0x10] sm:$0xc0] %vm1063_vm1, %v1441_v10  ;;  %vm1151_vm1 = vcmask 779776  }
 0x206   :  { %v1652_v14 = vpop.permute.xlu0 %1651 }
 0x207   :  { %1654 = vst.msk [vmem:[#allocation3 + $0x18] sm:$0xc0] %vm1120_vm3, %v1652_v14  ;;  %v1486_v18 = vpop.permute.xlu1 %1485  ;;  %v1724_v19 = vld [vmem:[#allocation3] sm:$0xff] }
 0x208   :  { %1655 = vst.msk [vmem:[#allocation3 + $0x38] sm:$0x1] %vm1122_vm4, %v1652_v14  ;;  %1489 = vst.msk [vmem:[#allocation3 + $0x30] sm:$0x1] %vm1122_vm4, %v1486_v18  ;;  %1872 = vmatmul.mubr.f32.vlgmr.msra.gmra.mrb[0].mxu1 %v1724_v19  ;;  %vm4352_vm4 = vmmov 0  }
 0x209   :  { %1488 = vst.msk [vmem:[#allocation3 + $0x10] sm:$0xc0] %vm1120_vm3, %v1486_v18  ;;  %4036 = vmatpush3.bf16.msra.mxu1 %v4035_v13  ;;  %vm1208_vm3 = vcmask 1042176   ;;  %3858 = vmatprep.mubr.msk.f32.mxu0 %vm4352_vm4, %v4353_v61 }
 0x20a   :  { %v1697_v23 = vpop.permute.xlu0 %1696  ;;  %4038 = vmatprep.subr.bf16.mxu1 %v4037_v15 }
 0x20b   :  { %1699 = vst.msk [vmem:[#allocation3 + $0x18] sm:$0xc0] %vm1177_vm5, %v1697_v23  ;;  %v1531_v27 = vpop.permute.xlu1 %1530 }
 0x20c   :  { %1700 = vst.msk [vmem:[#allocation3 + $0x38] sm:$0x1] %vm1179_vm6, %v1697_v23  ;;  %1534 = vst.msk [vmem:[#allocation3 + $0x30] sm:$0x1] %vm1179_vm6, %v1531_v27 }
 0x20d   :  { %1533 = vst.msk [vmem:[#allocation3 + $0x10] sm:$0xc0] %vm1177_vm5, %v1531_v27  ;;  %4040 = vmatpush3.bf16.msra.mxu1 %v4039_v22  ;;  %vm1972_vm5 = vcmask 517120  }
 0x20e   :  { %v1274_v31 = vpop.permute.xlu0 %1273  ;;  %4042 = vmatprep.subr.bf16.mxu1 %v4041_v24 }
 0x20f   :  { %1276 = vst.msk [vmem:[#allocation3 + $0x28] sm:$0xe] %vm1074_vm7, %v1274_v31  ;;  %v1072_v35 = vpop.permute.xlu1 %1071 }
 0x210   :  { %1075 = vst.msk [vmem:[#allocation3 + $0x20] sm:$0xe] %vm1074_vm7, %v1072_v35 }
 0x211   :  { %4044 = vmatpush3.bf16.msra.mxu1 %v4043_v30 }
 0x212   :  { %v1323_v39 = vpop.permute.xlu0 %1322  ;;  %4046 = vmatprep.subr.bf16.mxu1 %v4045_v32  ;;  %v1727_v35 = vld [vmem:[#allocation3 + $0x18] sm:$0xff] }
 0x213   :  { %1325 = vst.msk [vmem:[#allocation3 + $0x28] sm:$0xe] %vm1131_vm8, %v1323_v39  ;;  %v1129_v43 = vpop.permute.xlu1 %1128 }
 0x214   :  { %1132 = vst.msk [vmem:[#allocation3 + $0x20] sm:$0xe] %vm1131_vm8, %v1129_v43  ;;  %v1726_v36 = vld [vmem:[#allocation3 + $0x10] sm:$0xff]  ;;  %v2309_v43 = vld [vmem:[%s5770_s5 + $0x100] sm:$0xff] }
 0x215   :  { %4048 = vmatpush3.bf16.msra.mxu1 %v4047_v38 }
 0x216   :  { %v1372_v47 = vpop.permute.xlu0 %1371  ;;  %4050 = vmatprep.subr.bf16.mxu1 %v4049_v40 }
 0x217   :  { %1374 = vst.msk [vmem:[#allocation3 + $0x28] sm:$0xe] %vm1188_vm9, %v1372_v47  ;;  %v1186_v51 = vpop.permute.xlu1 %1185 }
 0x218   :  { %1189 = vst.msk [vmem:[#allocation3 + $0x20] sm:$0xe] %vm1188_vm9, %v1186_v51 }
 0x219   :  { %4052 = vmatpush3.bf16.msra.mxu1 %v4051_v46  ;;  %v2310_v46 = vld [vmem:[%s5770_s5 + $0x108] sm:$0xff] }
 0x21a   :  { %v1615_v55 = vpop.permute.xlu0 %1614  ;;  %4054 = vmatprep.subr.bf16.mxu1 %v4053_v48  ;;  %v4114_v47 = vpack.c.bf16 %v2310_v46, %v2309_v43  ;;  %v1987_v48 = vld [vmem:[%s5770_s5 + $0x50] sm:$0xff]  ;;  %v1979_v46 = vld [vmem:[%s5770_s5 + $0x20] sm:$0xff] }
 0x21b   :  { %1617 = vst.msk [vmem:[#allocation3 + $0x38] sm:$0xe] %vm1074_vm7, %v1615_v55  ;;  %v1282_v59 = vpop.permute.xlu1 %1281  ;;  %v4069_v51 = vpack.c.bf16 %v1988_v49, %v1987_v48  ;;  %v1990_v55 = vld [vmem:[%s5770_s5 + $0x68] sm:$0xff]  ;;  %v2481_v48 = vld [vmem:[%s5770_s5 + $0x1a0] sm:$0xff] }
 0x21c   :  { %1284 = vst.msk [vmem:[#allocation3 + $0x28] sm:$0x70] %vm1083_vm10, %v1282_v59  ;;  %4115 = vmatpush3.bf16.msra.mxu0 %v4114_v47  ;;  %v1991_v59 = vld [vmem:[%s5770_s5 + $0x70] sm:$0xff]  ;;  %v1980_v47 = vld [vmem:[%s5770_s5 + $0x28] sm:$0xff] }
 0x21d   :  { %4056 = vmatpush3.bf16.msra.mxu1 %v4055_v54  ;;  %4116 = vmatprep.subr.bf16.mxu0 %v4351_v44  ;;  %v1989_v54 = vld [vmem:[%s5770_s5 + $0x60] sm:$0xff]  ;;  %v4075_v1 = vpack.c.bf16 %v1992_v60, %v1991_v59  ;;  %v2482_v49 = vld [vmem:[%s5770_s5 + $0x1a8] sm:$0xff]  ;;  %v4084_v50 = vpack.c.bf16 %v1980_v47, %v1979_v46  ;;  %v2399_v46 = vld [vmem:[%s5770_s5 + $0x170] sm:$0xff] }
 0x21e   :  { %v1660_v63 = vpop.permute.xlu0 %1659  ;;  %4058 = vmatprep.subr.bf16.mxu1 %v4057_v56  ;;  %v2313_v56 = vld [vmem:[%s5770_s5 + $0x120] sm:$0xff]  ;;  %v4072_v57 = vpack.c.bf16 %v1990_v55, %v1989_v54  ;;  %v2483_v54 = vld [vmem:[%s5770_s5 + $0x1b0] sm:$0xff]  ;;  %v2484_v55 = vld [vmem:[%s5770_s5 + $0x1b8] sm:$0xff] }
 0x21f   :  { %1662 = vst.msk [vmem:[#allocation3 + $0x38] sm:$0xe] %vm1131_vm8, %v1660_v63  ;;  %v1331_v3 = vpop.permute.xlu1 %1330  ;;  %v2315_v63 = vld [vmem:[%s5770_s5 + $0x130] sm:$0xff]  ;;  %v2142_v59 = vld [vmem:[%s5770_s5 + $0x88] sm:$0xff]  ;;  %v2645_v60 = vld [vmem:[%s5770_s5 + $0x200] sm:$0xff] }
 0x220   :  { %1333 = vst.msk [vmem:[#allocation3 + $0x28] sm:$0x70] %vm1140_vm11, %v1331_v3  ;;  %4118 = vmatpush3.bf16.msra.mxu0 %v4117_v53  ;;  %v1982_v53 = vld [vmem:[%s5770_s5 + $0x38] sm:$0xff] }
 0x221   :  { %4060 = vmatpush3.bf16.msra.mxu1 %v4059_v62  ;;  %4119 = vmatprep.subr.bf16.mxu0 %v4351_v44  ;;  %v4120_v62 = vpack.c.bf16 %v2314_v58, %v2313_v56  ;;  %v4087_v56 = vpack.c.bf16 %v1982_v53, %v1981_v52  ;;  %v2141_v58 = vld [vmem:[%s5770_s5 + $0x80] sm:$0xff]  ;;  %v2400_v47 = vld [vmem:[%s5770_s5 + $0x178] sm:$0xff]  ;;  %v2563_v52 = vld [vmem:[%s5770_s5 + $0x1d0] sm:$0xff] }
 0x222   :  { %v1705_v5 = vpop.permute.xlu0 %1704  ;;  %4062 = vmatprep.subr.bf16.mxu1 %v4061_v0  ;;  %v2316_v0 = vld [vmem:[%s5770_s5 + $0x138] sm:$0xff] }
 0x223   :  { %1707 = vst.msk [vmem:[#allocation3 + $0x38] sm:$0xe] %vm1188_vm9, %v1705_v5  ;;  %v1380_v6 = vpop.permute.xlu1 %1379  ;;  %v4123_v2 = vpack.c.bf16 %v2316_v0, %v2315_v63  ;;  %v4090_v63 = vpack.c.bf16 %v2142_v59, %v2141_v58  ;;  %v2564_v53 = vld [vmem:[%s5770_s5 + $0x1d8] sm:$0xff]  ;;  %v2567_v59 = vld [vmem:[%s5770_s5 + $0x1f0] sm:$0xff] }
 0x224   :  { %1382 = vst.msk [vmem:[#allocation3 + $0x28] sm:$0x70] %vm1197_vm12, %v1380_v6  ;;  %4121 = vmatpush3.bf16.msra.mxu0 %v4120_v62  ;;  %v2646_v62 = vld [vmem:[%s5770_s5 + $0x208] sm:$0xff] }
 0x225   :  { %4064 = vmatpush3.bf16.msra.mxu1 %v4063_v4  ;;  %4122 = vmatprep.subr.bf16.mxu0 %v4351_v44  ;;  %v4162_v0 = vpack.c.bf16 %v2646_v62, %v2645_v60  ;;  %v2568_v60 = vld [vmem:[%s5770_s5 + $0x1f8] sm:$0xff] }
 0x226   :  { %v1081_v7 = vpop.permute.xlu0 %1080  ;;  %4065 = vmatprep.subr.bf16.mxu1 %v4351_v44  ;;  %v4159_v62 = vpack.c.bf16 %v2568_v60, %v2567_v59 }
 0x227   :  { %1084 = vst.msk [vmem:[#allocation3 + $0x20] sm:$0x70] %vm1083_vm10, %v1081_v7  ;;  %v1449_v8 = vpop.permute.xlu1 %1448 }
 0x228   :  { %1451 = vst.msk [vmem:[#allocation3 + $0x30] sm:$0xe] %vm1074_vm7, %v1449_v8  ;;  %4124 = vmatpush3.bf16.msra.mxu0 %v4123_v2  ;;  %v2144_v2 = vld [vmem:[%s5770_s5 + $0x98] sm:$0xff] }
 0x229   :  { %4137 = vmatprep.subr.bf16.mxu0 %v4351_v44 }
 0x22a   :  { %v1138_v9 = vpop.permute.xlu0 %1137 }
 0x22b   :  { %1141 = vst.msk [vmem:[#allocation3 + $0x20] sm:$0x70] %vm1140_vm11, %v1138_v9  ;;  %v1494_v10 = vpop.permute.xlu1 %1493 }
 0x22c   :  { %1496 = vst.msk [vmem:[#allocation3 + $0x30] sm:$0xe] %vm1131_vm8, %v1494_v10 }
 0x22e   :  { %v1195_v11 = vpop.permute.xlu0 %1194 }
 0x22f   :  { %1198 = vst.msk [vmem:[#allocation3 + $0x20] sm:$0x70] %vm1197_vm12, %v1195_v11  ;;  %v1539_v12 = vpop.permute.xlu1 %1538 }
 0x230   :  { %1541 = vst.msk [vmem:[#allocation3 + $0x30] sm:$0xe] %vm1188_vm9, %v1539_v12  ;;  %v3263_v12 = vld [vmem:[%s5769_s4] ss:$0 sm:$0xff] }
 0x232   :  { %v1290_v13 = vpop.permute.xlu0 %1289 }
 0x233   :  { %1292 = vst.msk [vmem:[#allocation3 + $0x28] sm:$0x80] %vm1092_vm13, %v1290_v13  ;;  %v1622_v14 = vpop.permute.xlu1 %1621 }
 0x234   :  { %1293 = vst.msk [vmem:[#allocation3 + $0x48] sm:$0x3] %vm1094_vm14, %v1290_v13 }
 0x235   :  { %1624 = vst.msk [vmem:[#allocation3 + $0x38] sm:$0x70] %vm1083_vm10, %v1622_v14 }
 0x236   :  { %v1339_v15 = vpop.permute.xlu0 %1338 }
 0x237   :  { %1341 = vst.msk [vmem:[#allocation3 + $0x28] sm:$0x80] %vm1149_vm15, %v1339_v15  ;;  %v1667_v16 = vpop.permute.xlu1 %1666 }
 0x238   :  { %1342 = vst.msk [vmem:[#allocation3 + $0x48] sm:$0x3] %vm1151_vm1, %v1339_v15 }
 0x239   :  { %1669 = vst.msk [vmem:[#allocation3 + $0x38] sm:$0x70] %vm1140_vm11, %v1667_v16 }
 0x23a   :  { %v1388_v17 = vpop.permute.xlu0 %1387 }
 0x23b   :  { %1390 = vst.msk [vmem:[#allocation3 + $0x28] sm:$0x80] %vm1206_vm2, %v1388_v17  ;;  %v1712_v18 = vpop.permute.xlu1 %1711 }
 0x23c   :  { %1391 = vst.msk [vmem:[#allocation3 + $0x48] sm:$0x3] %vm1208_vm3, %v1388_v17 }
 0x23d   :  { %1714 = vst.msk [vmem:[#allocation3 + $0x38] sm:$0x70] %vm1197_vm12, %v1712_v18 }
 0x23e   :  { %v1456_v19 = vpop.permute.xlu0 %1455 }
 0x23f   :  { %1458 = vst.msk [vmem:[#allocation3 + $0x30] sm:$0x70] %vm1083_vm10, %v1456_v19  ;;  %v1090_v20 = vpop.permute.xlu1 %1089 }
 0x240   :  { %1093 = vst.msk [vmem:[#allocation3 + $0x20] sm:$0x80] %vm1092_vm13, %v1090_v20 }
 0x241   :  { %1095 = vst.msk [vmem:[#allocation3 + $0x40] sm:$0x3] %vm1094_vm14, %v1090_v20 }
 0x242   :  { %v1501_v21 = vpop.permute.xlu0 %1500  ;;  %v1729_v22 = vld [vmem:[#allocation3 + $0x28] sm:$0xff] }
 0x243   :  { %1503 = vst.msk [vmem:[#allocation3 + $0x30] sm:$0x70] %vm1140_vm11, %v1501_v21  ;;  %1876 = vmatprep.mubr.f32.mxu1 %v1729_v22  ;;  %v1147_v23 = vpop.permute.xlu1 %1146  ;;  %v1733_v31 = vld [vmem:[#allocation3 + $0x48] sm:$0x3] }
 0x244   :  { %1150 = vst.msk [vmem:[#allocation3 + $0x20] sm:$0x80] %vm1149_vm15, %v1147_v23 }
 0x245   :  { %1152 = vst.msk [vmem:[#allocation3 + $0x40] sm:$0x3] %vm1151_vm1, %v1147_v23 }
 0x246   :  { %v1630_v24 = vpop.permute.xlu0 %1629 }
 0x247   :  { %1632 = vst.msk [vmem:[#allocation3 + $0x38] sm:$0x80] %vm1092_vm13, %v1630_v24  ;;  %v1204_v25 = vpop.permute.xlu1 %1203 }
 0x248   :  { %1633 = vst.msk [vmem:[#allocation3 + $0x58] sm:$0x3] %vm1094_vm14, %v1630_v24 }
 0x249   :  { %1207 = vst.msk [vmem:[#allocation3 + $0x20] sm:$0x80] %vm1206_vm2, %v1204_v25 }
 0x24a   :  { %1209 = vst.msk [vmem:[#allocation3 + $0x40] sm:$0x3] %vm1208_vm3, %v1204_v25  ;;  %v1675_v26 = vpop.permute.xlu0 %1674 }
 0x24b   :  { %1677 = vst.msk [vmem:[#allocation3 + $0x38] sm:$0x80] %vm1149_vm15, %v1675_v26  ;;  %v1464_v27 = vpop.permute.xlu1 %1463 }
 0x24c   :  { %1678 = vst.msk [vmem:[#allocation3 + $0x58] sm:$0x3] %vm1151_vm1, %v1675_v26 }
 0x24d   :  { %1466 = vst.msk [vmem:[#allocation3 + $0x30] sm:$0x80] %vm1092_vm13, %v1464_v27 }
 0x24e   :  { %1467 = vst.msk [vmem:[#allocation3 + $0x50] sm:$0x3] %vm1094_vm14, %v1464_v27  ;;  %v1720_v28 = vpop.permute.xlu0 %1719 }
 0x24f   :  { %1722 = vst.msk [vmem:[#allocation3 + $0x38] sm:$0x80] %vm1206_vm2, %v1720_v28  ;;  %v1509_v29 = vpop.permute.xlu1 %1508 }
 0x250   :  { %1723 = vst.msk [vmem:[#allocation3 + $0x58] sm:$0x3] %vm1208_vm3, %v1720_v28  ;;  %v1728_v30 = vld [vmem:[#allocation3 + $0x20] sm:$0xff] }
 0x251   :  { %1511 = vst.msk [vmem:[#allocation3 + $0x30] sm:$0x80] %vm1149_vm15, %v1509_v29  ;;  %1877 = vmatmul.mubr.f32.gmra.mrb[2].mxu1 %v1728_v30  ;;  %v1732_v34 = vld [vmem:[#allocation3 + $0x40] sm:$0x3] }
 0x252   :  { %1512 = vst.msk [vmem:[#allocation3 + $0x50] sm:$0x3] %vm1151_vm1, %v1509_v29  ;;  %1881 = vmatprep.mubr.f32.mxu1 %v1733_v31  ;;  %v1546_v32 = vpop.permute.xlu0 %1545  ;;  %v1975_v30 = vld [vmem:[%s5770_s5] sm:$0xff] }
 0x253   :  { %1548 = vst.msk [vmem:[#allocation3 + $0x30] sm:$0x70] %vm1197_vm12, %v1546_v32  ;;  %v1554_v33 = vpop.permute.xlu1 %1553  ;;  %v1976_v32 = vld [vmem:[%s5770_s5 + $0x8] sm:$0xff] }
 0x254   :  { %1556 = vst.msk [vmem:[#allocation3 + $0x30] sm:$0x80] %vm1206_vm2, %v1554_v33 }
 0x255   :  { %1557 = vst.msk [vmem:[#allocation3 + $0x50] sm:$0x3] %vm1208_vm3, %v1554_v33  ;;  %1882 = vmatmul.mubr.f32.gmra.mrb[4].mxu1 %v1732_v34  ;;  %v2477_v33 = vld [vmem:[%s5770_s5 + $0x180] sm:$0xff]  ;;  %v2478_v34 = vld [vmem:[%s5770_s5 + $0x188] sm:$0xff] }
 0x256   :  { %1951 = vmatprep.mubr.f32.mxu1 %v1727_v35  ;;  %v1731_v37 = vld [vmem:[#allocation3 + $0x38] sm:$0xff]  ;;  %v4078_v35 = vpack.c.bf16 %v1976_v32, %v1975_v30  ;;  %v2230_v30 = vld [vmem:[%s5770_s5 + $0xe8] sm:$0xff]  ;;  %v2231_v32 = vld [vmem:[%s5770_s5 + $0xf0] sm:$0xff] }
 0x257   :  { %v1735_v39 = vld [vmem:[#allocation3 + $0x58] sm:$0x3] }
 0x259   :  { %1952 = vmatmul.mubr.f32.vlgmr.msra.gmra.mrb[6].mxu1 %v1726_v36  ;;  %v4138_v36 = vpack.c.bf16 %v2478_v34, %v2477_v33  ;;  %v2232_v33 = vld [vmem:[%s5770_s5 + $0xf8] sm:$0xff] }
 0x25a   :  { %1956 = vmatprep.mubr.f32.mxu1 %v1731_v37  ;;  %4067 = vmatpush3.bf16.msra.mxu1 %v4066_v45  ;;  %v1977_v37 = vld [vmem:[%s5770_s5 + $0x10] sm:$0xff]  ;;  %v4111_v34 = vpack.c.bf16 %v2232_v33, %v2231_v32  ;;  %v2761_v33 = vld [vmem:[%s5772_s7 + $0xc8] sm:$0xff] }
 0x25b   :  { %v1730_v38 = vld [vmem:[#allocation3 + $0x30] sm:$0xff]  ;;  %4068 = vmatprep.subr.bf16.mxu1 %v4351_v44 }
 0x25c   :  { %v1734_v40 = vld [vmem:[#allocation3 + $0x50] sm:$0x3] }
 0x25d   :  { %1957 = vmatmul.mubr.f32.gmra.mrb[8].mxu1 %v1730_v38  ;;  %v1978_v38 = vld [vmem:[%s5770_s5 + $0x18] sm:$0xff]  ;;  %v2758_v32 = vld [vmem:[%s5772_s7 + $0xb0] sm:$0xff] }
 0x25e   :  { %1961 = vmatprep.mubr.f32.mxu1 %v1735_v39  ;;  %4070 = vmatpush3.bf16.msra.mxu1 %v4069_v51  ;;  %v2479_v39 = vld [vmem:[%s5770_s5 + $0x190] sm:$0xff]  ;;  %v4081_v43 = vpack.c.bf16 %v1978_v38, %v1977_v37  ;;  %v4144_v51 = vpack.c.bf16 %v2482_v49, %v2481_v48  ;;  %v4135_v48 = vpack.c.bf16 %v2400_v47, %v2399_v46  ;;  %v2561_v49 = vld [vmem:[%s5770_s5 + $0x1c0] sm:$0xff]  ;;  %v2956_v47 = vld [vmem:[%s5774_s9 + $0x88] sm:$0xff] }
 0x25f   :  { %4071 = vmatprep.subr.bf16.mxu1 %v4351_v44  ;;  %v2395_v38 = vld [vmem:[%s5770_s5 + $0x150] sm:$0xff]  ;;  %v2955_v46 = vld [vmem:[%s5774_s9 + $0x80] sm:$0xff] }
 0x261   :  { %1962 = vmatmul.mubr.f32.gmra.mrb[10].mxu1 %v1734_v40  ;;  %v2480_v40 = vld [vmem:[%s5770_s5 + $0x198] sm:$0xff] }
 0x262   :  { %3782 = vmatprep.mubr.msk.f32.mxu1 %vm4352_vm4, %v4353_v61  ;;  %4073 = vmatpush3.bf16.msra.mxu1 %v4072_v57  ;;  %v4141_v45 = vpack.c.bf16 %v2480_v40, %v2479_v39  ;;  %v4147_v57 = vpack.c.bf16 %v2484_v55, %v2483_v54  ;;  %v2396_v39 = vld [vmem:[%s5770_s5 + $0x158] sm:$0xff]  ;;  %v4153_v55 = vpack.c.bf16 %v2564_v53, %v2563_v52 }
 0x263   :  { %4074 = vmatprep.subr.bf16.mxu1 %v4351_v44 }
 0x266   :  { %4076 = vmatpush3.bf16.msra.mxu1 %v4075_v1  ;;  %v2143_v1 = vld [vmem:[%s5770_s5 + $0x90] sm:$0xff] }
 0x267   :  { %4077 = vmatprep.subr.bf16.mxu1 %v4351_v44 }
 0x2db   :  { %v3405_v3 = vpop.f32.mrb[0].mxu1 }
 0x2dc   :  { %v3406_v4 = vpop.f32.mrb[1].mxu1 }
 0x2dd   :  { %v3407_v5 = vadd.f32 %v3406_v4, %v3405_v3  ;;  %v2647_v3 = vld [vmem:[%s5770_s5 + $0x210] sm:$0xff]  ;;  %v2648_v4 = vld [vmem:[%s5770_s5 + $0x218] sm:$0xff] }
 0x2df   :  { %v1874_v15 = vadd.f32 %v3407_v5, %v3263_v12 }
 0x324   :  { %v3408_v6 = vpop.f32.mrb[2].mxu1 }
 0x325   :  { %v3409_v7 = vpop.f32.mrb[3].mxu1 }
 0x326   :  { %v3410_v8 = vadd.f32 %v3409_v7, %v3408_v6  ;;  %v4093_v7 = vpack.c.bf16 %v2144_v2, %v2143_v1  ;;  %v2741_v1 = vld [vmem:[%s5772_s7 + $0x28] sm:$0xff]  ;;  %v2739_v2 = vld [vmem:[%s5772_s7 + $0x18] sm:$0xff] }
 0x328   :  { %v3411_v9 = vpop.f32.mrb[4].mxu1  ;;  %v1879_v20 = vadd.f32 %v3410_v8, %v3263_v12  ;;  %v4165_v8 = vpack.c.bf16 %v2648_v4, %v2647_v3  ;;  %v2740_v4 = vld [vmem:[%s5772_s7 + $0x20] sm:$0xff] }
 0x329   :  { %v3412_v10 = vpop.f32.mrb[5].mxu1 }
 0x32a   :  { %v3413_v11 = vadd.f32 %v3412_v10, %v3411_v9  ;;  %v2145_v9 = vld [vmem:[%s5770_s5 + $0xa0] sm:$0xff]  ;;  %v2146_v10 = vld [vmem:[%s5770_s5 + $0xa8] sm:$0xff] }
 0x32c   :  { %v3446_v13 = vpop.f32.mrb[6].mxu1  ;;  %v1884_v26 = vadd.f32 %v3413_v11, %v3263_v12  ;;  %v2649_v11 = vld [vmem:[%s5770_s5 + $0x220] sm:$0xff]  ;;  %v2650_v12 = vld [vmem:[%s5770_s5 + $0x228] sm:$0xff] }
 0x32d   :  { %v3447_v14 = vpop.f32.mrb[7].mxu1 }
 0x32e   :  { %v3448_v16 = vadd.f32 %v3447_v14, %v3446_v13  ;;  %v4096_v13 = vpack.c.bf16 %v2146_v10, %v2145_v9  ;;  %v4168_v14 = vpack.c.bf16 %v2650_v12, %v2649_v11  ;;  %v2745_v9 = vld [vmem:[%s5772_s7 + $0x48] sm:$0xff]  ;;  %v2747_v12 = vld [vmem:[%s5772_s7 + $0x58] sm:$0xff] }
 0x32f   :  { %v2749_v11 = vld [vmem:[%s5772_s7 + $0x68] sm:$0xff] }
 0x330   :  { %v1954_v17 = vadd.f32 %v3448_v16, %v1874_v15  ;;  %v3449_v18 = vpop.f32.mrb[8].mxu1  ;;  %v2147_v15 = vld [vmem:[%s5770_s5 + $0xb0] sm:$0xff]  ;;  %v2148_v16 = vld [vmem:[%s5770_s5 + $0xb8] sm:$0xff] }
 0x331   :  { %v3450_v19 = vpop.f32.mrb[9].mxu1 }
 0x332   :  { %v1967_v21 = vmax.f32 %v1954_v17, 0.0  ;;  %v3451_v22 = vadd.f32 %v3450_v19, %v3449_v18  ;;  %v2651_v17 = vld [vmem:[%s5770_s5 + $0x230] sm:$0xff]  ;;  %v2652_v18 = vld [vmem:[%s5770_s5 + $0x238] sm:$0xff]  ;;  %v4099_v19 = vpack.c.bf16 %v2148_v16, %v2147_v15  ;;  %v2744_v16 = vld [vmem:[%s5772_s7 + $0x40] sm:$0xff] }
 0x334   :  { %1970 = vst.msk [vmem:[#allocation4] sm:$0xff] %vm87_vm0, %v1967_v21  ;;  %v1959_v23 = vadd.f32 %v3451_v22, %v1879_v20  ;;  %v3452_v24 = vpop.f32.mrb[10].mxu1  ;;  %v4171_v20 = vpack.c.bf16 %v2652_v18, %v2651_v17  ;;  %v2225_v21 = vld [vmem:[%s5770_s5 + $0xc0] sm:$0xff]  ;;  %v2226_v22 = vld [vmem:[%s5770_s5 + $0xc8] sm:$0xff]  ;;  %v2746_v18 = vld [vmem:[%s5772_s7 + $0x50] sm:$0xff] }
 0x335   :  { %v3453_v25 = vpop.f32.mrb[11].mxu1  ;;  %v2748_v17 = vld [vmem:[%s5772_s7 + $0x60] sm:$0xff] }
 0x336   :  { %v1968_v27 = vmax.f32 %v1959_v23, 0.0  ;;  %v3454_v28 = vadd.f32 %v3453_v25, %v3452_v24  ;;  %v4102_v23 = vpack.c.bf16 %v2226_v22, %v2225_v21  ;;  %v2227_v24 = vld [vmem:[%s5770_s5 + $0xd0] sm:$0xff]  ;;  %v2228_v25 = vld [vmem:[%s5770_s5 + $0xd8] sm:$0xff]  ;;  %v2753_v22 = vld [vmem:[%s5772_s7 + $0x88] sm:$0xff] }
 0x338   :  { %1971 = vst.msk [vmem:[#allocation4 + $0x8] sm:$0xff] %vm87_vm0, %v1968_v27  ;;  %v1964_v29 = vadd.f32 %v3454_v28, %v1884_v26  ;;  %v4105_v28 = vpack.c.bf16 %v2228_v25, %v2227_v24  ;;  %v2755_v24 = vld [vmem:[%s5772_s7 + $0x98] sm:$0xff] }
 0x33a   :  { %v1969_v31 = vmax.f32 %v1964_v29, 0.0  ;;  %v2229_v29 = vld [vmem:[%s5770_s5 + $0xe0] sm:$0xff] }
 0x33c   :  { %1973 = vst.msk [vmem:[#allocation4 + $0x10] sm:$0x3] %vm1972_vm5, %v1969_v31  ;;  %v4108_v31 = vpack.c.bf16 %v2230_v30, %v2229_v29 }
 0x33f   :  { %v1984_v41 = vld [vmem:[#allocation4 + $0x1] ss:$9 sm:$0x3]  ;;  %v2308_v42 = vld [vmem:[#allocation4 + $0x4] ss:$9 sm:$0x3] }
 0x340   :  { %3783 = vmatmul.mubr.msk.f32.vlgmr.msra.gmra.mrb[12].mxu1 %vm87_vm0, %v1984_v41  ;;  %3859 = vmatmul.mubr.msk.f32.vlgmr.msra.gmra.mrb[16].mxu0 %vm87_vm0, %v2308_v42  ;;  %v1974_v5 = vld [vmem:[#allocation4] ss:$9 sm:$0x3]  ;;  %v2476_v6 = vld [vmem:[#allocation4 + $0x6] ss:$9 sm:$0x3]  ;;  %v4129_v41 = vpack.c.bf16 %v2396_v39, %v2395_v38 }
 0x341   :  { %4079 = vmatpush3.bf16.msra.mxu1 %v4078_v35  ;;  %4139 = vmatpush3.bf16.msra.mxu0 %v4138_v36  ;;  %v2140_v26 = vld [vmem:[#allocation4 + $0x2] ss:$9 sm:$0x3]  ;;  %v2224_v40 = vld [vmem:[#allocation4 + $0x3] ss:$9 sm:$0x3] }
 0x342   :  { %4080 = vmatprep.subr.bf16.mxu1 %v4351_v44  ;;  %4140 = vmatprep.subr.bf16.mxu0 %v4351_v44  ;;  %v2393_v35 = vld [vmem:[%s5770_s5 + $0x140] sm:$0xff]  ;;  %v2394_v36 = vld [vmem:[%s5770_s5 + $0x148] sm:$0xff] }
 0x343   :  { %3801 = vmatprep.mubr.msk.f32.mxu1 %vm4352_vm4, %v4353_v61  ;;  %3896 = vmatprep.mubr.msk.f32.mxu0 %vm4352_vm4, %v4353_v61  ;;  %v2644_v27 = vld [vmem:[#allocation4 + $0x8] ss:$9 sm:$0x3]  ;;  %v4126_v37 = vpack.c.bf16 %v2394_v36, %v2393_v35  ;;  %v2397_v42 = vld [vmem:[%s5770_s5 + $0x160] sm:$0xff]  ;;  %v2763_v36 = vld [vmem:[%s5772_s7 + $0xd8] sm:$0xff] }
 0x344   :  { %v2392_v54 = vld [vmem:[#allocation4 + $0x5] ss:$9 sm:$0x3] }
 0x345   :  { %4082 = vmatpush3.bf16.msra.mxu1 %v4081_v43  ;;  %4142 = vmatpush3.bf16.msra.mxu0 %v4141_v45  ;;  %v2398_v43 = vld [vmem:[%s5770_s5 + $0x168] sm:$0xff] }
 0x346   :  { %4083 = vmatprep.subr.bf16.mxu1 %v4351_v44  ;;  %4143 = vmatprep.subr.bf16.mxu0 %v4351_v44  ;;  %v4132_v45 = vpack.c.bf16 %v2398_v43, %v2397_v42  ;;  %v2765_v35 = vld [vmem:[%s5772_s7 + $0xe8] sm:$0xff]  ;;  %v2762_v42 = vld [vmem:[%s5772_s7 + $0xd0] sm:$0xff] }
 0x347   :  { %v4185_v38 = vpack.c.bf16 %v2765_v35, %v2761_v33  ;;  %v2959_v33 = vld [vmem:[%s5774_s9 + $0xa0] sm:$0xff] }
 0x348   :  { %v2991_v35 = vld [vmem:[%s5774_s9 + $0x1a0] sm:$0xff] }
 0x349   :  { %4085 = vmatpush3.bf16.msra.mxu1 %v4084_v50  ;;  %4145 = vmatpush3.bf16.msra.mxu0 %v4144_v51  ;;  %v2562_v50 = vld [vmem:[%s5770_s5 + $0x1c8] sm:$0xff] }
 0x34a   :  { %4086 = vmatprep.subr.bf16.mxu1 %v4351_v44  ;;  %4146 = vmatprep.subr.bf16.mxu0 %v4351_v44  ;;  %v4150_v51 = vpack.c.bf16 %v2562_v50, %v2561_v49  ;;  %v4205_v49 = vpack.c.bf16 %v2956_v47, %v2955_v46  ;;  %v2987_v50 = vld [vmem:[%s5774_s9 + $0x180] sm:$0xff]  ;;  %v2961_v46 = vld [vmem:[%s5774_s9 + $0xb0] sm:$0xff]  ;;  %v2962_v47 = vld [vmem:[%s5774_s9 + $0xb8] sm:$0xff] }
 0x34d   :  { %4088 = vmatpush3.bf16.msra.mxu1 %v4087_v56  ;;  %4148 = vmatpush3.bf16.msra.mxu0 %v4147_v57  ;;  %v2565_v56 = vld [vmem:[%s5770_s5 + $0x1e0] sm:$0xff]  ;;  %v2566_v57 = vld [vmem:[%s5770_s5 + $0x1e8] sm:$0xff] }
 0x34e   :  { %4089 = vmatprep.subr.bf16.mxu1 %v4351_v44  ;;  %4161 = vmatprep.subr.bf16.mxu0 %v4351_v44  ;;  %v4156_v58 = vpack.c.bf16 %v2566_v57, %v2565_v56 }
 0x350   :  { %3802 = vmatmul.mubr.msk.f32.vlgmr.msra.gmra.mrb[14].mxu1 %vm87_vm0, %v1974_v5  ;;  %3897 = vmatmul.mubr.msk.f32.vlgmr.msra.gmra.mrb[18].mxu0 %vm87_vm0, %v2476_v6 }
 0x351   :  { %4091 = vmatpush3.bf16.msra.mxu1 %v4090_v63  ;;  %4163 = vmatpush3.bf16.msra.mxu0 %v4162_v0  ;;  %v2560_v63 = vld [vmem:[#allocation4 + $0x7] ss:$9 sm:$0x3]  ;;  %v2737_v0 = vld [vmem:[%s5772_s7 + $0x8] sm:$0xff] }
 0x352   :  { %4092 = vmatprep.subr.bf16.mxu1 %v4351_v44  ;;  %4164 = vmatprep.subr.bf16.mxu0 %v4351_v44  ;;  %v4173_v3 = vpack.c.bf16 %v2741_v1, %v2737_v0 }
 0x353   :  { %3820 = vmatprep.mubr.msk.f32.mxu1 %vm4352_vm4, %v4353_v61  ;;  %3934 = vmatprep.mubr.msk.f32.mxu0 %vm4352_vm4, %v4353_v61 }
 0x355   :  { %4094 = vmatpush3.bf16.msra.mxu1 %v4093_v7  ;;  %4166 = vmatpush3.bf16.msra.mxu0 %v4165_v8  ;;  %v2738_v7 = vld [vmem:[%s5772_s7 + $0x10] sm:$0xff] }
 0x356   :  { %4095 = vmatprep.subr.bf16.mxu1 %v4351_v44  ;;  %4167 = vmatprep.subr.bf16.mxu0 %v4351_v44  ;;  %v2742_v8 = vld [vmem:[%s5772_s7 + $0x30] sm:$0xff] }
 0x357   :  { %v4191_v10 = vpack.c.bf16 %v2742_v8, %v2738_v7 }
 0x359   :  { %4097 = vmatpush3.bf16.msra.mxu1 %v4096_v13  ;;  %4169 = vmatpush3.bf16.msra.mxu0 %v4168_v14  ;;  %v2751_v13 = vld [vmem:[%s5772_s7 + $0x78] sm:$0xff]  ;;  %v4177_v14 = vpack.c.bf16 %v2749_v11, %v2745_v9 }
 0x35a   :  { %4098 = vmatprep.subr.bf16.mxu1 %v4351_v44  ;;  %4170 = vmatprep.subr.bf16.mxu0 %v4351_v44  ;;  %v4193_v15 = vpack.c.bf16 %v2751_v13, %v2747_v12  ;;  %v3273_v13 = vld [vmem:[%s5771_s6] ss:$0 sm:$0xff] }
 0x35d   :  { %4100 = vmatpush3.bf16.msra.mxu1 %v4099_v19  ;;  %4172 = vmatpush3.bf16.msra.mxu0 %v4171_v20  ;;  %v4179_v19 = vpack.c.bf16 %v2748_v17, %v2744_v16  ;;  %v2750_v20 = vld [vmem:[%s5772_s7 + $0x70] sm:$0xff]  ;;  %v2971_v17 = vld [vmem:[%s5774_s9 + $0x100] sm:$0xff] }
 0x35e   :  { %4101 = vmatprep.subr.bf16.mxu1 %v4351_v44  ;;  %v4195_v21 = vpack.c.bf16 %v2750_v20, %v2746_v18  ;;  %v2972_v18 = vld [vmem:[%s5774_s9 + $0x108] sm:$0xff]  ;;  %v2958_v20 = vld [vmem:[%s5774_s9 + $0x98] sm:$0xff] }
 0x360   :  { %3821 = vmatmul.mubr.msk.f32.vlgmr.msra.gmra.mrb[16].mxu1 %vm87_vm0, %v2140_v26  ;;  %3935 = vmatmul.mubr.msk.f32.vlgmr.msra.gmra.mrb[20].mxu0 %vm87_vm0, %v2644_v27  ;;  %v2759_v26 = vld [vmem:[%s5772_s7 + $0xb8] sm:$0xff]  ;;  %v2752_v27 = vld [vmem:[%s5772_s7 + $0x80] sm:$0xff] }
 0x361   :  { %4103 = vmatpush3.bf16.msra.mxu1 %v4102_v23  ;;  %3839 = vmatprep.mubr.msk.f32.mxu1 %vm4352_vm4, %v4353_v61  ;;  %v2757_v23 = vld [vmem:[%s5772_s7 + $0xa8] sm:$0xff]  ;;  %v4197_v29 = vpack.c.bf16 %v2759_v26, %v2755_v24  ;;  %v2941_v26 = vld [vmem:[%s5774_s9 + $0x10] sm:$0xff] }
 0x362   :  { %4104 = vmatprep.subr.bf16.mxu1 %v4351_v44  ;;  %2928 = vmatprep.mubr.f32.mxu0 %v4353_v61  ;;  %v4181_v25 = vpack.c.bf16 %v2757_v23, %v2753_v22  ;;  %v2990_v22 = vld [vmem:[%s5774_s9 + $0x198] sm:$0xff] }
 0x365   :  { %4106 = vmatpush3.bf16.msra.mxu1 %v4105_v28  ;;  %v2756_v28 = vld [vmem:[%s5772_s7 + $0xa0] sm:$0xff] }
 0x366   :  { %4107 = vmatprep.subr.bf16.mxu1 %v4351_v44  ;;  %v4183_v30 = vpack.c.bf16 %v2756_v28, %v2752_v27  ;;  %v2942_v27 = vld [vmem:[%s5774_s9 + $0x18] sm:$0xff] }
 0x369   :  { %4109 = vmatpush3.bf16.msra.mxu1 %v4108_v31  ;;  %v2754_v31 = vld [vmem:[%s5772_s7 + $0x90] sm:$0xff] }
 0x36a   :  { %4110 = vmatprep.subr.bf16.mxu1 %v4351_v44 }
 0x36d   :  { %4112 = vmatpush3.bf16.msra.mxu1 %v4111_v34  ;;  %v4199_v34 = vpack.c.bf16 %v2758_v32, %v2754_v31  ;;  %v2973_v31 = vld [vmem:[%s5774_s9 + $0x110] sm:$0xff]  ;;  %v2974_v32 = vld [vmem:[%s5774_s9 + $0x118] sm:$0xff] }
 0x36e   :  { %4125 = vmatprep.subr.bf16.mxu1 %v4351_v44 }
 0x370   :  { %3840 = vmatmul.mubr.msk.f32.vlgmr.msra.gmra.mrb[18].mxu1 %vm87_vm0, %v2224_v40  ;;  %v2760_v40 = vld [vmem:[%s5772_s7 + $0xc0] sm:$0xff] }
 0x371   :  { %4127 = vmatpush3.bf16.msra.mxu1 %v4126_v37  ;;  %3877 = vmatprep.mubr.msk.f32.mxu1 %vm4352_vm4, %v4353_v61  ;;  %v2767_v37 = vld [vmem:[%s5772_s7 + $0xf8] sm:$0xff] }
 0x372   :  { %4128 = vmatprep.subr.bf16.mxu1 %v4351_v44  ;;  %v4201_v39 = vpack.c.bf16 %v2767_v37, %v2763_v36  ;;  %v2992_v36 = vld [vmem:[%s5774_s9 + $0x1a8] sm:$0xff]  ;;  %v4211_v37 = vpack.c.bf16 %v2942_v27, %v2941_v26  ;;  %v2983_v27 = vld [vmem:[%s5774_s9 + $0x160] sm:$0xff] }
 0x373   :  { %v2952_v26 = vld [vmem:[%s5774_s9 + $0x68] sm:$0xff] }
 0x375   :  { %4130 = vmatpush3.bf16.msra.mxu1 %v4129_v41  ;;  %v2764_v41 = vld [vmem:[%s5772_s7 + $0xe0] sm:$0xff] }
 0x376   :  { %4131 = vmatprep.subr.bf16.mxu1 %v4351_v44  ;;  %v4187_v43 = vpack.c.bf16 %v2764_v41, %v2760_v40  ;;  %v2944_v40 = vld [vmem:[%s5774_s9 + $0x28] sm:$0xff] }
 0x379   :  { %4133 = vmatpush3.bf16.msra.mxu1 %v4132_v45  ;;  %v2766_v45 = vld [vmem:[%s5772_s7 + $0xf0] sm:$0xff] }
 0x37a   :  { %4134 = vmatprep.subr.bf16.mxu1 %v4351_v44 }
 0x37d   :  { %4136 = vmatpush3.bf16.msra.mxu1 %v4135_v48  ;;  %v4203_v48 = vpack.c.bf16 %v2766_v45, %v2762_v42  ;;  %v4245_v42 = vpack.c.bf16 %v2992_v36, %v2991_v35  ;;  %v2976_v45 = vld [vmem:[%s5774_s9 + $0x128] sm:$0xff]  ;;  %v3002_v35 = vld [vmem:[%s5774_s9 + $0x1f8] sm:$0xff]  ;;  %v2953_v36 = vld [vmem:[%s5774_s9 + $0x70] sm:$0xff] }
 0x37e   :  { %4149 = vmatprep.subr.bf16.mxu1 %v4351_v44 }
 0x380   :  { %3878 = vmatmul.mubr.msk.f32.vlgmr.msra.gmra.mrb[20].mxu1 %vm87_vm0, %v2392_v54 }
 0x381   :  { %4151 = vmatpush3.bf16.msra.mxu1 %v4150_v51  ;;  %3915 = vmatprep.mubr.msk.f32.mxu1 %vm4352_vm4, %v4353_v61  ;;  %v2988_v51 = vld [vmem:[%s5774_s9 + $0x188] sm:$0xff] }
 0x382   :  { %4152 = vmatprep.subr.bf16.mxu1 %v4351_v44  ;;  %v4237_v52 = vpack.c.bf16 %v2988_v51, %v2987_v50 }
 0x385   :  { %4154 = vmatpush3.bf16.msra.mxu1 %v4153_v55 }
 0x386   :  { %4155 = vmatprep.subr.bf16.mxu1 %v4351_v44 }
 0x389   :  { %4157 = vmatpush3.bf16.msra.mxu1 %v4156_v58 }
 0x38a   :  { %4158 = vmatprep.subr.bf16.mxu1 %v4351_v44  ;;  %v2743_v44 = vld [vmem:[%s5772_s7 + $0x38] sm:$0xff] }
 0x38b   :  { %v4189_v5 = vpack.c.bf16 %v2743_v44, %v2739_v2 }
 0x38d   :  { %4160 = vmatpush3.bf16.msra.mxu1 %v4159_v62  ;;  %4190 = vmatprep.subr.bf16.mxu0 %v4189_v5 }
 0x38e   :  { %4174 = vmatprep.subr.bf16.mxu1 %v4173_v3  ;;  %4192 = vmatpush1.bf16.msra.mxu0 %v4191_v10 }
 0x38f   :  { %4194 = vmatprep.subr.bf16.mxu0 %v4193_v15  ;;  %v2940_v15 = vld [vmem:[%s5774_s9 + $0x8] sm:$0xff] }
 0x390   :  { %3916 = vmatmul.mubr.msk.f32.vlgmr.msra.gmra.mrb[22].mxu1 %vm87_vm0, %v2560_v63 }
 0x391   :  { %2857 = vmatprep.mubr.f32.mxu1 %v4353_v61  ;;  %v2736_v61 = vld [vmem:[%s5772_s7] sm:$0xff] }
 0x392   :  { %v4175_v6 = vpack.c.bf16 %v2740_v4, %v2736_v61  ;;  %4196 = vmatpush1.bf16.msra.mxu0 %v4195_v21  ;;  %v2989_v21 = vld [vmem:[%s5774_s9 + $0x190] sm:$0xff] }
 0x393   :  { %4198 = vmatprep.subr.bf16.mxu0 %v4197_v29 }
 0x394   :  { %4176 = vmatpush1.bf16.msra.mxu1 %v4175_v6 }
 0x395   :  { %4178 = vmatprep.subr.bf16.mxu1 %v4177_v14  ;;  %v2939_v14 = vld [vmem:[%s5774_s9] sm:$0xff] }
 0x396   :  { %4200 = vmatpush1.bf16.msra.mxu0 %v4199_v34  ;;  %v4207_v24 = vpack.c.bf16 %v2940_v15, %v2939_v14  ;;  %v2960_v34 = vld [vmem:[%s5774_s9 + $0xa8] sm:$0xff]  ;;  %v2981_v15 = vld [vmem:[%s5774_s9 + $0x150] sm:$0xff] }
 0x397   :  { %4202 = vmatprep.subr.bf16.mxu0 %v4201_v39  ;;  %v2943_v39 = vld [vmem:[%s5774_s9 + $0x20] sm:$0xff]  ;;  %v4213_v41 = vpack.c.bf16 %v2960_v34, %v2959_v33  ;;  %v3001_v34 = vld [vmem:[%s5774_s9 + $0x1f0] sm:$0xff] }
 0x398   :  { %4180 = vmatpush1.bf16.msra.mxu1 %v4179_v19  ;;  %v2957_v19 = vld [vmem:[%s5774_s9 + $0x90] sm:$0xff]  ;;  %v4215_v50 = vpack.c.bf16 %v2944_v40, %v2943_v39  ;;  %v2986_v40 = vld [vmem:[%s5774_s9 + $0x178] sm:$0xff] }
 0x399   :  { %4182 = vmatprep.subr.bf16.mxu1 %v4181_v25  ;;  %v4239_v25 = vpack.c.bf16 %v2972_v18, %v2971_v17  ;;  %v4209_v29 = vpack.c.bf16 %v2958_v20, %v2957_v19  ;;  %v2967_v17 = vld [vmem:[%s5774_s9 + $0xe0] sm:$0xff]  ;;  %v2968_v18 = vld [vmem:[%s5774_s9 + $0xe8] sm:$0xff]  ;;  %v2985_v39 = vld [vmem:[%s5774_s9 + $0x170] sm:$0xff] }
 0x39a   :  { %4204 = vmatpush1.bf16.msra.mxu0 %v4203_v48  ;;  %v2993_v48 = vld [vmem:[%s5774_s9 + $0x1b0] sm:$0xff]  ;;  %v2999_v19 = vld [vmem:[%s5774_s9 + $0x1e0] sm:$0xff]  ;;  %v3000_v20 = vld [vmem:[%s5774_s9 + $0x1e8] sm:$0xff] }
 0x39b   :  { %4238 = vmatprep.subr.bf16.mxu0 %v4237_v52  ;;  %v2945_v52 = vld [vmem:[%s5774_s9 + $0x30] sm:$0xff] }
 0x39c   :  { %4184 = vmatpush1.bf16.msra.mxu1 %v4183_v30  ;;  %v4241_v30 = vpack.c.bf16 %v2990_v22, %v2989_v21 }
 0x39d   :  { %4186 = vmatprep.subr.bf16.mxu1 %v4185_v38  ;;  %v4243_v38 = vpack.c.bf16 %v2974_v32, %v2973_v31  ;;  %v2970_v31 = vld [vmem:[%s5774_s9 + $0xf8] sm:$0xff] }
 0x3a0   :  { %4188 = vmatpush1.bf16.msra.mxu1 %v4187_v43  ;;  %v2975_v43 = vld [vmem:[%s5774_s9 + $0x120] sm:$0xff] }
 0x3a1   :  { %4206 = vmatprep.subr.bf16.mxu1 %v4205_v49  ;;  %v2994_v49 = vld [vmem:[%s5774_s9 + $0x1b8] sm:$0xff]  ;;  %v4247_v51 = vpack.c.bf16 %v2976_v45, %v2975_v43  ;;  %v2770_v43 = vlaneseq }
 0x3a3   :  { %v2771_v45 = vshrl.u32 %v2770_v43, 7 }
 0x413   :  { %v2062_v53 = vpop.f32.mrb[12].mxu1  ;;  %v2386_v54 = vpop.f32.mrb[16].mxu0 }
 0x414   :  { %v3784_v55 = vpop.f32.mrb[13].mxu1  ;;  %v3860_v56 = vpop.f32.mrb[17].mxu0 }
 0x415   :  { %v4249_v55 = vpack.c.bf16 %v2994_v49, %v2993_v48  ;;  %v2977_v56 = vld [vmem:[%s5774_s9 + $0x130] sm:$0xff]  ;;  %v2768_v48 = vld [vmem:[%s5773_s8] sm:$0xf]  ;;  %v2776_v49 = vsub.s32 1, %v2771_v45 }
 0x423   :  { %v2135_v57 = vpop.f32.mrb[14].mxu1  ;;  %v2554_v58 = vpop.f32.mrb[18].mxu0 }
 0x424   :  { %v2136_v59 = vadd.f32 %v2135_v57, %v2062_v53  ;;  %v3803_v60 = vpop.f32.mrb[15].mxu1  ;;  %v3898_v62 = vpop.f32.mrb[19].mxu0  ;;  %v2946_v53 = vld [vmem:[%s5774_s9 + $0x38] sm:$0xff] }
 0x425   :  { %v2978_v57 = vld [vmem:[%s5774_s9 + $0x138] sm:$0xff]  ;;  %v2995_v60 = vld [vmem:[%s5774_s9 + $0x1c0] sm:$0xff]  ;;  %v2996_v62 = vld [vmem:[%s5774_s9 + $0x1c8] sm:$0xff] }
 0x433   :  { %v2218_v63 = vpop.f32.mrb[16].mxu1  ;;  %v2722_v0 = vpop.f32.mrb[20].mxu0 }
 0x434   :  { %v2222_v1 = vadd.f32 %v2218_v63, %v2136_v59  ;;  %v3822_v2 = vpop.f32.mrb[17].mxu1  ;;  %v3936_v3 = vpop.f32.mrb[21].mxu0  ;;  %v2964_v59 = vld [vmem:[%s5774_s9 + $0xc8] sm:$0xff]  ;;  %v4219_v63 = vpack.c.bf16 %v2946_v53, %v2945_v52  ;;  %v2777_v53 = vrot.slane %v2768_v48, %v2776_v49 }
 0x435   :  { %v2948_v2 = vld [vmem:[%s5774_s9 + $0x48] sm:$0xff] }
 0x443   :  { %v2302_v44 = vpop.f32.mrb[18].mxu1 }
 0x444   :  { %v2306_v61 = vadd.f32 %v2302_v44, %v2222_v1  ;;  %v3841_v4 = vpop.f32.mrb[19].mxu1  ;;  %v2947_v1 = vld [vmem:[%s5774_s9 + $0x40] sm:$0xff]  ;;  %v4253_v44 = vpack.c.bf16 %v2996_v62, %v2995_v60 }
 0x445   :  { %v2980_v4 = vld [vmem:[%s5774_s9 + $0x148] sm:$0xff] }
 0x446   :  { %v2390_v5 = vadd.f32 %v2386_v54, %v2306_v61  ;;  %v4217_v54 = vpack.c.bf16 %v2962_v47, %v2961_v46  ;;  %v2979_v61 = vld [vmem:[%s5774_s9 + $0x140] sm:$0xff]  ;;  %v2772_v46 = vsub.s32 0, %v2771_v45  ;;  %v2780_v47 = vsub.s32 2, %v2771_v45 }
 0x448   :  { %v2781_v52 = vrot.slane %v2768_v48, %v2780_v47 }
 0x453   :  { %v2470_v6 = vpop.f32.mrb[20].mxu1 }
 0x454   :  { %v2474_v7 = vadd.f32 %v2470_v6, %v2390_v5  ;;  %v3879_v8 = vpop.f32.mrb[21].mxu1  ;;  %v2965_v5 = vld [vmem:[%s5774_s9 + $0xd0] sm:$0xff]  ;;  %v2966_v6 = vld [vmem:[%s5774_s9 + $0xd8] sm:$0xff] }
 0x455   :  { %v2998_v8 = vld [vmem:[%s5774_s9 + $0x1d8] sm:$0xff] }
 0x456   :  { %v2558_v9 = vadd.f32 %v2554_v58, %v2474_v7  ;;  %v2963_v58 = vld [vmem:[%s5774_s9 + $0xc0] sm:$0xff]  ;;  %v2997_v7 = vld [vmem:[%s5774_s9 + $0x1d0] sm:$0xff] }
 0x457   :  { %v4221_v3 = vpack.c.bf16 %v2964_v59, %v2963_v58  ;;  %v4257_v14 = vpack.c.bf16 %v2998_v8, %v2997_v7 }
 0x463   :  { %v2638_v10 = vpop.f32.mrb[22].mxu1 }
 0x464   :  { %v2642_v11 = vadd.f32 %v2638_v10, %v2558_v9  ;;  %v3917_v12 = vpop.f32.mrb[23].mxu1  ;;  %v4223_v9 = vpack.c.bf16 %v2948_v2, %v2947_v1  ;;  %v4255_v10 = vpack.c.bf16 %v2980_v4, %v2979_v61  ;;  %v3276_v4 = vld [vmem:[%s5775_s10] ss:$0 sm:$0xff] }
 0x465   :  { %v2950_v12 = vld [vmem:[%s5774_s9 + $0x58] sm:$0xff] }
 0x466   :  { %v2726_v16 = vadd.f32 %v2722_v0, %v2642_v11  ;;  %v4251_v0 = vpack.c.bf16 %v2978_v57, %v2977_v56  ;;  %v2949_v11 = vld [vmem:[%s5774_s9 + $0x50] sm:$0xff] }
 0x467   :  { %v4227_v21 = vpack.c.bf16 %v2950_v12, %v2949_v11 }
 0x468   :  { %v2734_v23 = vadd.f32 %v3273_v13, %v2726_v16  ;;  %v4225_v13 = vpack.c.bf16 %v2966_v6, %v2965_v5  ;;  %v2982_v16 = vld [vmem:[%s5774_s9 + $0x158] sm:$0xff] }
 0x469   :  { %v4259_v22 = vpack.c.bf16 %v2982_v16, %v2981_v15 }
 0x46a   :  { %v2735_v28 = vmax.f32 %v2734_v23, 0.0  ;;  %v4229_v23 = vpack.c.bf16 %v2968_v18, %v2967_v17 }
 0x46c   :  { %3274 = vmatmul.mubr.msk.f32.vlgmr.msra.gmra.mrb[24].mxu1 %vm87_vm0, %v2735_v28  ;;  %3275 = vmatmul.mubr.msk.f32.vlgmr.msra.gmra.mrb[22].mxu0 %vm87_vm0, %v2735_v28  ;;  %vm3150_vm0 = vcmask 41984  }
 0x46d   :  { %4208 = vmatpush3.bf16.msra.mxu1 %v4207_v24  ;;  %4240 = vmatpush3.bf16.msra.mxu0 %v4239_v25  ;;  %v4261_v24 = vpack.c.bf16 %v3000_v20, %v2999_v19  ;;  %v2951_v25 = vld [vmem:[%s5774_s9 + $0x60] sm:$0xff] }
 0x46e   :  { %4210 = vmatprep.subr.bf16.mxu1 %v4209_v29  ;;  %4242 = vmatprep.subr.bf16.mxu0 %v4241_v30  ;;  %v4231_v28 = vpack.c.bf16 %v2952_v26, %v2951_v25  ;;  %v2984_v29 = vld [vmem:[%s5774_s9 + $0x168] sm:$0xff]  ;;  %v2969_v30 = vld [vmem:[%s5774_s9 + $0xf0] sm:$0xff] }
 0x46f   :  { %v4263_v32 = vpack.c.bf16 %v2984_v29, %v2983_v27  ;;  %v4233_v33 = vpack.c.bf16 %v2970_v31, %v2969_v30 }
 0x471   :  { %4212 = vmatpush3.bf16.msra.mxu1 %v4211_v37  ;;  %4244 = vmatpush3.bf16.msra.mxu0 %v4243_v38  ;;  %v4265_v37 = vpack.c.bf16 %v3002_v35, %v3001_v34  ;;  %v2954_v38 = vld [vmem:[%s5774_s9 + $0x78] sm:$0xff] }
 0x472   :  { %4214 = vmatprep.subr.bf16.mxu1 %v4213_v41  ;;  %4246 = vmatprep.subr.bf16.mxu0 %v4245_v42  ;;  %v4235_v41 = vpack.c.bf16 %v2954_v38, %v2953_v36  ;;  %v4267_v42 = vpack.c.bf16 %v2986_v40, %v2985_v39 }
 0x475   :  { %4216 = vmatpush3.bf16.msra.mxu1 %v4215_v50  ;;  %4248 = vmatpush3.bf16.msra.mxu0 %v4247_v51  ;;  %v2784_v50 = vsub.s32 3, %v2771_v45  ;;  %v2773_v51 = vrot.slane %v2768_v48, %v2772_v46 }
 0x476   :  { %4218 = vmatprep.subr.bf16.mxu1 %v4217_v54  ;;  %4250 = vmatprep.subr.bf16.mxu0 %v4249_v55 }
 0x477   :  { %v2785_v54 = vrot.slane %v2768_v48, %v2784_v50 }
 0x479   :  { %4220 = vmatpush3.bf16.msra.mxu1 %v4219_v63  ;;  %4252 = vmatpush3.bf16.msra.mxu0 %v4251_v0 }
 0x47a   :  { %4222 = vmatprep.subr.bf16.mxu1 %v4221_v3  ;;  %4254 = vmatprep.subr.bf16.mxu0 %v4253_v44 }
 0x47d   :  { %4224 = vmatpush3.bf16.msra.mxu1 %v4223_v9  ;;  %4256 = vmatpush3.bf16.msra.mxu0 %v4255_v10 }
 0x47e   :  { %4226 = vmatprep.subr.bf16.mxu1 %v4225_v13  ;;  %4258 = vmatprep.subr.bf16.mxu0 %v4257_v14 }
 0x481   :  { %4228 = vmatpush3.bf16.msra.mxu1 %v4227_v21  ;;  %4260 = vmatpush3.bf16.msra.mxu0 %v4259_v22 }
 0x482   :  { %4230 = vmatprep.subr.bf16.mxu1 %v4229_v23  ;;  %4262 = vmatprep.subr.bf16.mxu0 %v4261_v24 }
 0x485   :  { %4232 = vmatpush3.bf16.msra.mxu1 %v4231_v28  ;;  %4264 = vmatpush3.bf16.msra.mxu0 %v4263_v32 }
 0x486   :  { %4234 = vmatprep.subr.bf16.mxu1 %v4233_v33  ;;  %4266 = vmatprep.subr.bf16.mxu0 %v4265_v37 }
 0x489   :  { %4236 = vmatpush3.bf16.msra.mxu1 %v4235_v41  ;;  %4268 = vmatpush3.bf16.msra.mxu0 %v4267_v42 }
 0x53f   :  { %v2859_v55 = vpop.f32.mrb[24].mxu1  ;;  %v2930_v56 = vpop.f32.mrb[22].mxu0 }
 0x540   :  { %v2860_v57 = vadd.f32 %v2859_v55, %v2773_v51  ;;  %v2931_v58 = vadd.f32 %v2930_v56, %v2781_v52  ;;  %v2861_v59 = vpop.f32.mrb[25].mxu1  ;;  %v2932_v60 = vpop.f32.mrb[23].mxu0 }
 0x541   :  { %v2862_v62 = vadd.f32 %v2861_v59, %v2777_v53  ;;  %v2933_v63 = vadd.f32 %v2932_v60, %v2785_v54 }
 0x542   :  { %v2935_v2 = vmax.f32 %v2860_v57, 0.0  ;;  %v2937_v3 = vmax.f32 %v2931_v58, 0.0 }
 0x543   :  { %v2936_v0 = vmax.f32 %v2862_v62, 0.0  ;;  %v2938_v1 = vmax.f32 %v2933_v63, 0.0 }
 0x545   :  { %3074 = vmatprep.mubr.f32.mxu1 %v2936_v0  ;;  %3144 = vmatprep.mubr.f32.mxu0 %v2938_v1 }
 0x546   :  { %3075 = vmatmul.mubr.f32.vlgmr.msra.gmra.mrb[26].mxu1 %v2935_v2  ;;  %3145 = vmatmul.mubr.f32.vlgmr.msra.gmra.mrb[24].mxu0 %v2937_v3 }
 0x619   :  { %v3568_v44 = vpop.f32.mrb[26].mxu1  ;;  %v3603_v61 = vpop.f32.mrb[24].mxu0 }
 0x61a   :  { %v3569_v5 = vpop.f32.mrb[27].mxu1  ;;  %v3604_v6 = vpop.f32.mrb[25].mxu0 }
 0x61b   :  { %v3570_v7 = vadd.f32 %v3569_v5, %v3568_v44  ;;  %v3605_v8 = vadd.f32 %v3604_v6, %v3603_v61 }
 0x61d   :  { %v3077_v9 = vadd.f32 %v3570_v7, %v3276_v4 }
 0x61f   :  { %v3147_v10 = vadd.f32 %v3605_v8, %v3077_v9 }
 0x621   :  { %3151 = vst.msk [vmem:[#allocation5] sm:$0x3] %vm3150_vm0, %v3147_v10 }
 0x622   :  { %4335 = shalt.err (!%p4332_p4)
}
 0x623   :  { %s4336_s19 = scalar_lea.hbm %s5776_s11, 32 }
 0x624   :  { %p4337_p5 = scmp.ne.s32.totalorder %s5776_s11, %s4336_s19  ;;  %p4340_p6 = scmp.lt.u32.totalorder %s4336_s19, %s5776_s11 }
 0x626   :  { %p4342_p7 = pnand %p4340_p6, %p4337_p5 }
 0x628   :  { %4345 = shalt.err (!%p4342_p7)
}
 0x629   :  { %3161 = dma.vmem_to_hbm [thread:$0]  %s3159_s16, 32, %s5776_s11, [#allocation6]  }
 0x62a   :  { %4346 = dma.done.wait [#allocation6], 32  }
 0x62b   :  { %4347 = vsyncadd [#allocation6], 4294967264 }
 0x62c   :  { %3165 = vsyncpa [#allocation6], 1 }

</bundles_post_ra>
